<compile_context>
chip_gen: v7x
topology: tpu7x:2x2x1
jax: 0.10.0
libtpu: 0.0.40
codegen_flags: <defaults>
</compile_context>

<pallas_src>
import functools

import jax
import jax.numpy as jnp
import numpy as np
from jax.experimental import pallas as pl
from jax.experimental.pallas import tpu as pltpu


def _round_up(n, m):
    return ((n + m - 1) // m) * m


# PyTorch LSTM gate order is (i, f, g, o); we repack to (i, f, o, g) so the three sigmoid
# gates form one contiguous lane-dense slab.  Plain numpy -> no device alloc at import.
_GATE_ORDER = np.array([0, 1, 3, 2], dtype=np.int32)


def _pack_gate_weight(w, d_in_p, hp):
    """w: (4H, D_in) PyTorch layout -> (d_in_p, 4*hp) bf16, gate order (i,f,o,g), zero padded."""
    h4, d_in = w.shape
    h = h4 // 4
    wt = jnp.transpose(w).reshape(d_in, 4, h)          # (D_in, gate, H)
    wt = wt[:, _GATE_ORDER, :]                          # reorder gates
    wt = jnp.pad(wt, ((0, d_in_p - d_in), (0, 0), (0, hp - h)))
    return wt.reshape(d_in_p, 4 * hp).astype(jnp.bfloat16)


def _pack_gate_bias(b_ih, b_hh, hp):
    h = b_ih.shape[0] // 4
    b = (b_ih + b_hh).reshape(4, h)
    b = b[_GATE_ORDER, :]
    # Padded gate preacts stay 0 -> with zero-initialized carries the padded hidden lanes
    # remain exactly 0 (i=f=o=0.5, g=0 -> c=h=0).  NOTE: this invariant relies on zero
    # initial hidden/cell state (which matches the PyTorch module's default).
    b = jnp.pad(b, ((0, 0), (0, hp - h)))
    return b.reshape(1, 4 * hp).astype(jnp.float32)


# ------------------------------- fused kernel ---------------------------------
def _make_fused_kernel(n_layer, seq_len, bt, d_in, hp, use_ssa, unroll):
    g4 = 4 * hp

    def kernel(*refs):
        x_ref = refs[0]                                  # (T, Bt, D_in)  bf16
        layer_refs = refs[1:1 + 3 * n_layer]             # (wih, whh, bias) per layer
        wcls_ref = refs[1 + 3 * n_layer]                 # (Hp, Cp) bf16
        bcls_ref = refs[2 + 3 * n_layer]                 # (1, Cp)  f32
        out_ref = refs[3 + 3 * n_layer]                  # (Bt, Cp) f32
        if not use_ssa:
            pre_ref = refs[4 + 3 * n_layer]              # (T, Bt, 4*Hp) bf16 scratch
            seq_ref = refs[5 + 3 * n_layer]              # (T, Bt, Hp)   bf16 scratch

        def cell(gates, h, c):
            # gate layout (i, f, o, g): one contiguous EUP burst for the three sigmoids
            # (sigmoid(x) = 0.5*(tanh(x/2)+1) -> a single EUP op each).
            sig = 0.5 * (jnp.tanh(0.5 * gates[:, :3 * hp]) + 1.0)
            i_g = sig[:, 0 * hp:1 * hp]
            f_g = sig[:, 1 * hp:2 * hp]
            o_g = sig[:, 2 * hp:3 * hp]
            g_g = jnp.tanh(gates[:, 3 * hp:4 * hp])
            c_new = f_g * c + i_g * g_g
            h_new = o_g * jnp.tanh(c_new)
            return h_new, c_new

        def run_layer(x2d_bf16, wih_ref, whh_ref, b_ref, write_seq):
            # Hoisted input projection + bias (added once) for ALL timesteps: one MXU matmul.
            pre = jnp.dot(x2d_bf16, wih_ref[...],
                          preferred_element_type=jnp.float32) + b_ref[...]
            h0 = jnp.zeros((bt, hp), jnp.float32)
            c0 = jnp.zeros((bt, hp), jnp.float32)

            if use_ssa:
                # Tiny T*Bt: keep pregates as SSA values, static slices in a Python-unrolled
                # loop (no pre_ref vst/vld on the serial recurrence critical path).
                pre3 = pre.reshape(seq_len, bt, g4)
                h, c = h0, c0
                hs = []
                for t in range(seq_len):
                    gates = pre3[t] + jnp.dot(h.astype(jnp.bfloat16), whh_ref[...],
                                              preferred_element_type=jnp.float32)
                    h, c = cell(gates, h, c)
                    if write_seq:
                        hs.append(h.astype(jnp.bfloat16))
                nxt = (jnp.stack(hs, axis=0).reshape(seq_len * bt, hp)
                       if write_seq else None)
                return h, nxt

            # General path: bf16 pregates / sequence in VMEM scratch, bounded-unroll fori_loop.
            pre_ref[...] = pre.reshape(seq_len, bt, g4).astype(jnp.bfloat16)

            def step(t, carry):
                h, c = carry                             # f32 (Bt, Hp) carries
                gates = pre_ref[t].astype(jnp.float32) + jnp.dot(
                    h.astype(jnp.bfloat16), whh_ref[...],
                    preferred_element_type=jnp.float32)  # (Bt, 4*Hp)
                h_new, c_new = cell(gates, h, c)
                if write_seq:                            # last layer: skip seq writeback
                    seq_ref[t] = h_new.astype(jnp.bfloat16)
                return h_new, c_new

            h_last, _ = jax.lax.fori_loop(0, seq_len, step, (h0, c0), unroll=unroll)
            nxt = seq_ref[...].reshape(seq_len * bt, hp) if write_seq else None
            return h_last, nxt

        layer_in = x_ref[...].reshape(seq_len * bt, d_in)     # bf16
        h_last = None
        for layer in range(n_layer):
            wih_ref, whh_ref, b_ref = layer_refs[3 * layer:3 * layer + 3]
            write_seq = layer < n_layer - 1
            h_last, nxt = run_layer(layer_in, wih_ref, whh_ref, b_ref, write_seq)
            if write_seq:
                layer_in = nxt

        # Fused classifier on the last timestep's hidden state (lane-dense (Bt, Cp) store).
        logits = jnp.dot(h_last.astype(jnp.bfloat16), wcls_ref[...],
                         preferred_element_type=jnp.float32) + bcls_ref[...]
        out_ref[...] = logits

    return kernel


# --------------------------------- wrapper -------------------------------------
@jax.jit
def rnn_forward(x, params):
    """x: (B, T, in_dim) batch-first, like the PyTorch module. Returns (B, n_class)."""
    B, T, D = x.shape
    n_layer = len(params["lstm"])
    H = params["lstm"][0]["w_hh"].shape[1]
    C = params["cls_w"].shape[0]

    Bp = _round_up(B, 8)          # fill sublanes
    Hp = _round_up(H, 128)        # lane-dense gates / hidden
    Cp = _round_up(C, 128)        # lane-dense logits store

    # Batch tile: fill the hoisted pregate matmul's M dim (target T*Bt >= 256 for the
    # 256-wide MXU on v6e/v7x), give >1 grid step on large batches (v7x 2-TC "parallel"
    # sharding) and bound the per-tile VMEM scratch.
    target_bt = max(8, _round_up(-(-256 // T), 16))
    Bt = min(Bp, min(256, max(target_bt, 64)))
    Bp = _round_up(Bp, Bt)
    n_bt = Bp // Bt

    # Keep pregates as SSA values (no scratch round trip) only when they are a few
    # dozen vregs; otherwise use bf16 VMEM scratch + bounded-unroll fori_loop.
    use_ssa = (T * Bt * 4 * Hp * 4) <= 128 * 1024 and T <= 16
    unroll = min(4, T)

    # Batch-first -> time-major, pad batch; keep 3-D so the batch axis can be grid-tiled.
    x_tm = jnp.transpose(x, (1, 0, 2))
    x_p = jnp.pad(x_tm, ((0, 0), (0, Bp - B), (0, 0))).astype(jnp.bfloat16)   # (T, Bp, D)

    flat = [x_p]
    for layer, lp in enumerate(params["lstm"]):
        d_in_p = D if layer == 0 else Hp
        flat.append(_pack_gate_weight(lp["w_ih"], d_in_p, Hp))
        flat.append(_pack_gate_weight(lp["w_hh"], Hp, Hp))
        flat.append(_pack_gate_bias(lp["b_ih"], lp["b_hh"], Hp))
    flat.append(jnp.pad(jnp.transpose(params["cls_w"]),
                        ((0, Hp - H), (0, Cp - C))).astype(jnp.bfloat16))
    flat.append(jnp.pad(params["cls_b"], (0, Cp - C)).reshape(1, Cp).astype(jnp.float32))

    # ---- BlockSpecs: batch-tiled x / out, resident (constant index_map) weights ----
    in_specs = [pl.BlockSpec((T, Bt, D), lambda i: (0, i, 0))]
    for layer in range(n_layer):
        d_in_p = D if layer == 0 else Hp
        in_specs.append(pl.BlockSpec((d_in_p, 4 * Hp), lambda i: (0, 0)))
        in_specs.append(pl.BlockSpec((Hp, 4 * Hp), lambda i: (0, 0)))
        in_specs.append(pl.BlockSpec((1, 4 * Hp), lambda i: (0, 0)))
    in_specs.append(pl.BlockSpec((Hp, Cp), lambda i: (0, 0)))
    in_specs.append(pl.BlockSpec((1, Cp), lambda i: (0, 0)))
    out_specs = pl.BlockSpec((Bt, Cp), lambda i: (i, 0))

    scratch_shapes = []
    if not use_ssa:
        scratch_shapes = [
            pltpu.VMEM((T, Bt, 4 * Hp), jnp.bfloat16),   # hoisted pregates (per layer)
            pltpu.VMEM((T, Bt, Hp), jnp.bfloat16),       # inter-layer hidden sequence
        ]

    # ---- VMEM budget (double-buffered inputs/outputs + single-buffered scratch) ----
    w_bytes = 0
    for layer in range(n_layer):
        d_in_p = D if layer == 0 else Hp
        w_bytes += d_in_p * 4 * Hp * 2 + Hp * 4 * Hp * 2 + 4 * Hp * 4
    w_bytes += Hp * Cp * 2 + Cp * 4
    io_bytes = T * Bt * D * 2 + Bt * Cp * 4
    scratch_bytes = 0 if use_ssa else (T * Bt * 4 * Hp * 2 + T * Bt * Hp * 2)
    needed = 2 * (io_bytes + w_bytes) + scratch_bytes
    vmem_limit = int(min(max(2 * needed + (8 << 20), 32 << 20), 60 << 20))

    # ---- advisory cost estimate for the XLA scheduler ----
    flops = 0
    for layer in range(n_layer):
        d_in = D if layer == 0 else Hp
        flops += 2 * T * Bp * d_in * 4 * Hp          # hoisted input projection
        flops += 2 * T * Bp * Hp * 4 * Hp            # recurrence h @ W_hh
    flops += 2 * Bp * Hp * Cp                        # classifier
    transcendentals = n_layer * T * Bp * 5 * Hp      # 3 sigmoid + 2 tanh per step
    bytes_accessed = T * Bp * D * 2 + n_bt * w_bytes + Bp * Cp * 4

    kernel = _make_fused_kernel(n_layer, T, Bt, D, Hp, use_ssa, unroll)

    out = pl.pallas_call(
        kernel,
        out_shape=jax.ShapeDtypeStruct((Bp, Cp), jnp.float32),
        grid_spec=pltpu.PrefetchScalarGridSpec(
            num_scalar_prefetch=0,
            grid=(n_bt,),
            in_specs=in_specs,
            out_specs=out_specs,
            scratch_shapes=scratch_shapes,
        ),
        compiler_params=pltpu.CompilerParams(
            dimension_semantics=("parallel",),       # batch tiles independent -> v7x 2-TC
            vmem_limit_bytes=vmem_limit,
        ),
        cost_estimate=pl.CostEstimate(
            flops=int(flops),
            transcendentals=int(transcendentals),
            bytes_accessed=int(bytes_accessed),
        ),
    )(*flat)

    return out[:B, :C]


# ------------------------------ pure-JAX reference -----------------------------
def _ref_forward(x, params):
    def cell(h, c, x_t, lp):
        g = x_t @ lp["w_ih"].T + lp["b_ih"] + h @ lp["w_hh"].T + lp["b_hh"]
        H = h.shape[-1]
        i = jax.nn.sigmoid(g[:, :H])
        f = jax.nn.sigmoid(g[:, H:2 * H])
        gg = jnp.tanh(g[:, 2 * H:3 * H])
        o = jax.nn.sigmoid(g[:, 3 * H:])
        c = f * c + i * gg
        h = o * jnp.tanh(c)
        return h, c

    B, T, _ = x.shape
    seq = x
    for lp in params["lstm"]:
        H = lp["w_hh"].shape[1]
        h = jnp.zeros((B, H), jnp.float32)
        c = jnp.zeros((B, H), jnp.float32)
        outs = []
        for t in range(T):
            h, c = cell(h, c, seq[:, t, :], lp)
            outs.append(h)
        seq = jnp.stack(outs, axis=1)
    return seq[:, -1, :] @ params["cls_w"].T + params["cls_b"]


# ----------------------------------- params ------------------------------------
def make_params(key, in_dim, hidden_dim, n_layer, n_class):
    scale = 1.0 / np.sqrt(hidden_dim)
    params = {"lstm": []}
    for layer in range(n_layer):
        d_in = in_dim if layer == 0 else hidden_dim
        key, k1, k2, k3, k4 = jax.random.split(key, 5)
        params["lstm"].append({
            "w_ih": jax.random.uniform(k1, (4 * hidden_dim, d_in), jnp.float32, -scale, scale),
            "w_hh": jax.random.uniform(k2, (4 * hidden_dim, hidden_dim), jnp.float32, -scale, scale),
            "b_ih": jax.random.uniform(k3, (4 * hidden_dim,), jnp.float32, -scale, scale),
            "b_hh": jax.random.uniform(k4, (4 * hidden_dim,), jnp.float32, -scale, scale),
        })
    key, k5, k6 = jax.random.split(key, 3)
    params["cls_w"] = jax.random.uniform(k5, (n_class, hidden_dim), jnp.float32, -scale, scale)
    params["cls_b"] = jax.random.uniform(k6, (n_class,), jnp.float32, -scale, scale)
    return params


# ------------------------------------ main --------------------------------------
if __name__ == "__main__":
    # Small shapes consistent with the module: x is (batch, seq, in_dim).
    B, T, IN_DIM, HIDDEN, N_LAYER, N_CLASS = 4, 8, 16, 32, 2, 10

    key = jax.random.PRNGKey(0)
    key, kx = jax.random.split(key)
    x = jax.random.normal(kx, (B, T, IN_DIM), jnp.float32)
    params = make_params(key, IN_DIM, HIDDEN, N_LAYER, N_CLASS)

    out = jax.block_until_ready(rnn_forward(x, params))

    ref = _ref_forward(x, params)
    # Kernel runs its matmuls with bf16 inputs (f32 accumulation) and re-casts h each
    # step, so tolerance vs the pure-f32 reference is loosened accordingly (typical
    # error ~1e-2 at these shapes).
    np.testing.assert_allclose(np.asarray(out), np.asarray(ref), atol=1e-1, rtol=1e-1)

    print("KERNEL_OK")
</pallas_src>

<mosaic_0001>
module attributes {stable_mosaic.version = 11 : i64} {
  func.func @kernel(%arg0: i32, %arg1: memref<8x8x16xbf16, #tpu.memory_space<vmem>>, %arg2: memref<16x512xbf16, #tpu.memory_space<vmem>>, %arg3: memref<128x512xbf16, #tpu.memory_space<vmem>>, %arg4: memref<1x512xf32, #tpu.memory_space<vmem>>, %arg5: memref<128x512xbf16, #tpu.memory_space<vmem>>, %arg6: memref<128x512xbf16, #tpu.memory_space<vmem>>, %arg7: memref<1x512xf32, #tpu.memory_space<vmem>>, %arg8: memref<128x128xbf16, #tpu.memory_space<vmem>>, %arg9: memref<1x128xf32, #tpu.memory_space<vmem>>, %arg10: memref<8x128xf32, #tpu.memory_space<vmem>>) attributes {dimension_semantics = [#tpu.dimension_semantics<parallel>], iteration_bounds = array<i64: 1>, scalar_prefetch = 0 : i64, scratch_operands = 0 : i64, tpu.core_type = #tpu.core_type<tc>, window_params = [{transform_indices = @transform_0, window_bounds = array<i64: 8, 8, 16>}, {pipeline_mode = #tpu.pipeline_mode<synchronous>, transform_indices = @transform_1, window_bounds = array<i64: 16, 512>}, {pipeline_mode = #tpu.pipeline_mode<synchronous>, transform_indices = @transform_2, window_bounds = array<i64: 128, 512>}, {pipeline_mode = #tpu.pipeline_mode<synchronous>, transform_indices = @transform_3, window_bounds = array<i64: 1, 512>}, {pipeline_mode = #tpu.pipeline_mode<synchronous>, transform_indices = @transform_4, window_bounds = array<i64: 128, 512>}, {pipeline_mode = #tpu.pipeline_mode<synchronous>, transform_indices = @transform_5, window_bounds = array<i64: 128, 512>}, {pipeline_mode = #tpu.pipeline_mode<synchronous>, transform_indices = @transform_6, window_bounds = array<i64: 1, 512>}, {pipeline_mode = #tpu.pipeline_mode<synchronous>, transform_indices = @transform_7, window_bounds = array<i64: 128, 128>}, {pipeline_mode = #tpu.pipeline_mode<synchronous>, transform_indices = @transform_8, window_bounds = array<i64: 1, 128>}, {transform_indices = @transform_9, window_bounds = array<i64: 8, 128>}]} {
    %c0 = arith.constant 0 : index
    %c0_0 = arith.constant 0 : index
    %c0_1 = arith.constant 0 : index
    %0 = vector.load %arg1[%c0, %c0_0, %c0_1] : memref<8x8x16xbf16, #tpu.memory_space<vmem>>, vector<8x8x16xbf16>
    %1 = vector.shape_cast %0 : vector<8x8x16xbf16> to vector<64x16xbf16>
    %c0_2 = arith.constant 0 : index
    %c0_3 = arith.constant 0 : index
    %2 = vector.load %arg2[%c0_2, %c0_3] : memref<16x512xbf16, #tpu.memory_space<vmem>>, vector<16x512xbf16>
    %cst = arith.constant dense<0.000000e+00> : vector<64x512xf32>
    %3 = tpu.matmul %1, %2, %cst {dimension_numbers = #tpu.dot_dimension_numbers<[1], [0], [0], [1], [0, 0, 1, 1], [], []>} : vector<64x16xbf16>, vector<16x512xbf16>, vector<64x512xf32> -> vector<64x512xf32>
    %c0_4 = arith.constant 0 : index
    %c0_5 = arith.constant 0 : index
    %4 = vector.load %arg4[%c0_4, %c0_5] : memref<1x512xf32, #tpu.memory_space<vmem>>, vector<1x512xf32>
    %5 = vector.broadcast %4 : vector<1x512xf32> to vector<64x512xf32>
    %6 = arith.addf %3, %5 : vector<64x512xf32>
    %cst_6 = arith.constant 0.000000e+00 : f32
    %7 = vector.broadcast %cst_6 : f32 to vector<8x128xf32>
    %cst_7 = arith.constant 0.000000e+00 : f32
    %8 = vector.broadcast %cst_7 : f32 to vector<8x128xf32>
    %9 = vector.shape_cast %6 : vector<64x512xf32> to vector<8x8x512xf32>
    %10 = vector.extract_strided_slice %9 {offsets = [0, 0, 0], sizes = [1, 8, 512], strides = [1, 1, 1]} : vector<8x8x512xf32> to vector<1x8x512xf32>
    %11 = vector.shape_cast %10 : vector<1x8x512xf32> to vector<8x512xf32>
    %12 = arith.truncf %7 : vector<8x128xf32> to vector<8x128xbf16>
    %c0_8 = arith.constant 0 : index
    %c0_9 = arith.constant 0 : index
    %13 = vector.load %arg3[%c0_8, %c0_9] : memref<128x512xbf16, #tpu.memory_space<vmem>>, vector<128x512xbf16>
    %cst_10 = arith.constant dense<0.000000e+00> : vector<8x512xf32>
    %14 = tpu.matmul %12, %13, %cst_10 {dimension_numbers = #tpu.dot_dimension_numbers<[1], [0], [0], [1], [0, 0, 1, 1], [], []>} : vector<8x128xbf16>, vector<128x512xbf16>, vector<8x512xf32> -> vector<8x512xf32>
    %15 = arith.addf %11, %14 : vector<8x512xf32>
    %16 = vector.extract_strided_slice %15 {offsets = [0, 0], sizes = [8, 384], strides = [1, 1]} : vector<8x512xf32> to vector<8x384xf32>
    %cst_11 = arith.constant 5.000000e-01 : f32
    %17 = vector.broadcast %cst_11 : f32 to vector<8x384xf32>
    %18 = arith.mulf %17, %16 : vector<8x384xf32>
    %19 = math.tanh %18 : vector<8x384xf32>
    %cst_12 = arith.constant 1.000000e+00 : f32
    %20 = vector.broadcast %cst_12 : f32 to vector<8x384xf32>
    %21 = arith.addf %19, %20 : vector<8x384xf32>
    %cst_13 = arith.constant 5.000000e-01 : f32
    %22 = vector.broadcast %cst_13 : f32 to vector<8x384xf32>
    %23 = arith.mulf %22, %21 : vector<8x384xf32>
    %24 = vector.extract_strided_slice %23 {offsets = [0, 0], sizes = [8, 128], strides = [1, 1]} : vector<8x384xf32> to vector<8x128xf32>
    %25 = vector.extract_strided_slice %23 {offsets = [0, 128], sizes = [8, 128], strides = [1, 1]} : vector<8x384xf32> to vector<8x128xf32>
    %26 = vector.extract_strided_slice %23 {offsets = [0, 256], sizes = [8, 128], strides = [1, 1]} : vector<8x384xf32> to vector<8x128xf32>
    %27 = vector.extract_strided_slice %15 {offsets = [0, 384], sizes = [8, 128], strides = [1, 1]} : vector<8x512xf32> to vector<8x128xf32>
    %28 = math.tanh %27 : vector<8x128xf32>
    %29 = arith.mulf %25, %8 : vector<8x128xf32>
    %30 = arith.mulf %24, %28 : vector<8x128xf32>
    %31 = arith.addf %29, %30 : vector<8x128xf32>
    %32 = math.tanh %31 : vector<8x128xf32>
    %33 = arith.mulf %26, %32 : vector<8x128xf32>
    %34 = arith.truncf %33 : vector<8x128xf32> to vector<8x128xbf16>
    %35 = vector.extract_strided_slice %9 {offsets = [1, 0, 0], sizes = [1, 8, 512], strides = [1, 1, 1]} : vector<8x8x512xf32> to vector<1x8x512xf32>
    %36 = vector.shape_cast %35 : vector<1x8x512xf32> to vector<8x512xf32>
    %37 = arith.truncf %33 : vector<8x128xf32> to vector<8x128xbf16>
    %c0_14 = arith.constant 0 : index
    %c0_15 = arith.constant 0 : index
    %38 = vector.load %arg3[%c0_14, %c0_15] : memref<128x512xbf16, #tpu.memory_space<vmem>>, vector<128x512xbf16>
    %cst_16 = arith.constant dense<0.000000e+00> : vector<8x512xf32>
    %39 = tpu.matmul %37, %38, %cst_16 {dimension_numbers = #tpu.dot_dimension_numbers<[1], [0], [0], [1], [0, 0, 1, 1], [], []>} : vector<8x128xbf16>, vector<128x512xbf16>, vector<8x512xf32> -> vector<8x512xf32>
    %40 = arith.addf %36, %39 : vector<8x512xf32>
    %41 = vector.extract_strided_slice %40 {offsets = [0, 0], sizes = [8, 384], strides = [1, 1]} : vector<8x512xf32> to vector<8x384xf32>
    %cst_17 = arith.constant 5.000000e-01 : f32
    %42 = vector.broadcast %cst_17 : f32 to vector<8x384xf32>
    %43 = arith.mulf %42, %41 : vector<8x384xf32>
    %44 = math.tanh %43 : vector<8x384xf32>
    %cst_18 = arith.constant 1.000000e+00 : f32
    %45 = vector.broadcast %cst_18 : f32 to vector<8x384xf32>
    %46 = arith.addf %44, %45 : vector<8x384xf32>
    %cst_19 = arith.constant 5.000000e-01 : f32
    %47 = vector.broadcast %cst_19 : f32 to vector<8x384xf32>
    %48 = arith.mulf %47, %46 : vector<8x384xf32>
    %49 = vector.extract_strided_slice %48 {offsets = [0, 0], sizes = [8, 128], strides = [1, 1]} : vector<8x384xf32> to vector<8x128xf32>
    %50 = vector.extract_strided_slice %48 {offsets = [0, 128], sizes = [8, 128], strides = [1, 1]} : vector<8x384xf32> to vector<8x128xf32>
    %51 = vector.extract_strided_slice %48 {offsets = [0, 256], sizes = [8, 128], strides = [1, 1]} : vector<8x384xf32> to vector<8x128xf32>
    %52 = vector.extract_strided_slice %40 {offsets = [0, 384], sizes = [8, 128], strides = [1, 1]} : vector<8x512xf32> to vector<8x128xf32>
    %53 = math.tanh %52 : vector<8x128xf32>
    %54 = arith.mulf %50, %31 : vector<8x128xf32>
    %55 = arith.mulf %49, %53 : vector<8x128xf32>
    %56 = arith.addf %54, %55 : vector<8x128xf32>
    %57 = math.tanh %56 : vector<8x128xf32>
    %58 = arith.mulf %51, %57 : vector<8x128xf32>
    %59 = arith.truncf %58 : vector<8x128xf32> to vector<8x128xbf16>
    %60 = vector.extract_strided_slice %9 {offsets = [2, 0, 0], sizes = [1, 8, 512], strides = [1, 1, 1]} : vector<8x8x512xf32> to vector<1x8x512xf32>
    %61 = vector.shape_cast %60 : vector<1x8x512xf32> to vector<8x512xf32>
    %62 = arith.truncf %58 : vector<8x128xf32> to vector<8x128xbf16>
    %c0_20 = arith.constant 0 : index
    %c0_21 = arith.constant 0 : index
    %63 = vector.load %arg3[%c0_20, %c0_21] : memref<128x512xbf16, #tpu.memory_space<vmem>>, vector<128x512xbf16>
    %cst_22 = arith.constant dense<0.000000e+00> : vector<8x512xf32>
    %64 = tpu.matmul %62, %63, %cst_22 {dimension_numbers = #tpu.dot_dimension_numbers<[1], [0], [0], [1], [0, 0, 1, 1], [], []>} : vector<8x128xbf16>, vector<128x512xbf16>, vector<8x512xf32> -> vector<8x512xf32>
    %65 = arith.addf %61, %64 : vector<8x512xf32>
    %66 = vector.extract_strided_slice %65 {offsets = [0, 0], sizes = [8, 384], strides = [1, 1]} : vector<8x512xf32> to vector<8x384xf32>
    %cst_23 = arith.constant 5.000000e-01 : f32
    %67 = vector.broadcast %cst_23 : f32 to vector<8x384xf32>
    %68 = arith.mulf %67, %66 : vector<8x384xf32>
    %69 = math.tanh %68 : vector<8x384xf32>
    %cst_24 = arith.constant 1.000000e+00 : f32
    %70 = vector.broadcast %cst_24 : f32 to vector<8x384xf32>
    %71 = arith.addf %69, %70 : vector<8x384xf32>
    %cst_25 = arith.constant 5.000000e-01 : f32
    %72 = vector.broadcast %cst_25 : f32 to vector<8x384xf32>
    %73 = arith.mulf %72, %71 : vector<8x384xf32>
    %74 = vector.extract_strided_slice %73 {offsets = [0, 0], sizes = [8, 128], strides = [1, 1]} : vector<8x384xf32> to vector<8x128xf32>
    %75 = vector.extract_strided_slice %73 {offsets = [0, 128], sizes = [8, 128], strides = [1, 1]} : vector<8x384xf32> to vector<8x128xf32>
    %76 = vector.extract_strided_slice %73 {offsets = [0, 256], sizes = [8, 128], strides = [1, 1]} : vector<8x384xf32> to vector<8x128xf32>
    %77 = vector.extract_strided_slice %65 {offsets = [0, 384], sizes = [8, 128], strides = [1, 1]} : vector<8x512xf32> to vector<8x128xf32>
    %78 = math.tanh %77 : vector<8x128xf32>
    %79 = arith.mulf %75, %56 : vector<8x128xf32>
    %80 = arith.mulf %74, %78 : vector<8x128xf32>
    %81 = arith.addf %79, %80 : vector<8x128xf32>
    %82 = math.tanh %81 : vector<8x128xf32>
    %83 = arith.mulf %76, %82 : vector<8x128xf32>
    %84 = arith.truncf %83 : vector<8x128xf32> to vector<8x128xbf16>
    %85 = vector.extract_strided_slice %9 {offsets = [3, 0, 0], sizes = [1, 8, 512], strides = [1, 1, 1]} : vector<8x8x512xf32> to vector<1x8x512xf32>
    %86 = vector.shape_cast %85 : vector<1x8x512xf32> to vector<8x512xf32>
    %87 = arith.truncf %83 : vector<8x128xf32> to vector<8x128xbf16>
    %c0_26 = arith.constant 0 : index
    %c0_27 = arith.constant 0 : index
    %88 = vector.load %arg3[%c0_26, %c0_27] : memref<128x512xbf16, #tpu.memory_space<vmem>>, vector<128x512xbf16>
    %cst_28 = arith.constant dense<0.000000e+00> : vector<8x512xf32>
    %89 = tpu.matmul %87, %88, %cst_28 {dimension_numbers = #tpu.dot_dimension_numbers<[1], [0], [0], [1], [0, 0, 1, 1], [], []>} : vector<8x128xbf16>, vector<128x512xbf16>, vector<8x512xf32> -> vector<8x512xf32>
    %90 = arith.addf %86, %89 : vector<8x512xf32>
    %91 = vector.extract_strided_slice %90 {offsets = [0, 0], sizes = [8, 384], strides = [1, 1]} : vector<8x512xf32> to vector<8x384xf32>
    %cst_29 = arith.constant 5.000000e-01 : f32
    %92 = vector.broadcast %cst_29 : f32 to vector<8x384xf32>
    %93 = arith.mulf %92, %91 : vector<8x384xf32>
    %94 = math.tanh %93 : vector<8x384xf32>
    %cst_30 = arith.constant 1.000000e+00 : f32
    %95 = vector.broadcast %cst_30 : f32 to vector<8x384xf32>
    %96 = arith.addf %94, %95 : vector<8x384xf32>
    %cst_31 = arith.constant 5.000000e-01 : f32
    %97 = vector.broadcast %cst_31 : f32 to vector<8x384xf32>
    %98 = arith.mulf %97, %96 : vector<8x384xf32>
    %99 = vector.extract_strided_slice %98 {offsets = [0, 0], sizes = [8, 128], strides = [1, 1]} : vector<8x384xf32> to vector<8x128xf32>
    %100 = vector.extract_strided_slice %98 {offsets = [0, 128], sizes = [8, 128], strides = [1, 1]} : vector<8x384xf32> to vector<8x128xf32>
    %101 = vector.extract_strided_slice %98 {offsets = [0, 256], sizes = [8, 128], strides = [1, 1]} : vector<8x384xf32> to vector<8x128xf32>
    %102 = vector.extract_strided_slice %90 {offsets = [0, 384], sizes = [8, 128], strides = [1, 1]} : vector<8x512xf32> to vector<8x128xf32>
    %103 = math.tanh %102 : vector<8x128xf32>
    %104 = arith.mulf %100, %81 : vector<8x128xf32>
    %105 = arith.mulf %99, %103 : vector<8x128xf32>
    %106 = arith.addf %104, %105 : vector<8x128xf32>
    %107 = math.tanh %106 : vector<8x128xf32>
    %108 = arith.mulf %101, %107 : vector<8x128xf32>
    %109 = arith.truncf %108 : vector<8x128xf32> to vector<8x128xbf16>
    %110 = vector.extract_strided_slice %9 {offsets = [4, 0, 0], sizes = [1, 8, 512], strides = [1, 1, 1]} : vector<8x8x512xf32> to vector<1x8x512xf32>
    %111 = vector.shape_cast %110 : vector<1x8x512xf32> to vector<8x512xf32>
    %112 = arith.truncf %108 : vector<8x128xf32> to vector<8x128xbf16>
    %c0_32 = arith.constant 0 : index
    %c0_33 = arith.constant 0 : index
    %113 = vector.load %arg3[%c0_32, %c0_33] : memref<128x512xbf16, #tpu.memory_space<vmem>>, vector<128x512xbf16>
    %cst_34 = arith.constant dense<0.000000e+00> : vector<8x512xf32>
    %114 = tpu.matmul %112, %113, %cst_34 {dimension_numbers = #tpu.dot_dimension_numbers<[1], [0], [0], [1], [0, 0, 1, 1], [], []>} : vector<8x128xbf16>, vector<128x512xbf16>, vector<8x512xf32> -> vector<8x512xf32>
    %115 = arith.addf %111, %114 : vector<8x512xf32>
    %116 = vector.extract_strided_slice %115 {offsets = [0, 0], sizes = [8, 384], strides = [1, 1]} : vector<8x512xf32> to vector<8x384xf32>
    %cst_35 = arith.constant 5.000000e-01 : f32
    %117 = vector.broadcast %cst_35 : f32 to vector<8x384xf32>
    %118 = arith.mulf %117, %116 : vector<8x384xf32>
    %119 = math.tanh %118 : vector<8x384xf32>
    %cst_36 = arith.constant 1.000000e+00 : f32
    %120 = vector.broadcast %cst_36 : f32 to vector<8x384xf32>
    %121 = arith.addf %119, %120 : vector<8x384xf32>
    %cst_37 = arith.constant 5.000000e-01 : f32
    %122 = vector.broadcast %cst_37 : f32 to vector<8x384xf32>
    %123 = arith.mulf %122, %121 : vector<8x384xf32>
    %124 = vector.extract_strided_slice %123 {offsets = [0, 0], sizes = [8, 128], strides = [1, 1]} : vector<8x384xf32> to vector<8x128xf32>
    %125 = vector.extract_strided_slice %123 {offsets = [0, 128], sizes = [8, 128], strides = [1, 1]} : vector<8x384xf32> to vector<8x128xf32>
    %126 = vector.extract_strided_slice %123 {offsets = [0, 256], sizes = [8, 128], strides = [1, 1]} : vector<8x384xf32> to vector<8x128xf32>
    %127 = vector.extract_strided_slice %115 {offsets = [0, 384], sizes = [8, 128], strides = [1, 1]} : vector<8x512xf32> to vector<8x128xf32>
    %128 = math.tanh %127 : vector<8x128xf32>
    %129 = arith.mulf %125, %106 : vector<8x128xf32>
    %130 = arith.mulf %124, %128 : vector<8x128xf32>
    %131 = arith.addf %129, %130 : vector<8x128xf32>
    %132 = math.tanh %131 : vector<8x128xf32>
    %133 = arith.mulf %126, %132 : vector<8x128xf32>
    %134 = arith.truncf %133 : vector<8x128xf32> to vector<8x128xbf16>
    %135 = vector.extract_strided_slice %9 {offsets = [5, 0, 0], sizes = [1, 8, 512], strides = [1, 1, 1]} : vector<8x8x512xf32> to vector<1x8x512xf32>
    %136 = vector.shape_cast %135 : vector<1x8x512xf32> to vector<8x512xf32>
    %137 = arith.truncf %133 : vector<8x128xf32> to vector<8x128xbf16>
    %c0_38 = arith.constant 0 : index
    %c0_39 = arith.constant 0 : index
    %138 = vector.load %arg3[%c0_38, %c0_39] : memref<128x512xbf16, #tpu.memory_space<vmem>>, vector<128x512xbf16>
    %cst_40 = arith.constant dense<0.000000e+00> : vector<8x512xf32>
    %139 = tpu.matmul %137, %138, %cst_40 {dimension_numbers = #tpu.dot_dimension_numbers<[1], [0], [0], [1], [0, 0, 1, 1], [], []>} : vector<8x128xbf16>, vector<128x512xbf16>, vector<8x512xf32> -> vector<8x512xf32>
    %140 = arith.addf %136, %139 : vector<8x512xf32>
    %141 = vector.extract_strided_slice %140 {offsets = [0, 0], sizes = [8, 384], strides = [1, 1]} : vector<8x512xf32> to vector<8x384xf32>
    %cst_41 = arith.constant 5.000000e-01 : f32
    %142 = vector.broadcast %cst_41 : f32 to vector<8x384xf32>
    %143 = arith.mulf %142, %141 : vector<8x384xf32>
    %144 = math.tanh %143 : vector<8x384xf32>
    %cst_42 = arith.constant 1.000000e+00 : f32
    %145 = vector.broadcast %cst_42 : f32 to vector<8x384xf32>
    %146 = arith.addf %144, %145 : vector<8x384xf32>
    %cst_43 = arith.constant 5.000000e-01 : f32
    %147 = vector.broadcast %cst_43 : f32 to vector<8x384xf32>
    %148 = arith.mulf %147, %146 : vector<8x384xf32>
    %149 = vector.extract_strided_slice %148 {offsets = [0, 0], sizes = [8, 128], strides = [1, 1]} : vector<8x384xf32> to vector<8x128xf32>
    %150 = vector.extract_strided_slice %148 {offsets = [0, 128], sizes = [8, 128], strides = [1, 1]} : vector<8x384xf32> to vector<8x128xf32>
    %151 = vector.extract_strided_slice %148 {offsets = [0, 256], sizes = [8, 128], strides = [1, 1]} : vector<8x384xf32> to vector<8x128xf32>
    %152 = vector.extract_strided_slice %140 {offsets = [0, 384], sizes = [8, 128], strides = [1, 1]} : vector<8x512xf32> to vector<8x128xf32>
    %153 = math.tanh %152 : vector<8x128xf32>
    %154 = arith.mulf %150, %131 : vector<8x128xf32>
    %155 = arith.mulf %149, %153 : vector<8x128xf32>
    %156 = arith.addf %154, %155 : vector<8x128xf32>
    %157 = math.tanh %156 : vector<8x128xf32>
    %158 = arith.mulf %151, %157 : vector<8x128xf32>
    %159 = arith.truncf %158 : vector<8x128xf32> to vector<8x128xbf16>
    %160 = vector.extract_strided_slice %9 {offsets = [6, 0, 0], sizes = [1, 8, 512], strides = [1, 1, 1]} : vector<8x8x512xf32> to vector<1x8x512xf32>
    %161 = vector.shape_cast %160 : vector<1x8x512xf32> to vector<8x512xf32>
    %162 = arith.truncf %158 : vector<8x128xf32> to vector<8x128xbf16>
    %c0_44 = arith.constant 0 : index
    %c0_45 = arith.constant 0 : index
    %163 = vector.load %arg3[%c0_44, %c0_45] : memref<128x512xbf16, #tpu.memory_space<vmem>>, vector<128x512xbf16>
    %cst_46 = arith.constant dense<0.000000e+00> : vector<8x512xf32>
    %164 = tpu.matmul %162, %163, %cst_46 {dimension_numbers = #tpu.dot_dimension_numbers<[1], [0], [0], [1], [0, 0, 1, 1], [], []>} : vector<8x128xbf16>, vector<128x512xbf16>, vector<8x512xf32> -> vector<8x512xf32>
    %165 = arith.addf %161, %164 : vector<8x512xf32>
    %166 = vector.extract_strided_slice %165 {offsets = [0, 0], sizes = [8, 384], strides = [1, 1]} : vector<8x512xf32> to vector<8x384xf32>
    %cst_47 = arith.constant 5.000000e-01 : f32
    %167 = vector.broadcast %cst_47 : f32 to vector<8x384xf32>
    %168 = arith.mulf %167, %166 : vector<8x384xf32>
    %169 = math.tanh %168 : vector<8x384xf32>
    %cst_48 = arith.constant 1.000000e+00 : f32
    %170 = vector.broadcast %cst_48 : f32 to vector<8x384xf32>
    %171 = arith.addf %169, %170 : vector<8x384xf32>
    %cst_49 = arith.constant 5.000000e-01 : f32
    %172 = vector.broadcast %cst_49 : f32 to vector<8x384xf32>
    %173 = arith.mulf %172, %171 : vector<8x384xf32>
    %174 = vector.extract_strided_slice %173 {offsets = [0, 0], sizes = [8, 128], strides = [1, 1]} : vector<8x384xf32> to vector<8x128xf32>
    %175 = vector.extract_strided_slice %173 {offsets = [0, 128], sizes = [8, 128], strides = [1, 1]} : vector<8x384xf32> to vector<8x128xf32>
    %176 = vector.extract_strided_slice %173 {offsets = [0, 256], sizes = [8, 128], strides = [1, 1]} : vector<8x384xf32> to vector<8x128xf32>
    %177 = vector.extract_strided_slice %165 {offsets = [0, 384], sizes = [8, 128], strides = [1, 1]} : vector<8x512xf32> to vector<8x128xf32>
    %178 = math.tanh %177 : vector<8x128xf32>
    %179 = arith.mulf %175, %156 : vector<8x128xf32>
    %180 = arith.mulf %174, %178 : vector<8x128xf32>
    %181 = arith.addf %179, %180 : vector<8x128xf32>
    %182 = math.tanh %181 : vector<8x128xf32>
    %183 = arith.mulf %176, %182 : vector<8x128xf32>
    %184 = arith.truncf %183 : vector<8x128xf32> to vector<8x128xbf16>
    %185 = vector.extract_strided_slice %9 {offsets = [7, 0, 0], sizes = [1, 8, 512], strides = [1, 1, 1]} : vector<8x8x512xf32> to vector<1x8x512xf32>
    %186 = vector.shape_cast %185 : vector<1x8x512xf32> to vector<8x512xf32>
    %187 = arith.truncf %183 : vector<8x128xf32> to vector<8x128xbf16>
    %c0_50 = arith.constant 0 : index
    %c0_51 = arith.constant 0 : index
    %188 = vector.load %arg3[%c0_50, %c0_51] : memref<128x512xbf16, #tpu.memory_space<vmem>>, vector<128x512xbf16>
    %cst_52 = arith.constant dense<0.000000e+00> : vector<8x512xf32>
    %189 = tpu.matmul %187, %188, %cst_52 {dimension_numbers = #tpu.dot_dimension_numbers<[1], [0], [0], [1], [0, 0, 1, 1], [], []>} : vector<8x128xbf16>, vector<128x512xbf16>, vector<8x512xf32> -> vector<8x512xf32>
    %190 = arith.addf %186, %189 : vector<8x512xf32>
    %191 = vector.extract_strided_slice %190 {offsets = [0, 0], sizes = [8, 384], strides = [1, 1]} : vector<8x512xf32> to vector<8x384xf32>
    %cst_53 = arith.constant 5.000000e-01 : f32
    %192 = vector.broadcast %cst_53 : f32 to vector<8x384xf32>
    %193 = arith.mulf %192, %191 : vector<8x384xf32>
    %194 = math.tanh %193 : vector<8x384xf32>
    %cst_54 = arith.constant 1.000000e+00 : f32
    %195 = vector.broadcast %cst_54 : f32 to vector<8x384xf32>
    %196 = arith.addf %194, %195 : vector<8x384xf32>
    %cst_55 = arith.constant 5.000000e-01 : f32
    %197 = vector.broadcast %cst_55 : f32 to vector<8x384xf32>
    %198 = arith.mulf %197, %196 : vector<8x384xf32>
    %199 = vector.extract_strided_slice %198 {offsets = [0, 0], sizes = [8, 128], strides = [1, 1]} : vector<8x384xf32> to vector<8x128xf32>
    %200 = vector.extract_strided_slice %198 {offsets = [0, 128], sizes = [8, 128], strides = [1, 1]} : vector<8x384xf32> to vector<8x128xf32>
    %201 = vector.extract_strided_slice %198 {offsets = [0, 256], sizes = [8, 128], strides = [1, 1]} : vector<8x384xf32> to vector<8x128xf32>
    %202 = vector.extract_strided_slice %190 {offsets = [0, 384], sizes = [8, 128], strides = [1, 1]} : vector<8x512xf32> to vector<8x128xf32>
    %203 = math.tanh %202 : vector<8x128xf32>
    %204 = arith.mulf %200, %181 : vector<8x128xf32>
    %205 = arith.mulf %199, %203 : vector<8x128xf32>
    %206 = arith.addf %204, %205 : vector<8x128xf32>
    %207 = math.tanh %206 : vector<8x128xf32>
    %208 = arith.mulf %201, %207 : vector<8x128xf32>
    %209 = arith.truncf %208 : vector<8x128xf32> to vector<8x128xbf16>
    %210 = vector.shape_cast %34 : vector<8x128xbf16> to vector<1x8x128xbf16>
    %211 = vector.shape_cast %59 : vector<8x128xbf16> to vector<1x8x128xbf16>
    %212 = vector.shape_cast %84 : vector<8x128xbf16> to vector<1x8x128xbf16>
    %213 = vector.shape_cast %109 : vector<8x128xbf16> to vector<1x8x128xbf16>
    %214 = vector.shape_cast %134 : vector<8x128xbf16> to vector<1x8x128xbf16>
    %215 = vector.shape_cast %159 : vector<8x128xbf16> to vector<1x8x128xbf16>
    %216 = vector.shape_cast %184 : vector<8x128xbf16> to vector<1x8x128xbf16>
    %217 = vector.shape_cast %209 : vector<8x128xbf16> to vector<1x8x128xbf16>
    %218 = tpu.concatenate %210, %211, %212, %213, %214, %215, %216, %217 in 0 : vector<1x8x128xbf16>, vector<1x8x128xbf16>, vector<1x8x128xbf16>, vector<1x8x128xbf16>, vector<1x8x128xbf16>, vector<1x8x128xbf16>, vector<1x8x128xbf16>, vector<1x8x128xbf16> -> vector<8x8x128xbf16>
    %219 = vector.shape_cast %218 : vector<8x8x128xbf16> to vector<64x128xbf16>
    %c0_56 = arith.constant 0 : index
    %c0_57 = arith.constant 0 : index
    %220 = vector.load %arg5[%c0_56, %c0_57] : memref<128x512xbf16, #tpu.memory_space<vmem>>, vector<128x512xbf16>
    %cst_58 = arith.constant dense<0.000000e+00> : vector<64x512xf32>
    %221 = tpu.matmul %219, %220, %cst_58 {dimension_numbers = #tpu.dot_dimension_numbers<[1], [0], [0], [1], [0, 0, 1, 1], [], []>} : vector<64x128xbf16>, vector<128x512xbf16>, vector<64x512xf32> -> vector<64x512xf32>
    %c0_59 = arith.constant 0 : index
    %c0_60 = arith.constant 0 : index
    %222 = vector.load %arg7[%c0_59, %c0_60] : memref<1x512xf32, #tpu.memory_space<vmem>>, vector<1x512xf32>
    %223 = vector.broadcast %222 : vector<1x512xf32> to vector<64x512xf32>
    %224 = arith.addf %221, %223 : vector<64x512xf32>
    %cst_61 = arith.constant 0.000000e+00 : f32
    %225 = vector.broadcast %cst_61 : f32 to vector<8x128xf32>
    %cst_62 = arith.constant 0.000000e+00 : f32
    %226 = vector.broadcast %cst_62 : f32 to vector<8x128xf32>
    %227 = vector.shape_cast %224 : vector<64x512xf32> to vector<8x8x512xf32>
    %228 = vector.extract_strided_slice %227 {offsets = [0, 0, 0], sizes = [1, 8, 512], strides = [1, 1, 1]} : vector<8x8x512xf32> to vector<1x8x512xf32>
    %229 = vector.shape_cast %228 : vector<1x8x512xf32> to vector<8x512xf32>
    %230 = arith.truncf %225 : vector<8x128xf32> to vector<8x128xbf16>
    %c0_63 = arith.constant 0 : index
    %c0_64 = arith.constant 0 : index
    %231 = vector.load %arg6[%c0_63, %c0_64] : memref<128x512xbf16, #tpu.memory_space<vmem>>, vector<128x512xbf16>
    %cst_65 = arith.constant dense<0.000000e+00> : vector<8x512xf32>
    %232 = tpu.matmul %230, %231, %cst_65 {dimension_numbers = #tpu.dot_dimension_numbers<[1], [0], [0], [1], [0, 0, 1, 1], [], []>} : vector<8x128xbf16>, vector<128x512xbf16>, vector<8x512xf32> -> vector<8x512xf32>
    %233 = arith.addf %229, %232 : vector<8x512xf32>
    %234 = vector.extract_strided_slice %233 {offsets = [0, 0], sizes = [8, 384], strides = [1, 1]} : vector<8x512xf32> to vector<8x384xf32>
    %cst_66 = arith.constant 5.000000e-01 : f32
    %235 = vector.broadcast %cst_66 : f32 to vector<8x384xf32>
    %236 = arith.mulf %235, %234 : vector<8x384xf32>
    %237 = math.tanh %236 : vector<8x384xf32>
    %cst_67 = arith.constant 1.000000e+00 : f32
    %238 = vector.broadcast %cst_67 : f32 to vector<8x384xf32>
    %239 = arith.addf %237, %238 : vector<8x384xf32>
    %cst_68 = arith.constant 5.000000e-01 : f32
    %240 = vector.broadcast %cst_68 : f32 to vector<8x384xf32>
    %241 = arith.mulf %240, %239 : vector<8x384xf32>
    %242 = vector.extract_strided_slice %241 {offsets = [0, 0], sizes = [8, 128], strides = [1, 1]} : vector<8x384xf32> to vector<8x128xf32>
    %243 = vector.extract_strided_slice %241 {offsets = [0, 128], sizes = [8, 128], strides = [1, 1]} : vector<8x384xf32> to vector<8x128xf32>
    %244 = vector.extract_strided_slice %241 {offsets = [0, 256], sizes = [8, 128], strides = [1, 1]} : vector<8x384xf32> to vector<8x128xf32>
    %245 = vector.extract_strided_slice %233 {offsets = [0, 384], sizes = [8, 128], strides = [1, 1]} : vector<8x512xf32> to vector<8x128xf32>
    %246 = math.tanh %245 : vector<8x128xf32>
    %247 = arith.mulf %243, %226 : vector<8x128xf32>
    %248 = arith.mulf %242, %246 : vector<8x128xf32>
    %249 = arith.addf %247, %248 : vector<8x128xf32>
    %250 = math.tanh %249 : vector<8x128xf32>
    %251 = arith.mulf %244, %250 : vector<8x128xf32>
    %252 = vector.extract_strided_slice %227 {offsets = [1, 0, 0], sizes = [1, 8, 512], strides = [1, 1, 1]} : vector<8x8x512xf32> to vector<1x8x512xf32>
    %253 = vector.shape_cast %252 : vector<1x8x512xf32> to vector<8x512xf32>
    %254 = arith.truncf %251 : vector<8x128xf32> to vector<8x128xbf16>
    %c0_69 = arith.constant 0 : index
    %c0_70 = arith.constant 0 : index
    %255 = vector.load %arg6[%c0_69, %c0_70] : memref<128x512xbf16, #tpu.memory_space<vmem>>, vector<128x512xbf16>
    %cst_71 = arith.constant dense<0.000000e+00> : vector<8x512xf32>
    %256 = tpu.matmul %254, %255, %cst_71 {dimension_numbers = #tpu.dot_dimension_numbers<[1], [0], [0], [1], [0, 0, 1, 1], [], []>} : vector<8x128xbf16>, vector<128x512xbf16>, vector<8x512xf32> -> vector<8x512xf32>
    %257 = arith.addf %253, %256 : vector<8x512xf32>
    %258 = vector.extract_strided_slice %257 {offsets = [0, 0], sizes = [8, 384], strides = [1, 1]} : vector<8x512xf32> to vector<8x384xf32>
    %cst_72 = arith.constant 5.000000e-01 : f32
    %259 = vector.broadcast %cst_72 : f32 to vector<8x384xf32>
    %260 = arith.mulf %259, %258 : vector<8x384xf32>
    %261 = math.tanh %260 : vector<8x384xf32>
    %cst_73 = arith.constant 1.000000e+00 : f32
    %262 = vector.broadcast %cst_73 : f32 to vector<8x384xf32>
    %263 = arith.addf %261, %262 : vector<8x384xf32>
    %cst_74 = arith.constant 5.000000e-01 : f32
    %264 = vector.broadcast %cst_74 : f32 to vector<8x384xf32>
    %265 = arith.mulf %264, %263 : vector<8x384xf32>
    %266 = vector.extract_strided_slice %265 {offsets = [0, 0], sizes = [8, 128], strides = [1, 1]} : vector<8x384xf32> to vector<8x128xf32>
    %267 = vector.extract_strided_slice %265 {offsets = [0, 128], sizes = [8, 128], strides = [1, 1]} : vector<8x384xf32> to vector<8x128xf32>
    %268 = vector.extract_strided_slice %265 {offsets = [0, 256], sizes = [8, 128], strides = [1, 1]} : vector<8x384xf32> to vector<8x128xf32>
    %269 = vector.extract_strided_slice %257 {offsets = [0, 384], sizes = [8, 128], strides = [1, 1]} : vector<8x512xf32> to vector<8x128xf32>
    %270 = math.tanh %269 : vector<8x128xf32>
    %271 = arith.mulf %267, %249 : vector<8x128xf32>
    %272 = arith.mulf %266, %270 : vector<8x128xf32>
    %273 = arith.addf %271, %272 : vector<8x128xf32>
    %274 = math.tanh %273 : vector<8x128xf32>
    %275 = arith.mulf %268, %274 : vector<8x128xf32>
    %276 = vector.extract_strided_slice %227 {offsets = [2, 0, 0], sizes = [1, 8, 512], strides = [1, 1, 1]} : vector<8x8x512xf32> to vector<1x8x512xf32>
    %277 = vector.shape_cast %276 : vector<1x8x512xf32> to vector<8x512xf32>
    %278 = arith.truncf %275 : vector<8x128xf32> to vector<8x128xbf16>
    %c0_75 = arith.constant 0 : index
    %c0_76 = arith.constant 0 : index
    %279 = vector.load %arg6[%c0_75, %c0_76] : memref<128x512xbf16, #tpu.memory_space<vmem>>, vector<128x512xbf16>
    %cst_77 = arith.constant dense<0.000000e+00> : vector<8x512xf32>
    %280 = tpu.matmul %278, %279, %cst_77 {dimension_numbers = #tpu.dot_dimension_numbers<[1], [0], [0], [1], [0, 0, 1, 1], [], []>} : vector<8x128xbf16>, vector<128x512xbf16>, vector<8x512xf32> -> vector<8x512xf32>
    %281 = arith.addf %277, %280 : vector<8x512xf32>
    %282 = vector.extract_strided_slice %281 {offsets = [0, 0], sizes = [8, 384], strides = [1, 1]} : vector<8x512xf32> to vector<8x384xf32>
    %cst_78 = arith.constant 5.000000e-01 : f32
    %283 = vector.broadcast %cst_78 : f32 to vector<8x384xf32>
    %284 = arith.mulf %283, %282 : vector<8x384xf32>
    %285 = math.tanh %284 : vector<8x384xf32>
    %cst_79 = arith.constant 1.000000e+00 : f32
    %286 = vector.broadcast %cst_79 : f32 to vector<8x384xf32>
    %287 = arith.addf %285, %286 : vector<8x384xf32>
    %cst_80 = arith.constant 5.000000e-01 : f32
    %288 = vector.broadcast %cst_80 : f32 to vector<8x384xf32>
    %289 = arith.mulf %288, %287 : vector<8x384xf32>
    %290 = vector.extract_strided_slice %289 {offsets = [0, 0], sizes = [8, 128], strides = [1, 1]} : vector<8x384xf32> to vector<8x128xf32>
    %291 = vector.extract_strided_slice %289 {offsets = [0, 128], sizes = [8, 128], strides = [1, 1]} : vector<8x384xf32> to vector<8x128xf32>
    %292 = vector.extract_strided_slice %289 {offsets = [0, 256], sizes = [8, 128], strides = [1, 1]} : vector<8x384xf32> to vector<8x128xf32>
    %293 = vector.extract_strided_slice %281 {offsets = [0, 384], sizes = [8, 128], strides = [1, 1]} : vector<8x512xf32> to vector<8x128xf32>
    %294 = math.tanh %293 : vector<8x128xf32>
    %295 = arith.mulf %291, %273 : vector<8x128xf32>
    %296 = arith.mulf %290, %294 : vector<8x128xf32>
    %297 = arith.addf %295, %296 : vector<8x128xf32>
    %298 = math.tanh %297 : vector<8x128xf32>
    %299 = arith.mulf %292, %298 : vector<8x128xf32>
    %300 = vector.extract_strided_slice %227 {offsets = [3, 0, 0], sizes = [1, 8, 512], strides = [1, 1, 1]} : vector<8x8x512xf32> to vector<1x8x512xf32>
    %301 = vector.shape_cast %300 : vector<1x8x512xf32> to vector<8x512xf32>
    %302 = arith.truncf %299 : vector<8x128xf32> to vector<8x128xbf16>
    %c0_81 = arith.constant 0 : index
    %c0_82 = arith.constant 0 : index
    %303 = vector.load %arg6[%c0_81, %c0_82] : memref<128x512xbf16, #tpu.memory_space<vmem>>, vector<128x512xbf16>
    %cst_83 = arith.constant dense<0.000000e+00> : vector<8x512xf32>
    %304 = tpu.matmul %302, %303, %cst_83 {dimension_numbers = #tpu.dot_dimension_numbers<[1], [0], [0], [1], [0, 0, 1, 1], [], []>} : vector<8x128xbf16>, vector<128x512xbf16>, vector<8x512xf32> -> vector<8x512xf32>
    %305 = arith.addf %301, %304 : vector<8x512xf32>
    %306 = vector.extract_strided_slice %305 {offsets = [0, 0], sizes = [8, 384], strides = [1, 1]} : vector<8x512xf32> to vector<8x384xf32>
    %cst_84 = arith.constant 5.000000e-01 : f32
    %307 = vector.broadcast %cst_84 : f32 to vector<8x384xf32>
    %308 = arith.mulf %307, %306 : vector<8x384xf32>
    %309 = math.tanh %308 : vector<8x384xf32>
    %cst_85 = arith.constant 1.000000e+00 : f32
    %310 = vector.broadcast %cst_85 : f32 to vector<8x384xf32>
    %311 = arith.addf %309, %310 : vector<8x384xf32>
    %cst_86 = arith.constant 5.000000e-01 : f32
    %312 = vector.broadcast %cst_86 : f32 to vector<8x384xf32>
    %313 = arith.mulf %312, %311 : vector<8x384xf32>
    %314 = vector.extract_strided_slice %313 {offsets = [0, 0], sizes = [8, 128], strides = [1, 1]} : vector<8x384xf32> to vector<8x128xf32>
    %315 = vector.extract_strided_slice %313 {offsets = [0, 128], sizes = [8, 128], strides = [1, 1]} : vector<8x384xf32> to vector<8x128xf32>
    %316 = vector.extract_strided_slice %313 {offsets = [0, 256], sizes = [8, 128], strides = [1, 1]} : vector<8x384xf32> to vector<8x128xf32>
    %317 = vector.extract_strided_slice %305 {offsets = [0, 384], sizes = [8, 128], strides = [1, 1]} : vector<8x512xf32> to vector<8x128xf32>
    %318 = math.tanh %317 : vector<8x128xf32>
    %319 = arith.mulf %315, %297 : vector<8x128xf32>
    %320 = arith.mulf %314, %318 : vector<8x128xf32>
    %321 = arith.addf %319, %320 : vector<8x128xf32>
    %322 = math.tanh %321 : vector<8x128xf32>
    %323 = arith.mulf %316, %322 : vector<8x128xf32>
    %324 = vector.extract_strided_slice %227 {offsets = [4, 0, 0], sizes = [1, 8, 512], strides = [1, 1, 1]} : vector<8x8x512xf32> to vector<1x8x512xf32>
    %325 = vector.shape_cast %324 : vector<1x8x512xf32> to vector<8x512xf32>
    %326 = arith.truncf %323 : vector<8x128xf32> to vector<8x128xbf16>
    %c0_87 = arith.constant 0 : index
    %c0_88 = arith.constant 0 : index
    %327 = vector.load %arg6[%c0_87, %c0_88] : memref<128x512xbf16, #tpu.memory_space<vmem>>, vector<128x512xbf16>
    %cst_89 = arith.constant dense<0.000000e+00> : vector<8x512xf32>
    %328 = tpu.matmul %326, %327, %cst_89 {dimension_numbers = #tpu.dot_dimension_numbers<[1], [0], [0], [1], [0, 0, 1, 1], [], []>} : vector<8x128xbf16>, vector<128x512xbf16>, vector<8x512xf32> -> vector<8x512xf32>
    %329 = arith.addf %325, %328 : vector<8x512xf32>
    %330 = vector.extract_strided_slice %329 {offsets = [0, 0], sizes = [8, 384], strides = [1, 1]} : vector<8x512xf32> to vector<8x384xf32>
    %cst_90 = arith.constant 5.000000e-01 : f32
    %331 = vector.broadcast %cst_90 : f32 to vector<8x384xf32>
    %332 = arith.mulf %331, %330 : vector<8x384xf32>
    %333 = math.tanh %332 : vector<8x384xf32>
    %cst_91 = arith.constant 1.000000e+00 : f32
    %334 = vector.broadcast %cst_91 : f32 to vector<8x384xf32>
    %335 = arith.addf %333, %334 : vector<8x384xf32>
    %cst_92 = arith.constant 5.000000e-01 : f32
    %336 = vector.broadcast %cst_92 : f32 to vector<8x384xf32>
    %337 = arith.mulf %336, %335 : vector<8x384xf32>
    %338 = vector.extract_strided_slice %337 {offsets = [0, 0], sizes = [8, 128], strides = [1, 1]} : vector<8x384xf32> to vector<8x128xf32>
    %339 = vector.extract_strided_slice %337 {offsets = [0, 128], sizes = [8, 128], strides = [1, 1]} : vector<8x384xf32> to vector<8x128xf32>
    %340 = vector.extract_strided_slice %337 {offsets = [0, 256], sizes = [8, 128], strides = [1, 1]} : vector<8x384xf32> to vector<8x128xf32>
    %341 = vector.extract_strided_slice %329 {offsets = [0, 384], sizes = [8, 128], strides = [1, 1]} : vector<8x512xf32> to vector<8x128xf32>
    %342 = math.tanh %341 : vector<8x128xf32>
    %343 = arith.mulf %339, %321 : vector<8x128xf32>
    %344 = arith.mulf %338, %342 : vector<8x128xf32>
    %345 = arith.addf %343, %344 : vector<8x128xf32>
    %346 = math.tanh %345 : vector<8x128xf32>
    %347 = arith.mulf %340, %346 : vector<8x128xf32>
    %348 = vector.extract_strided_slice %227 {offsets = [5, 0, 0], sizes = [1, 8, 512], strides = [1, 1, 1]} : vector<8x8x512xf32> to vector<1x8x512xf32>
    %349 = vector.shape_cast %348 : vector<1x8x512xf32> to vector<8x512xf32>
    %350 = arith.truncf %347 : vector<8x128xf32> to vector<8x128xbf16>
    %c0_93 = arith.constant 0 : index
    %c0_94 = arith.constant 0 : index
    %351 = vector.load %arg6[%c0_93, %c0_94] : memref<128x512xbf16, #tpu.memory_space<vmem>>, vector<128x512xbf16>
    %cst_95 = arith.constant dense<0.000000e+00> : vector<8x512xf32>
    %352 = tpu.matmul %350, %351, %cst_95 {dimension_numbers = #tpu.dot_dimension_numbers<[1], [0], [0], [1], [0, 0, 1, 1], [], []>} : vector<8x128xbf16>, vector<128x512xbf16>, vector<8x512xf32> -> vector<8x512xf32>
    %353 = arith.addf %349, %352 : vector<8x512xf32>
    %354 = vector.extract_strided_slice %353 {offsets = [0, 0], sizes = [8, 384], strides = [1, 1]} : vector<8x512xf32> to vector<8x384xf32>
    %cst_96 = arith.constant 5.000000e-01 : f32
    %355 = vector.broadcast %cst_96 : f32 to vector<8x384xf32>
    %356 = arith.mulf %355, %354 : vector<8x384xf32>
    %357 = math.tanh %356 : vector<8x384xf32>
    %cst_97 = arith.constant 1.000000e+00 : f32
    %358 = vector.broadcast %cst_97 : f32 to vector<8x384xf32>
    %359 = arith.addf %357, %358 : vector<8x384xf32>
    %cst_98 = arith.constant 5.000000e-01 : f32
    %360 = vector.broadcast %cst_98 : f32 to vector<8x384xf32>
    %361 = arith.mulf %360, %359 : vector<8x384xf32>
    %362 = vector.extract_strided_slice %361 {offsets = [0, 0], sizes = [8, 128], strides = [1, 1]} : vector<8x384xf32> to vector<8x128xf32>
    %363 = vector.extract_strided_slice %361 {offsets = [0, 128], sizes = [8, 128], strides = [1, 1]} : vector<8x384xf32> to vector<8x128xf32>
    %364 = vector.extract_strided_slice %361 {offsets = [0, 256], sizes = [8, 128], strides = [1, 1]} : vector<8x384xf32> to vector<8x128xf32>
    %365 = vector.extract_strided_slice %353 {offsets = [0, 384], sizes = [8, 128], strides = [1, 1]} : vector<8x512xf32> to vector<8x128xf32>
    %366 = math.tanh %365 : vector<8x128xf32>
    %367 = arith.mulf %363, %345 : vector<8x128xf32>
    %368 = arith.mulf %362, %366 : vector<8x128xf32>
    %369 = arith.addf %367, %368 : vector<8x128xf32>
    %370 = math.tanh %369 : vector<8x128xf32>
    %371 = arith.mulf %364, %370 : vector<8x128xf32>
    %372 = vector.extract_strided_slice %227 {offsets = [6, 0, 0], sizes = [1, 8, 512], strides = [1, 1, 1]} : vector<8x8x512xf32> to vector<1x8x512xf32>
    %373 = vector.shape_cast %372 : vector<1x8x512xf32> to vector<8x512xf32>
    %374 = arith.truncf %371 : vector<8x128xf32> to vector<8x128xbf16>
    %c0_99 = arith.constant 0 : index
    %c0_100 = arith.constant 0 : index
    %375 = vector.load %arg6[%c0_99, %c0_100] : memref<128x512xbf16, #tpu.memory_space<vmem>>, vector<128x512xbf16>
    %cst_101 = arith.constant dense<0.000000e+00> : vector<8x512xf32>
    %376 = tpu.matmul %374, %375, %cst_101 {dimension_numbers = #tpu.dot_dimension_numbers<[1], [0], [0], [1], [0, 0, 1, 1], [], []>} : vector<8x128xbf16>, vector<128x512xbf16>, vector<8x512xf32> -> vector<8x512xf32>
    %377 = arith.addf %373, %376 : vector<8x512xf32>
    %378 = vector.extract_strided_slice %377 {offsets = [0, 0], sizes = [8, 384], strides = [1, 1]} : vector<8x512xf32> to vector<8x384xf32>
    %cst_102 = arith.constant 5.000000e-01 : f32
    %379 = vector.broadcast %cst_102 : f32 to vector<8x384xf32>
    %380 = arith.mulf %379, %378 : vector<8x384xf32>
    %381 = math.tanh %380 : vector<8x384xf32>
    %cst_103 = arith.constant 1.000000e+00 : f32
    %382 = vector.broadcast %cst_103 : f32 to vector<8x384xf32>
    %383 = arith.addf %381, %382 : vector<8x384xf32>
    %cst_104 = arith.constant 5.000000e-01 : f32
    %384 = vector.broadcast %cst_104 : f32 to vector<8x384xf32>
    %385 = arith.mulf %384, %383 : vector<8x384xf32>
    %386 = vector.extract_strided_slice %385 {offsets = [0, 0], sizes = [8, 128], strides = [1, 1]} : vector<8x384xf32> to vector<8x128xf32>
    %387 = vector.extract_strided_slice %385 {offsets = [0, 128], sizes = [8, 128], strides = [1, 1]} : vector<8x384xf32> to vector<8x128xf32>
    %388 = vector.extract_strided_slice %385 {offsets = [0, 256], sizes = [8, 128], strides = [1, 1]} : vector<8x384xf32> to vector<8x128xf32>
    %389 = vector.extract_strided_slice %377 {offsets = [0, 384], sizes = [8, 128], strides = [1, 1]} : vector<8x512xf32> to vector<8x128xf32>
    %390 = math.tanh %389 : vector<8x128xf32>
    %391 = arith.mulf %387, %369 : vector<8x128xf32>
    %392 = arith.mulf %386, %390 : vector<8x128xf32>
    %393 = arith.addf %391, %392 : vector<8x128xf32>
    %394 = math.tanh %393 : vector<8x128xf32>
    %395 = arith.mulf %388, %394 : vector<8x128xf32>
    %396 = vector.extract_strided_slice %227 {offsets = [7, 0, 0], sizes = [1, 8, 512], strides = [1, 1, 1]} : vector<8x8x512xf32> to vector<1x8x512xf32>
    %397 = vector.shape_cast %396 : vector<1x8x512xf32> to vector<8x512xf32>
    %398 = arith.truncf %395 : vector<8x128xf32> to vector<8x128xbf16>
    %c0_105 = arith.constant 0 : index
    %c0_106 = arith.constant 0 : index
    %399 = vector.load %arg6[%c0_105, %c0_106] : memref<128x512xbf16, #tpu.memory_space<vmem>>, vector<128x512xbf16>
    %cst_107 = arith.constant dense<0.000000e+00> : vector<8x512xf32>
    %400 = tpu.matmul %398, %399, %cst_107 {dimension_numbers = #tpu.dot_dimension_numbers<[1], [0], [0], [1], [0, 0, 1, 1], [], []>} : vector<8x128xbf16>, vector<128x512xbf16>, vector<8x512xf32> -> vector<8x512xf32>
    %401 = arith.addf %397, %400 : vector<8x512xf32>
    %402 = vector.extract_strided_slice %401 {offsets = [0, 0], sizes = [8, 384], strides = [1, 1]} : vector<8x512xf32> to vector<8x384xf32>
    %cst_108 = arith.constant 5.000000e-01 : f32
    %403 = vector.broadcast %cst_108 : f32 to vector<8x384xf32>
    %404 = arith.mulf %403, %402 : vector<8x384xf32>
    %405 = math.tanh %404 : vector<8x384xf32>
    %cst_109 = arith.constant 1.000000e+00 : f32
    %406 = vector.broadcast %cst_109 : f32 to vector<8x384xf32>
    %407 = arith.addf %405, %406 : vector<8x384xf32>
    %cst_110 = arith.constant 5.000000e-01 : f32
    %408 = vector.broadcast %cst_110 : f32 to vector<8x384xf32>
    %409 = arith.mulf %408, %407 : vector<8x384xf32>
    %410 = vector.extract_strided_slice %409 {offsets = [0, 0], sizes = [8, 128], strides = [1, 1]} : vector<8x384xf32> to vector<8x128xf32>
    %411 = vector.extract_strided_slice %409 {offsets = [0, 128], sizes = [8, 128], strides = [1, 1]} : vector<8x384xf32> to vector<8x128xf32>
    %412 = vector.extract_strided_slice %409 {offsets = [0, 256], sizes = [8, 128], strides = [1, 1]} : vector<8x384xf32> to vector<8x128xf32>
    %413 = vector.extract_strided_slice %401 {offsets = [0, 384], sizes = [8, 128], strides = [1, 1]} : vector<8x512xf32> to vector<8x128xf32>
    %414 = math.tanh %413 : vector<8x128xf32>
    %415 = arith.mulf %411, %393 : vector<8x128xf32>
    %416 = arith.mulf %410, %414 : vector<8x128xf32>
    %417 = arith.addf %415, %416 : vector<8x128xf32>
    %418 = math.tanh %417 : vector<8x128xf32>
    %419 = arith.mulf %412, %418 : vector<8x128xf32>
    %420 = arith.truncf %419 : vector<8x128xf32> to vector<8x128xbf16>
    %c0_111 = arith.constant 0 : index
    %c0_112 = arith.constant 0 : index
    %421 = vector.load %arg8[%c0_111, %c0_112] : memref<128x128xbf16, #tpu.memory_space<vmem>>, vector<128x128xbf16>
    %cst_113 = arith.constant dense<0.000000e+00> : vector<8x128xf32>
    %422 = tpu.matmul %420, %421, %cst_113 {dimension_numbers = #tpu.dot_dimension_numbers<[1], [0], [0], [1], [0, 0, 1, 1], [], []>} : vector<8x128xbf16>, vector<128x128xbf16>, vector<8x128xf32> -> vector<8x128xf32>
    %c0_114 = arith.constant 0 : index
    %c0_115 = arith.constant 0 : index
    %423 = vector.load %arg9[%c0_114, %c0_115] : memref<1x128xf32, #tpu.memory_space<vmem>>, vector<1x128xf32>
    %424 = vector.broadcast %423 : vector<1x128xf32> to vector<8x128xf32>
    %425 = arith.addf %422, %424 : vector<8x128xf32>
    %c0_116 = arith.constant 0 : index
    %c0_117 = arith.constant 0 : index
    %426 = vector.load %arg10[%c0_116, %c0_117] : memref<8x128xf32, #tpu.memory_space<vmem>>, vector<8x128xf32>
    tpu.vector_store %arg10[%c0_116, %c0_117], %425 {strides = array<i32>} : memref<8x128xf32, #tpu.memory_space<vmem>>, vector<8x128xf32>,
    return
  }
  func.func @transform_0(%arg0: i32) -> (i32, i32, i32) {
    %c0_i32 = arith.constant 0 : i32
    %c0_i32_0 = arith.constant 0 : i32
    %c0_i32_1 = arith.constant 0 : i32
    return %c0_i32, %arg0, %c0_i32_0 : i32, i32, i32
  }
  func.func @transform_1(%arg0: i32) -> (i32, i32) {
    %c0_i32 = arith.constant 0 : i32
    %c0_i32_0 = arith.constant 0 : i32
    %c0_i32_1 = arith.constant 0 : i32
    return %c0_i32, %c0_i32_0 : i32, i32
  }
  func.func @transform_2(%arg0: i32) -> (i32, i32) {
    %c0_i32 = arith.constant 0 : i32
    %c0_i32_0 = arith.constant 0 : i32
    %c0_i32_1 = arith.constant 0 : i32
    return %c0_i32, %c0_i32_0 : i32, i32
  }
  func.func @transform_3(%arg0: i32) -> (i32, i32) {
    %c0_i32 = arith.constant 0 : i32
    %c0_i32_0 = arith.constant 0 : i32
    %c0_i32_1 = arith.constant 0 : i32
    return %c0_i32, %c0_i32_0 : i32, i32
  }
  func.func @transform_4(%arg0: i32) -> (i32, i32) {
    %c0_i32 = arith.constant 0 : i32
    %c0_i32_0 = arith.constant 0 : i32
    %c0_i32_1 = arith.constant 0 : i32
    return %c0_i32, %c0_i32_0 : i32, i32
  }
  func.func @transform_5(%arg0: i32) -> (i32, i32) {
    %c0_i32 = arith.constant 0 : i32
    %c0_i32_0 = arith.constant 0 : i32
    %c0_i32_1 = arith.constant 0 : i32
    return %c0_i32, %c0_i32_0 : i32, i32
  }
  func.func @transform_6(%arg0: i32) -> (i32, i32) {
    %c0_i32 = arith.constant 0 : i32
    %c0_i32_0 = arith.constant 0 : i32
    %c0_i32_1 = arith.constant 0 : i32
    return %c0_i32, %c0_i32_0 : i32, i32
  }
  func.func @transform_7(%arg0: i32) -> (i32, i32) {
    %c0_i32 = arith.constant 0 : i32
    %c0_i32_0 = arith.constant 0 : i32
    %c0_i32_1 = arith.constant 0 : i32
    return %c0_i32, %c0_i32_0 : i32, i32
  }
  func.func @transform_8(%arg0: i32) -> (i32, i32) {
    %c0_i32 = arith.constant 0 : i32
    %c0_i32_0 = arith.constant 0 : i32
    %c0_i32_1 = arith.constant 0 : i32
    return %c0_i32, %c0_i32_0 : i32, i32
  }
  func.func @transform_9(%arg0: i32) -> (i32, i32) {
    %c0_i32 = arith.constant 0 : i32
    %c0_i32_0 = arith.constant 0 : i32
    return %arg0, %c0_i32 : i32, i32
  }
}

</mosaic_0001>

<bundles_post_ra>
// kernel: rnn_forward.1
= control target key start
LH: loop header
LB: loop body
LE: loop exit
PB: predicated region body
PF: predicated region fallthrough
CT: control target
= control target key end

     0   :  { %v5078_v1 = vmov 0   ;;  %vm107_vm0 = vcmask 130048   ;;  %v47_v41 = vlaneseq  ;;  %vm3379_vm1 = vmmov 0   ;;  %s5064_s1 = inlined_call_operand.vmem [shape: bf16[16,512], index: 1, kind: input, shape index: {}]   ;;  %s5065_s0 = inlined_call_operand.vmem [shape: bf16[8,8,16], index: 0, kind: input, shape index: {}]   ;;  %s5066_s2 = inlined_call_operand.vmem [shape: bf16[128,512], index: 2, kind: input, shape index: {}]   ;;  %s5067_s3 = inlined_call_operand.vmem [shape: f32[1,512], index: 3, kind: input, shape index: {}]   ;;  %s5068_s4 = inlined_call_operand.vmem [shape: bf16[128,512], index: 4, kind: input, shape index: {}]   ;;  %s5069_s5 = inlined_call_operand.vmem [shape: bf16[128,512], index: 5, kind: input, shape index: {}]   ;;  %s5070_s6 = inlined_call_operand.vmem [shape: f32[1,512], index: 6, kind: input, shape index: {}]   ;;  %s5071_s7 = inlined_call_operand.vmem [shape: bf16[128,128], index: 7, kind: input, shape index: {}]   ;;  %s5072_s8 = inlined_call_operand.vmem [shape: f32[1,128], index: 8, kind: input, shape index: {}]   ;;  %s5073_s9 = inlined_call_operand.vmem [shape: f32[8,128], index: 9, kind: output, shape index: {}]  }
   0x1   :  { %v2991_v0 = vld [vmem:[%s5064_s1 + $0x4] ss:$16 sps:$4 sm:$0xff]   ;;  %152 = vmatprep.mubr.bf16.mxu0 %v5078_v1  ;;  %225 = vmatprep.mubr.bf16.mxu1 %v5078_v1  ;;  %v2993_v2 = vld [vmem:[%s5064_s1 + $0xc] ss:$16 sps:$4 sm:$0xff]   ;;  %v2995_v3 = vld [vmem:[%s5064_s1] ss:$16 sps:$4 sm:$0xff]  }
   0x2   :  { %120 = vmatprep.subr.bf16.mxu0 %v2991_v0  ;;  %v2996_v4 = vld [vmem:[%s5064_s1 + $0x8] ss:$16 sps:$4 sm:$0xff]   ;;  %193 = vmatprep.subr.bf16.mxu1 %v2993_v2  ;;  %v2997_v5 = vld [vmem:[%s5065_s0] sm:$0xff]   ;;  %v3455_v7 = vld [vmem:[%s5066_s2 + $0xc] ss:$16 sps:$4 sm:$0xff]   ;;  %v3702_v42 = vshrl.u32 %v47_v41, 7 }
   0x3   :  { %121 = vmatpush1.bf16.msra.mxu0 %v2995_v3  ;;  %194 = vmatpush1.bf16.msra.mxu1 %v2996_v4  ;;  %v3450_v6 = vld [vmem:[%s5066_s2 + $0x4] ss:$16 sps:$4 sm:$0xff]   ;;  %v3460_v8 = vld [vmem:[%s5066_s2] ss:$16 sps:$4 sm:$0xff]   ;;  %v3466_v9 = vld [vmem:[%s5066_s2 + $0x8] ss:$16 sps:$4 sm:$0xff]  }
   0x4   :  { %458 = vmatprep.subr.bf16.mxu0 %v3450_v6  ;;  %v3473_v10 = vld [vmem:[%s5066_s2 + $0x24] ss:$16 sps:$4 sm:$0xff]   ;;  %499 = vmatprep.subr.bf16.mxu1 %v3455_v7  ;;  %v3480_v11 = vld [vmem:[%s5066_s2 + $0x2c] ss:$16 sps:$4 sm:$0xff]   ;;  %v3485_v12 = vld [vmem:[%s5066_s2 + $0x20] ss:$16 sps:$4 sm:$0xff]  }
   0x5   :  { %v3490_v13 = vld [vmem:[%s5066_s2 + $0x28] ss:$16 sps:$4 sm:$0xff]   ;;  %v3502_v15 = vld [vmem:[%s5066_s2 + $0x44] ss:$16 sps:$4 sm:$0xff]   ;;  %v3508_v16 = vld [vmem:[%s5066_s2 + $0x4c] ss:$16 sps:$4 sm:$0xff]  }
   0x6   :  { %2838 = vmatmul.mubr.msk.bf16.vlgmr.msra.gmra.mrb[0].mxu0 %vm107_vm0, %v2997_v5  ;;  %2842 = vmatmul.mubr.msk.bf16.vlgmr.msra.gmra.mrb[0].mxu1 %vm107_vm0, %v2997_v5  ;;  %v3010_v14 = vld [vmem:[%s5065_s0 + $0x8] sm:$0xff]   ;;  %v3514_v17 = vld [vmem:[%s5066_s2 + $0x40] ss:$16 sps:$4 sm:$0xff]   ;;  %v3526_v19 = vld [vmem:[%s5066_s2 + $0x64] ss:$16 sps:$4 sm:$0xff]   ;;  %5082 = vst [vmem:[#allocation2_spill] sm:$0xff] %v3702_v42 }
   0x7   :  { %459 = vmatpush1.bf16.msra.mxu0 %v3460_v8  ;;  %500 = vmatpush1.bf16.msra.mxu1 %v3466_v9  ;;  %v3519_v18 = vld [vmem:[%s5066_s2 + $0x48] ss:$16 sps:$4 sm:$0xff]   ;;  %v3532_v20 = vld [vmem:[%s5066_s2 + $0x6c] ss:$16 sps:$4 sm:$0xff]   ;;  %v3539_v21 = vld [vmem:[%s5066_s2 + $0x60] ss:$16 sps:$4 sm:$0xff]  }
   0x8   :  { %460 = vmatprep.subr.bf16.mxu0 %v3473_v10  ;;  %501 = vmatprep.subr.bf16.mxu1 %v3480_v11  ;;  %v3545_v22 = vld [vmem:[%s5066_s2 + $0x68] ss:$16 sps:$4 sm:$0xff]   ;;  %v3553_v23 = vld [vmem:[%s5066_s2 + $0x84] ss:$16 sps:$4 sm:$0xff]   ;;  %v3560_v24 = vld [vmem:[%s5066_s2 + $0x8c] ss:$16 sps:$4 sm:$0xff]  }
   0x9   :  { %162 = vmatprep.mubr.bf16.mxu0 %v5078_v1  ;;  %235 = vmatprep.mubr.bf16.mxu1 %v5078_v1  ;;  %v3023_v25 = vld [vmem:[%s5065_s0 + $0x10] sm:$0xff]   ;;  %v3576_v27 = vld [vmem:[%s5066_s2 + $0x88] ss:$16 sps:$4 sm:$0xff]   ;;  %v3587_v29 = vld [vmem:[%s5066_s2 + $0xac] ss:$16 sps:$4 sm:$0xff]   ;;  %v5076_v43 = vsub.s32 2, %v3702_v42 }
   0xa   :  { %v3569_v26 = vld [vmem:[%s5066_s2 + $0x80] ss:$16 sps:$4 sm:$0xff]   ;;  %v3581_v28 = vld [vmem:[%s5066_s2 + $0xa4] ss:$16 sps:$4 sm:$0xff]   ;;  %v3600_v31 = vld [vmem:[%s5066_s2 + $0xa8] ss:$16 sps:$4 sm:$0xff]  }
   0xb   :  { %461 = vmatpush1.bf16.msra.mxu0 %v3485_v12  ;;  %502 = vmatpush1.bf16.msra.mxu1 %v3490_v13  ;;  %v3595_v30 = vld [vmem:[%s5066_s2 + $0xa0] ss:$16 sps:$4 sm:$0xff]   ;;  %v3608_v32 = vld [vmem:[%s5066_s2 + $0xc4] ss:$16 sps:$4 sm:$0xff]   ;;  %v3615_v33 = vld [vmem:[%s5066_s2 + $0xcc] ss:$16 sps:$4 sm:$0xff]  }
   0xc   :  { %462 = vmatprep.subr.bf16.mxu0 %v3502_v15  ;;  %503 = vmatprep.subr.bf16.mxu1 %v3508_v16  ;;  %v3036_v34 = vld [vmem:[%s5065_s0 + $0x18] sm:$0xff]   ;;  %v3624_v35 = vld [vmem:[%s5066_s2 + $0xc0] ss:$16 sps:$4 sm:$0xff]   ;;  %v3636_v37 = vld [vmem:[%s5066_s2 + $0xe4] ss:$16 sps:$4 sm:$0xff]   ;;  %v5074_v44 = vsub.s32 3, %v3702_v42 }
   0xd   :  { %v3631_v36 = vld [vmem:[%s5066_s2 + $0xc8] ss:$16 sps:$4 sm:$0xff]   ;;  %v3642_v38 = vld [vmem:[%s5066_s2 + $0xec] ss:$16 sps:$4 sm:$0xff]   ;;  %v3650_v39 = vld [vmem:[%s5066_s2 + $0xe0] ss:$16 sps:$4 sm:$0xff]  }
   0xe   :  { %2839 = vmatmul.mubr.msk.bf16.gmra.mrb[4].mxu0 %vm107_vm0, %v3010_v14  ;;  %2843 = vmatmul.mubr.msk.bf16.gmra.mrb[4].mxu1 %vm107_vm0, %v3010_v14  ;;  %v3658_v40 = vld [vmem:[%s5066_s2 + $0xe8] ss:$16 sps:$4 sm:$0xff]   ;;  %v5077_v45 = vsub.s32 0, %v3702_v42  ;;  %v45_v46 = vld [vmem:[%s5067_s3] sm:$0xf]  ;;  %v5075_v47 = vsub.s32 1, %v3702_v42 }
   0xf   :  { %463 = vmatpush1.bf16.msra.mxu0 %v3514_v17  ;;  %172 = vmatprep.mubr.bf16.mxu0 %v5078_v1  ;;  %v3713_v48 = vrot.slane %v45_v46, %v5076_v43  ;;  %v3721_v51 = vrot.slane %v45_v46, %v5074_v44 }
  0x10   :  { %504 = vmatpush1.bf16.msra.mxu1 %v3519_v18  ;;  %464 = vmatprep.subr.bf16.mxu0 %v3526_v19  ;;  %v50_v52 = vrot.slane %v45_v46, %v5077_v45  ;;  %v54_v55 = vrot.slane %v45_v46, %v5075_v47 }
  0x11   :  { %505 = vmatprep.subr.bf16.mxu1 %v3532_v20  ;;  %245 = vmatprep.mubr.bf16.mxu1 %v5078_v1 }
  0x13   :  { %465 = vmatpush1.bf16.msra.mxu0 %v3539_v21 }
  0x14   :  { %506 = vmatpush1.bf16.msra.mxu1 %v3545_v22  ;;  %466 = vmatprep.subr.bf16.mxu0 %v3553_v23 }
  0x15   :  { %507 = vmatprep.subr.bf16.mxu1 %v3560_v24 }
  0x16   :  { %2840 = vmatmul.mubr.msk.bf16.gmra.mrb[8].mxu0 %vm107_vm0, %v3023_v25  ;;  %2844 = vmatmul.mubr.msk.bf16.gmra.mrb[8].mxu1 %vm107_vm0, %v3023_v25 }
  0x17   :  { %467 = vmatpush1.bf16.msra.mxu0 %v3569_v26  ;;  %182 = vmatprep.mubr.bf16.mxu0 %v5078_v1 }
  0x18   :  { %508 = vmatpush1.bf16.msra.mxu1 %v3576_v27  ;;  %468 = vmatprep.subr.bf16.mxu0 %v3581_v28 }
  0x19   :  { %509 = vmatprep.subr.bf16.mxu1 %v3587_v29  ;;  %255 = vmatprep.mubr.bf16.mxu1 %v5078_v1 }
  0x1b   :  { %469 = vmatpush1.bf16.msra.mxu0 %v3595_v30 }
  0x1c   :  { %510 = vmatpush1.bf16.msra.mxu1 %v3600_v31  ;;  %470 = vmatprep.subr.bf16.mxu0 %v3608_v32 }
  0x1d   :  { %511 = vmatprep.subr.bf16.mxu1 %v3615_v33 }
  0x1e   :  { %2841 = vmatmul.mubr.msk.bf16.gmra.mrb[12].mxu0 %vm107_vm0, %v3036_v34  ;;  %2845 = vmatmul.mubr.msk.bf16.gmra.mrb[12].mxu1 %vm107_vm0, %v3036_v34 }
  0x1f   :  { %471 = vmatpush1.bf16.msra.mxu0 %v3624_v35  ;;  %490 = vmatprep.mubr.bf16.mxu0 %v5078_v1 }
  0x20   :  { %512 = vmatpush1.bf16.msra.mxu1 %v3631_v36  ;;  %472 = vmatprep.subr.bf16.mxu0 %v3636_v37 }
  0x21   :  { %513 = vmatprep.subr.bf16.mxu1 %v3642_v38  ;;  %531 = vmatprep.mubr.bf16.mxu1 %v5078_v1 }
  0x23   :  { %473 = vmatpush1.bf16.msra.mxu0 %v3650_v39 }
  0x24   :  { %514 = vmatpush1.bf16.msra.mxu1 %v3658_v40  ;;  %563 = vmatprep.subr.bf16.mxu0 %v3450_v6 }
  0x25   :  { %604 = vmatprep.subr.bf16.mxu1 %v3455_v7 }
  0x26   :  { %491 = vmatmul.mubr.bf16.vlgmr.msra.gmra.mrb[16].mxu0 %v5078_v1 }
  0x27   :  { %532 = vmatmul.mubr.bf16.vlgmr.msra.gmra.mrb[16].mxu1 %v5078_v1  ;;  %564 = vmatpush1.bf16.msra.mxu0 %v3460_v8 }
  0x28   :  { %605 = vmatpush1.bf16.msra.mxu1 %v3466_v9  ;;  %565 = vmatprep.subr.bf16.mxu0 %v3473_v10 }
  0x29   :  { %606 = vmatprep.subr.bf16.mxu1 %v3480_v11  ;;  %595 = vmatprep.mubr.bf16.mxu0 %v5078_v1 }
  0x2a   :  { %636 = vmatprep.mubr.bf16.mxu1 %v5078_v1 }
  0x2b   :  { %566 = vmatpush1.bf16.msra.mxu0 %v3485_v12 }
  0x2c   :  { %607 = vmatpush1.bf16.msra.mxu1 %v3490_v13  ;;  %567 = vmatprep.subr.bf16.mxu0 %v3502_v15 }
  0x2d   :  { %608 = vmatprep.subr.bf16.mxu1 %v3508_v16 }
  0x2f   :  { %568 = vmatpush1.bf16.msra.mxu0 %v3514_v17 }
  0x30   :  { %609 = vmatpush1.bf16.msra.mxu1 %v3519_v18  ;;  %569 = vmatprep.subr.bf16.mxu0 %v3526_v19 }
  0x31   :  { %610 = vmatprep.subr.bf16.mxu1 %v3532_v20 }
  0x33   :  { %570 = vmatpush1.bf16.msra.mxu0 %v3539_v21 }
  0x34   :  { %611 = vmatpush1.bf16.msra.mxu1 %v3545_v22  ;;  %571 = vmatprep.subr.bf16.mxu0 %v3553_v23 }
  0x35   :  { %612 = vmatprep.subr.bf16.mxu1 %v3560_v24 }
  0x37   :  { %572 = vmatpush1.bf16.msra.mxu0 %v3569_v26 }
  0x38   :  { %613 = vmatpush1.bf16.msra.mxu1 %v3576_v27  ;;  %573 = vmatprep.subr.bf16.mxu0 %v3581_v28 }
  0x39   :  { %614 = vmatprep.subr.bf16.mxu1 %v3587_v29 }
  0x3b   :  { %574 = vmatpush1.bf16.msra.mxu0 %v3595_v30 }
  0x3c   :  { %615 = vmatpush1.bf16.msra.mxu1 %v3600_v31  ;;  %575 = vmatprep.subr.bf16.mxu0 %v3608_v32 }
  0x3d   :  { %616 = vmatprep.subr.bf16.mxu1 %v3615_v33 }
  0x3f   :  { %576 = vmatpush1.bf16.msra.mxu0 %v3624_v35 }
  0x40   :  { %617 = vmatpush1.bf16.msra.mxu1 %v3631_v36  ;;  %577 = vmatprep.subr.bf16.mxu0 %v3636_v37 }
  0x41   :  { %618 = vmatprep.subr.bf16.mxu1 %v3642_v38 }
  0x43   :  { %578 = vmatpush1.bf16.msra.mxu0 %v3650_v39 }
  0x44   :  { %619 = vmatpush1.bf16.msra.mxu1 %v3658_v40  ;;  %668 = vmatprep.subr.bf16.mxu0 %v3450_v6 }
  0x45   :  { %709 = vmatprep.subr.bf16.mxu1 %v3455_v7 }
  0xd9   :  { %v3715_v49 = vpop.f32.mrb[0].mxu0  ;;  %v3717_v50 = vpop.f32.mrb[0].mxu1 }
  0xda   :  { %v156_v53 = vpop.f32.mrb[1].mxu0  ;;  %v229_v54 = vpop.f32.mrb[1].mxu1 }
  0xdb   :  { %v158_v56 = vpop.f32.mrb[2].mxu0  ;;  %v231_v57 = vpop.f32.mrb[2].mxu1 }
  0xdc   :  { %v3727_v58 = vadd.f32 %v158_v56, %v50_v52  ;;  %v160_v59 = vpop.f32.mrb[3].mxu0  ;;  %v3730_v60 = vadd.f32 %v231_v57, %v3713_v48  ;;  %v233_v61 = vpop.f32.mrb[3].mxu1 }
  0xdd   :  { %v3732_v62 = vadd.f32 %v160_v59, %v54_v55  ;;  %v3735_v63 = vadd.f32 %v233_v61, %v3721_v51 }
  0xe1   :  { %v164_v0 = vpop.f32.mrb[4].mxu0  ;;  %v237_v2 = vpop.f32.mrb[4].mxu1 }
  0xe2   :  { %v3737_v3 = vadd.f32 %v164_v0, %v50_v52  ;;  %v166_v4 = vpop.f32.mrb[5].mxu0  ;;  %v3740_v5 = vadd.f32 %v237_v2, %v3713_v48  ;;  %v239_v14 = vpop.f32.mrb[5].mxu1 }
  0xe3   :  { %v3742_v25 = vadd.f32 %v166_v4, %v54_v55  ;;  %v168_v34 = vpop.f32.mrb[6].mxu0  ;;  %v3745_v41 = vadd.f32 %v239_v14, %v3721_v51  ;;  %v241_v46 = vpop.f32.mrb[6].mxu1 }
  0xe4   :  { %v3747_v56 = vadd.f32 %v168_v34, %v50_v52  ;;  %v170_v57 = vpop.f32.mrb[7].mxu0  ;;  %v3750_v59 = vadd.f32 %v241_v46, %v3713_v48  ;;  %v243_v61 = vpop.f32.mrb[7].mxu1 }
  0xe5   :  { %5083 = vst [vmem:[#allocation3_spill] sm:$0xff] %v3745_v41  ;;  %v3752_v0 = vadd.f32 %v170_v57, %v54_v55  ;;  %v3755_v2 = vadd.f32 %v243_v61, %v3721_v51 }
  0xe6   :  { %5084 = vst [vmem:[#allocation4_spill] sm:$0xff] %v3747_v56  ;;  %5085 = vst [vmem:[#allocation5_spill] sm:$0xff] %v3750_v59 }
  0xe7   :  { %5086 = vst [vmem:[#allocation6_spill] sm:$0xff] %v3752_v0  ;;  %5087 = vst [vmem:[#allocation7_spill] sm:$0xff] %v3755_v2 }
  0xe9   :  { %v174_v44 = vpop.f32.mrb[8].mxu0  ;;  %v247_v4 = vpop.f32.mrb[8].mxu1 }
  0xea   :  { %v3757_v47 = vadd.f32 %v174_v44, %v50_v52  ;;  %v176_v43 = vpop.f32.mrb[9].mxu0  ;;  %v3760_v14 = vadd.f32 %v247_v4, %v3713_v48  ;;  %v249_v34 = vpop.f32.mrb[9].mxu1 }
  0xeb   :  { %v3762_v45 = vadd.f32 %v176_v43, %v54_v55  ;;  %v178_v1 = vpop.f32.mrb[10].mxu0  ;;  %v3765_v46 = vadd.f32 %v249_v34, %v3721_v51  ;;  %v251_v57 = vpop.f32.mrb[10].mxu1 }
  0xec   :  { %5088 = vst [vmem:[#allocation8_spill] sm:$0xff] %v3757_v47  ;;  %5089 = vst [vmem:[#allocation9_spill] sm:$0xff] %v3760_v14  ;;  %v3767_v42 = vadd.f32 %v178_v1, %v50_v52  ;;  %v180_v61 = vpop.f32.mrb[11].mxu0  ;;  %v3770_v2 = vadd.f32 %v251_v57, %v3713_v48  ;;  %v253_v44 = vpop.f32.mrb[11].mxu1 }
  0xed   :  { %5090 = vst [vmem:[#allocation10_spill] sm:$0xff] %v3762_v45  ;;  %5091 = vst [vmem:[#allocation11_spill] sm:$0xff] %v3765_v46  ;;  %v3772_v47 = vadd.f32 %v180_v61, %v54_v55  ;;  %v3775_v4 = vadd.f32 %v253_v44, %v3721_v51 }
  0xee   :  { %5092 = vst [vmem:[#allocation12_spill] sm:$0xff] %v3767_v42  ;;  %5093 = vst [vmem:[#allocation13_spill] sm:$0xff] %v3770_v2 }
  0xef   :  { %5094 = vst [vmem:[#allocation14_spill] sm:$0xff] %v3772_v47  ;;  %5095 = vst [vmem:[#allocation15_spill] sm:$0xff] %v3775_v4 }
  0xf1   :  { %v184_v14 = vpop.f32.mrb[12].mxu0  ;;  %v257_v43 = vpop.f32.mrb[12].mxu1 }
  0xf2   :  { %v3777_v45 = vadd.f32 %v184_v14, %v50_v52  ;;  %v186_v0 = vpop.f32.mrb[13].mxu0  ;;  %v3780_v34 = vadd.f32 %v257_v43, %v3713_v48  ;;  %v259_v1 = vpop.f32.mrb[13].mxu1 }
  0xf3   :  { %v3782_v42 = vadd.f32 %v186_v0, %v54_v55  ;;  %v188_v46 = vpop.f32.mrb[14].mxu0  ;;  %v3785_v57 = vadd.f32 %v259_v1, %v3721_v51  ;;  %v261_v61 = vpop.f32.mrb[14].mxu1  ;;  %v155_v0 = vadd.f32 %v3715_v49, %v50_v52  ;;  %v228_v1 = vadd.f32 %v3717_v50, %v3713_v48 }
  0xf4   :  { %5096 = vst [vmem:[#allocation16_spill] sm:$0xff] %v3777_v45  ;;  %5097 = vst [vmem:[#allocation17_spill] sm:$0xff] %v3780_v34  ;;  %v3787_v47 = vadd.f32 %v188_v46, %v50_v52  ;;  %v190_v44 = vpop.f32.mrb[15].mxu0  ;;  %v3790_v4 = vadd.f32 %v261_v61, %v3713_v48  ;;  %v263_v14 = vpop.f32.mrb[15].mxu1  ;;  %v230_v46 = vadd.f32 %v229_v54, %v3721_v51 }
  0xf5   :  { %5098 = vst [vmem:[#allocation18_spill] sm:$0xff] %v3782_v42  ;;  %5099 = vst [vmem:[#allocation19_spill] sm:$0xff] %v3785_v57  ;;  %v3792_v45 = vadd.f32 %v190_v44, %v54_v55  ;;  %v3795_v43 = vadd.f32 %v263_v14, %v3721_v51  ;;  %v157_v42 = vadd.f32 %v156_v53, %v54_v55 }
  0xf6   :  { %5100 = vst [vmem:[#allocation20_spill] sm:$0xff] %v3787_v47  ;;  %5101 = vst [vmem:[#allocation21_spill] sm:$0xff] %v3790_v4 }
  0xf7   :  { %5102 = vst [vmem:[#allocation22_spill] sm:$0xff] %v3792_v45  ;;  %5103 = vst [vmem:[#allocation23_spill] sm:$0xff] %v3795_v43 }
  0xf9   :  { %v492_v57 = vpop.f32.mrb[16].mxu0 }
  0xfa   :  { %v540_v47 = vadd.f32 %v492_v57, %v155_v0  ;;  %v533_v34 = vpop.f32.mrb[16].mxu1  ;;  %v494_v2 = vpop.f32.mrb[17].mxu0 }
  0xfb   :  { %v542_v61 = vadd.f32 %v533_v34, %v228_v1  ;;  %v541_v4 = vadd.f32 %v494_v2, %v157_v42  ;;  %v535_v59 = vpop.f32.mrb[17].mxu1  ;;  %v496_v44 = vpop.f32.mrb[18].mxu0 }
  0xfc   :  { %v544_v45 = vmul.f32 0.5, %v540_v47  ;;  %v543_v56 = vadd.f32 %v535_v59, %v230_v46  ;;  %v497_v14 = vpop.f32.mrb[19].mxu0  ;;  %v537_v43 = vpop.f32.mrb[18].mxu1 }
  0xfd   :  { %v545_v41 = vmul.f32 0.5, %v541_v4  ;;  %v538_v49 = vpop.f32.mrb[19].mxu1  ;;  %v546_v48 = vmul.f32 0.5, %v542_v61  ;;  %v5104_v43 = vmov 0  }
  0xfe   :  { %3153 = vtanh.f32 %v544_v45 }
  0xff   :  { %3155 = vtanh.f32 %v545_v41 }
 0x100   :  { %3157 = vtanh.f32 %v543_v56 }
 0x101   :  { %3159 = vtanh.f32 %v546_v48 }
 0x108   :  { %v3154_v50 = vpop.eup %3153 }
 0x109   :  { %v550_v52 = vadd.f32 1.0, %v3154_v50  ;;  %v3156_v51 = vpop.eup %3155 }
 0x10a   :  { %v551_v54 = vadd.f32 1.0, %v3156_v51  ;;  %v3158_v55 = vpop.eup %3157 }
 0x10b   :  { %v553_v53 = vmul.f32 0.5, %v550_v52  ;;  %v3160_v59 = vpop.eup %3159 }
 0x10c   :  { %v554_v42 = vmul.f32 0.5, %v551_v54  ;;  %v552_v4 = vadd.f32 1.0, %v3160_v59 }
 0x10d   :  { %v558_v2 = vmul.f32 %v3158_v55, %v553_v53 }
 0x10e   :  { %v557_v34 = vmul.f32 0.0, %v554_v42  ;;  %v555_v45 = vmul.f32 0.5, %v552_v4 }
 0x110   :  { %v3801_v47 = vadd.f32 %v558_v2, %v557_v34 }
 0x112   :  { %3161 = vtanh.f32 %v3801_v47 }
 0x11c   :  { %v3162_v41 = vpop.eup %3161 }
 0x11d   :  { %v3804_v56 = vmul.f32 %v3162_v41, %v555_v45 }
 0x11f   :  { %v562_v57 = vpack.c.bf16 %v3804_v56, %v3804_v56 }
 0x121   :  { %596 = vmatmul.mubr.bf16.vlgmr.msra.gmra.mrb[20].mxu0 %v562_v57  ;;  %637 = vmatmul.mubr.bf16.vlgmr.msra.gmra.mrb[20].mxu1 %v562_v57 }
 0x122   :  { %669 = vmatpush1.bf16.msra.mxu0 %v3460_v8  ;;  %710 = vmatpush1.bf16.msra.mxu1 %v3466_v9 }
 0x123   :  { %670 = vmatprep.subr.bf16.mxu0 %v3473_v10  ;;  %711 = vmatprep.subr.bf16.mxu1 %v3480_v11 }
 0x124   :  { %700 = vmatprep.mubr.bf16.mxu0 %v5104_v43  ;;  %741 = vmatprep.mubr.bf16.mxu1 %v5104_v43 }
 0x126   :  { %671 = vmatpush1.bf16.msra.mxu0 %v3485_v12  ;;  %712 = vmatpush1.bf16.msra.mxu1 %v3490_v13 }
 0x127   :  { %672 = vmatprep.subr.bf16.mxu0 %v3502_v15  ;;  %713 = vmatprep.subr.bf16.mxu1 %v3508_v16 }
 0x12a   :  { %673 = vmatpush1.bf16.msra.mxu0 %v3514_v17  ;;  %714 = vmatpush1.bf16.msra.mxu1 %v3519_v18 }
 0x12b   :  { %674 = vmatprep.subr.bf16.mxu0 %v3526_v19  ;;  %715 = vmatprep.subr.bf16.mxu1 %v3532_v20 }
 0x12e   :  { %675 = vmatpush1.bf16.msra.mxu0 %v3539_v21  ;;  %716 = vmatpush1.bf16.msra.mxu1 %v3545_v22 }
 0x12f   :  { %676 = vmatprep.subr.bf16.mxu0 %v3553_v23  ;;  %717 = vmatprep.subr.bf16.mxu1 %v3560_v24 }
 0x132   :  { %677 = vmatpush1.bf16.msra.mxu0 %v3569_v26  ;;  %718 = vmatpush1.bf16.msra.mxu1 %v3576_v27 }
 0x133   :  { %678 = vmatprep.subr.bf16.mxu0 %v3581_v28  ;;  %719 = vmatprep.subr.bf16.mxu1 %v3587_v29 }
 0x136   :  { %679 = vmatpush1.bf16.msra.mxu0 %v3595_v30  ;;  %720 = vmatpush1.bf16.msra.mxu1 %v3600_v31 }
 0x137   :  { %680 = vmatprep.subr.bf16.mxu0 %v3608_v32  ;;  %721 = vmatprep.subr.bf16.mxu1 %v3615_v33 }
 0x13a   :  { %681 = vmatpush1.bf16.msra.mxu0 %v3624_v35  ;;  %722 = vmatpush1.bf16.msra.mxu1 %v3631_v36 }
 0x13b   :  { %682 = vmatprep.subr.bf16.mxu0 %v3636_v37  ;;  %723 = vmatprep.subr.bf16.mxu1 %v3642_v38 }
 0x13e   :  { %683 = vmatpush1.bf16.msra.mxu0 %v3650_v39  ;;  %724 = vmatpush1.bf16.msra.mxu1 %v3658_v40 }
 0x13f   :  { %773 = vmatprep.subr.bf16.mxu0 %v3450_v6  ;;  %814 = vmatprep.subr.bf16.mxu1 %v3455_v7 }
 0x1f4   :  { %v597_v0 = vpop.f32.mrb[20].mxu0  ;;  %v638_v1 = vpop.f32.mrb[20].mxu1 }
 0x1f5   :  { %v645_v46 = vadd.f32 %v597_v0, %v3727_v58  ;;  %v647_v61 = vadd.f32 %v638_v1, %v3730_v60  ;;  %v599_v44 = vpop.f32.mrb[21].mxu0  ;;  %v640_v14 = vpop.f32.mrb[21].mxu1 }
 0x1f6   :  { %v646_v49 = vadd.f32 %v599_v44, %v3732_v62  ;;  %v648_v48 = vadd.f32 %v640_v14, %v3735_v63  ;;  %v601_v50 = vpop.f32.mrb[22].mxu0  ;;  %v642_v52 = vpop.f32.mrb[22].mxu1 }
 0x1f7   :  { %v649_v51 = vmul.f32 0.5, %v645_v46  ;;  %v602_v53 = vpop.f32.mrb[23].mxu0  ;;  %v643_v54 = vpop.f32.mrb[23].mxu1  ;;  %v651_v42 = vmul.f32 0.5, %v647_v61 }
 0x1f8   :  { %v650_v55 = vmul.f32 0.5, %v646_v49  ;;  %v5105_v53 = vld [vmem:[#allocation3_spill] sm:$0xff] }
 0x1f9   :  { %3163 = vtanh.f32 %v649_v51 }
 0x1fa   :  { %3165 = vtanh.f32 %v650_v55 }
 0x1fb   :  { %3167 = vtanh.f32 %v648_v48 }
 0x1fc   :  { %3169 = vtanh.f32 %v651_v42 }
 0x203   :  { %v3164_v2 = vpop.eup %3163 }
 0x204   :  { %v655_v58 = vadd.f32 1.0, %v3164_v2  ;;  %v3166_v34 = vpop.eup %3165 }
 0x205   :  { %v656_v59 = vadd.f32 1.0, %v3166_v34  ;;  %v3168_v4 = vpop.eup %3167 }
 0x206   :  { %v658_v60 = vmul.f32 0.5, %v655_v58  ;;  %v3170_v57 = vpop.eup %3169 }
 0x207   :  { %v659_v62 = vmul.f32 0.5, %v656_v59  ;;  %v657_v0 = vadd.f32 1.0, %v3170_v57 }
 0x208   :  { %v663_v45 = vmul.f32 %v3168_v4, %v658_v60 }
 0x209   :  { %v662_v63 = vmul.f32 %v659_v62, %v3801_v47  ;;  %v660_v1 = vmul.f32 0.5, %v657_v0 }
 0x20b   :  { %v3847_v41 = vadd.f32 %v663_v45, %v662_v63 }
 0x20d   :  { %3171 = vtanh.f32 %v3847_v41 }
 0x217   :  { %v3172_v46 = vpop.eup %3171 }
 0x218   :  { %v3850_v61 = vmul.f32 %v3172_v46, %v660_v1 }
 0x21a   :  { %v667_v44 = vpack.c.bf16 %v3850_v61, %v3850_v61 }
 0x21c   :  { %701 = vmatmul.mubr.bf16.vlgmr.msra.gmra.mrb[24].mxu0 %v667_v44  ;;  %742 = vmatmul.mubr.bf16.vlgmr.msra.gmra.mrb[24].mxu1 %v667_v44 }
 0x21d   :  { %774 = vmatpush1.bf16.msra.mxu0 %v3460_v8  ;;  %815 = vmatpush1.bf16.msra.mxu1 %v3466_v9 }
 0x21e   :  { %775 = vmatprep.subr.bf16.mxu0 %v3473_v10  ;;  %816 = vmatprep.subr.bf16.mxu1 %v3480_v11 }
 0x21f   :  { %805 = vmatprep.mubr.bf16.mxu0 %v5104_v43  ;;  %846 = vmatprep.mubr.bf16.mxu1 %v5104_v43 }
 0x221   :  { %776 = vmatpush1.bf16.msra.mxu0 %v3485_v12  ;;  %817 = vmatpush1.bf16.msra.mxu1 %v3490_v13 }
 0x222   :  { %777 = vmatprep.subr.bf16.mxu0 %v3502_v15  ;;  %818 = vmatprep.subr.bf16.mxu1 %v3508_v16 }
 0x225   :  { %778 = vmatpush1.bf16.msra.mxu0 %v3514_v17  ;;  %819 = vmatpush1.bf16.msra.mxu1 %v3519_v18 }
 0x226   :  { %779 = vmatprep.subr.bf16.mxu0 %v3526_v19  ;;  %820 = vmatprep.subr.bf16.mxu1 %v3532_v20 }
 0x229   :  { %780 = vmatpush1.bf16.msra.mxu0 %v3539_v21  ;;  %821 = vmatpush1.bf16.msra.mxu1 %v3545_v22 }
 0x22a   :  { %781 = vmatprep.subr.bf16.mxu0 %v3553_v23  ;;  %822 = vmatprep.subr.bf16.mxu1 %v3560_v24 }
 0x22d   :  { %782 = vmatpush1.bf16.msra.mxu0 %v3569_v26  ;;  %823 = vmatpush1.bf16.msra.mxu1 %v3576_v27 }
 0x22e   :  { %783 = vmatprep.subr.bf16.mxu0 %v3581_v28  ;;  %824 = vmatprep.subr.bf16.mxu1 %v3587_v29 }
 0x231   :  { %784 = vmatpush1.bf16.msra.mxu0 %v3595_v30  ;;  %825 = vmatpush1.bf16.msra.mxu1 %v3600_v31 }
 0x232   :  { %785 = vmatprep.subr.bf16.mxu0 %v3608_v32  ;;  %826 = vmatprep.subr.bf16.mxu1 %v3615_v33 }
 0x235   :  { %786 = vmatpush1.bf16.msra.mxu0 %v3624_v35  ;;  %827 = vmatpush1.bf16.msra.mxu1 %v3631_v36 }
 0x236   :  { %787 = vmatprep.subr.bf16.mxu0 %v3636_v37  ;;  %828 = vmatprep.subr.bf16.mxu1 %v3642_v38 }
 0x239   :  { %788 = vmatpush1.bf16.msra.mxu0 %v3650_v39  ;;  %829 = vmatpush1.bf16.msra.mxu1 %v3658_v40 }
 0x23a   :  { %878 = vmatprep.subr.bf16.mxu0 %v3450_v6  ;;  %919 = vmatprep.subr.bf16.mxu1 %v3455_v7 }
 0x2ef   :  { %v702_v47 = vpop.f32.mrb[24].mxu0  ;;  %v743_v14 = vpop.f32.mrb[24].mxu1 }
 0x2f0   :  { %v750_v49 = vadd.f32 %v702_v47, %v3737_v3  ;;  %v752_v48 = vadd.f32 %v743_v14, %v3740_v5  ;;  %v704_v50 = vpop.f32.mrb[25].mxu0  ;;  %v745_v52 = vpop.f32.mrb[25].mxu1 }
 0x2f1   :  { %v751_v51 = vadd.f32 %v704_v50, %v3742_v25  ;;  %v753_v54 = vadd.f32 %v745_v52, %v5105_v53  ;;  %v706_v55 = vpop.f32.mrb[26].mxu0  ;;  %v747_v42 = vpop.f32.mrb[26].mxu1  ;;  %v5106_v52 = vld [vmem:[#allocation4_spill] sm:$0xff]  ;;  %v5107_v53 = vld [vmem:[#allocation5_spill] sm:$0xff] }
 0x2f2   :  { %v754_v2 = vmul.f32 0.5, %v750_v49  ;;  %v707_v58 = vpop.f32.mrb[27].mxu0  ;;  %v748_v34 = vpop.f32.mrb[27].mxu1  ;;  %v756_v59 = vmul.f32 0.5, %v752_v48 }
 0x2f3   :  { %v755_v60 = vmul.f32 0.5, %v751_v51  ;;  %v5109_v34 = vld [vmem:[#allocation7_spill] sm:$0xff] }
 0x2f4   :  { %3173 = vtanh.f32 %v754_v2  ;;  %v5108_v2 = vld [vmem:[#allocation6_spill] sm:$0xff] }
 0x2f5   :  { %3175 = vtanh.f32 %v755_v60 }
 0x2f6   :  { %3177 = vtanh.f32 %v753_v54 }
 0x2f7   :  { %3179 = vtanh.f32 %v756_v59 }
 0x2fe   :  { %v3174_v4 = vpop.eup %3173 }
 0x2ff   :  { %v760_v3 = vadd.f32 1.0, %v3174_v4  ;;  %v3176_v62 = vpop.eup %3175 }
 0x300   :  { %v761_v45 = vadd.f32 1.0, %v3176_v62  ;;  %v3178_v63 = vpop.eup %3177 }
 0x301   :  { %v763_v5 = vmul.f32 0.5, %v760_v3  ;;  %v3180_v46 = vpop.eup %3179 }
 0x302   :  { %v764_v25 = vmul.f32 0.5, %v761_v45  ;;  %v762_v44 = vadd.f32 1.0, %v3180_v46 }
 0x303   :  { %v768_v57 = vmul.f32 %v3178_v63, %v763_v5 }
 0x304   :  { %v767_v0 = vmul.f32 %v764_v25, %v3847_v41  ;;  %v765_v47 = vmul.f32 0.5, %v762_v44 }
 0x306   :  { %v3893_v1 = vadd.f32 %v768_v57, %v767_v0 }
 0x308   :  { %3181 = vtanh.f32 %v3893_v1 }
 0x312   :  { %v3182_v14 = vpop.eup %3181 }
 0x313   :  { %v3896_v49 = vmul.f32 %v3182_v14, %v765_v47 }
 0x315   :  { %v772_v48 = vpack.c.bf16 %v3896_v49, %v3896_v49 }
 0x317   :  { %806 = vmatmul.mubr.bf16.vlgmr.msra.gmra.mrb[28].mxu0 %v772_v48  ;;  %847 = vmatmul.mubr.bf16.vlgmr.msra.gmra.mrb[28].mxu1 %v772_v48 }
 0x318   :  { %879 = vmatpush1.bf16.msra.mxu0 %v3460_v8  ;;  %920 = vmatpush1.bf16.msra.mxu1 %v3466_v9 }
 0x319   :  { %880 = vmatprep.subr.bf16.mxu0 %v3473_v10  ;;  %921 = vmatprep.subr.bf16.mxu1 %v3480_v11 }
 0x31a   :  { %910 = vmatprep.mubr.bf16.mxu0 %v5104_v43  ;;  %951 = vmatprep.mubr.bf16.mxu1 %v5104_v43 }
 0x31c   :  { %881 = vmatpush1.bf16.msra.mxu0 %v3485_v12  ;;  %922 = vmatpush1.bf16.msra.mxu1 %v3490_v13 }
 0x31d   :  { %882 = vmatprep.subr.bf16.mxu0 %v3502_v15  ;;  %923 = vmatprep.subr.bf16.mxu1 %v3508_v16 }
 0x320   :  { %883 = vmatpush1.bf16.msra.mxu0 %v3514_v17  ;;  %924 = vmatpush1.bf16.msra.mxu1 %v3519_v18 }
 0x321   :  { %884 = vmatprep.subr.bf16.mxu0 %v3526_v19  ;;  %925 = vmatprep.subr.bf16.mxu1 %v3532_v20 }
 0x324   :  { %885 = vmatpush1.bf16.msra.mxu0 %v3539_v21  ;;  %926 = vmatpush1.bf16.msra.mxu1 %v3545_v22 }
 0x325   :  { %886 = vmatprep.subr.bf16.mxu0 %v3553_v23  ;;  %927 = vmatprep.subr.bf16.mxu1 %v3560_v24 }
 0x328   :  { %887 = vmatpush1.bf16.msra.mxu0 %v3569_v26  ;;  %928 = vmatpush1.bf16.msra.mxu1 %v3576_v27 }
 0x329   :  { %888 = vmatprep.subr.bf16.mxu0 %v3581_v28  ;;  %929 = vmatprep.subr.bf16.mxu1 %v3587_v29 }
 0x32c   :  { %889 = vmatpush1.bf16.msra.mxu0 %v3595_v30  ;;  %930 = vmatpush1.bf16.msra.mxu1 %v3600_v31 }
 0x32d   :  { %890 = vmatprep.subr.bf16.mxu0 %v3608_v32  ;;  %931 = vmatprep.subr.bf16.mxu1 %v3615_v33 }
 0x330   :  { %891 = vmatpush1.bf16.msra.mxu0 %v3624_v35  ;;  %932 = vmatpush1.bf16.msra.mxu1 %v3631_v36 }
 0x331   :  { %892 = vmatprep.subr.bf16.mxu0 %v3636_v37  ;;  %933 = vmatprep.subr.bf16.mxu1 %v3642_v38 }
 0x334   :  { %893 = vmatpush1.bf16.msra.mxu0 %v3650_v39  ;;  %934 = vmatpush1.bf16.msra.mxu1 %v3658_v40 }
 0x335   :  { %983 = vmatprep.subr.bf16.mxu0 %v3450_v6  ;;  %1024 = vmatprep.subr.bf16.mxu1 %v3455_v7 }
 0x3ea   :  { %v807_v41 = vpop.f32.mrb[28].mxu0  ;;  %v848_v50 = vpop.f32.mrb[28].mxu1 }
 0x3eb   :  { %v855_v51 = vadd.f32 %v807_v41, %v5106_v52  ;;  %v857_v54 = vadd.f32 %v848_v50, %v5107_v53  ;;  %v809_v55 = vpop.f32.mrb[29].mxu0  ;;  %v850_v42 = vpop.f32.mrb[29].mxu1 }
 0x3ec   :  { %v856_v58 = vadd.f32 %v809_v55, %v5108_v2  ;;  %v858_v60 = vadd.f32 %v850_v42, %v5109_v34  ;;  %v811_v59 = vpop.f32.mrb[30].mxu0  ;;  %v852_v4 = vpop.f32.mrb[30].mxu1 }
 0x3ed   :  { %v859_v3 = vmul.f32 0.5, %v855_v51  ;;  %v812_v62 = vpop.f32.mrb[31].mxu0  ;;  %v853_v5 = vpop.f32.mrb[31].mxu1  ;;  %v861_v7 = vmul.f32 0.5, %v857_v54 }
 0x3ee   :  { %v860_v6 = vmul.f32 0.5, %v856_v58 }
 0x3ef   :  { %3183 = vtanh.f32 %v859_v3 }
 0x3f0   :  { %3185 = vtanh.f32 %v860_v6 }
 0x3f1   :  { %3187 = vtanh.f32 %v858_v60 }
 0x3f2   :  { %3189 = vtanh.f32 %v861_v7 }
 0x3f9   :  { %v3184_v45 = vpop.eup %3183 }
 0x3fa   :  { %v865_v63 = vadd.f32 1.0, %v3184_v45  ;;  %v3186_v25 = vpop.eup %3185 }
 0x3fb   :  { %v866_v0 = vadd.f32 1.0, %v3186_v25  ;;  %v3188_v46 = vpop.eup %3187 }
 0x3fc   :  { %v868_v57 = vmul.f32 0.5, %v865_v63  ;;  %v3190_v41 = vpop.eup %3189 }
 0x3fd   :  { %v869_v44 = vmul.f32 0.5, %v866_v0  ;;  %v867_v50 = vadd.f32 1.0, %v3190_v41  ;;  %v4023_v41 = vld [vmem:[%s5066_s2 + $0x2c] ss:$16 sps:$4 sm:$0xff]  }
 0x3fe   :  { %v873_v47 = vmul.f32 %v3188_v46, %v868_v57 }
 0x3ff   :  { %v872_v14 = vmul.f32 %v869_v44, %v3893_v1  ;;  %v870_v52 = vmul.f32 0.5, %v867_v50  ;;  %v4031_v50 = vld [vmem:[%s5066_s2 + $0x20] ss:$16 sps:$4 sm:$0xff]  }
 0x401   :  { %v3939_v48 = vadd.f32 %v873_v47, %v872_v14  ;;  %v4005_v47 = vld [vmem:[%s5066_s2] ss:$16 sps:$4 sm:$0xff]   ;;  %v4011_v14 = vld [vmem:[%s5066_s2 + $0x8] ss:$16 sps:$4 sm:$0xff]  }
 0x403   :  { %3191 = vtanh.f32 %v3939_v48 }
 0x40d   :  { %v3192_v51 = vpop.eup %3191 }
 0x40e   :  { %v3942_v53 = vmul.f32 %v3192_v51, %v870_v52  ;;  %v4037_v52 = vld [vmem:[%s5066_s2 + $0x28] ss:$16 sps:$4 sm:$0xff]   ;;  %v4043_v51 = vld [vmem:[%s5066_s2 + $0x44] ss:$16 sps:$4 sm:$0xff]  }
 0x410   :  { %v877_v54 = vpack.c.bf16 %v3942_v53, %v3942_v53 }
 0x412   :  { %911 = vmatmul.mubr.bf16.vlgmr.msra.gmra.mrb[32].mxu0 %v877_v54  ;;  %952 = vmatmul.mubr.bf16.vlgmr.msra.gmra.mrb[32].mxu1 %v877_v54  ;;  %v4049_v54 = vld [vmem:[%s5066_s2 + $0x4c] ss:$16 sps:$4 sm:$0xff]  }
 0x413   :  { %984 = vmatpush1.bf16.msra.mxu0 %v3460_v8  ;;  %1025 = vmatpush1.bf16.msra.mxu1 %v3466_v9  ;;  %v3981_v8 = vld [vmem:[%s5066_s2 + $0x4] ss:$16 sps:$4 sm:$0xff]   ;;  %v3987_v9 = vld [vmem:[%s5066_s2 + $0xc] ss:$16 sps:$4 sm:$0xff]  }
 0x414   :  { %985 = vmatprep.subr.bf16.mxu0 %v3473_v10  ;;  %1026 = vmatprep.subr.bf16.mxu1 %v3480_v11 }
 0x415   :  { %1015 = vmatprep.mubr.bf16.mxu0 %v5104_v43  ;;  %1056 = vmatprep.mubr.bf16.mxu1 %v5104_v43 }
 0x417   :  { %986 = vmatpush1.bf16.msra.mxu0 %v3485_v12  ;;  %1027 = vmatpush1.bf16.msra.mxu1 %v3490_v13  ;;  %v5110_v12 = vld [vmem:[#allocation8_spill] sm:$0xff] }
 0x418   :  { %987 = vmatprep.subr.bf16.mxu0 %v3502_v15  ;;  %1028 = vmatprep.subr.bf16.mxu1 %v3508_v16  ;;  %v5111_v15 = vld [vmem:[#allocation9_spill] sm:$0xff] }
 0x41b   :  { %988 = vmatpush1.bf16.msra.mxu0 %v3514_v17  ;;  %1029 = vmatpush1.bf16.msra.mxu1 %v3519_v18 }
 0x41c   :  { %989 = vmatprep.subr.bf16.mxu0 %v3526_v19  ;;  %1030 = vmatprep.subr.bf16.mxu1 %v3532_v20  ;;  %v5112_v19 = vld [vmem:[#allocation10_spill] sm:$0xff] }
 0x41f   :  { %990 = vmatpush1.bf16.msra.mxu0 %v3539_v21  ;;  %1031 = vmatpush1.bf16.msra.mxu1 %v3545_v22  ;;  %v5113_v21 = vld [vmem:[#allocation11_spill] sm:$0xff] }
 0x420   :  { %991 = vmatprep.subr.bf16.mxu0 %v3553_v23  ;;  %1032 = vmatprep.subr.bf16.mxu1 %v3560_v24 }
 0x423   :  { %992 = vmatpush1.bf16.msra.mxu0 %v3569_v26  ;;  %1033 = vmatpush1.bf16.msra.mxu1 %v3576_v27 }
 0x424   :  { %993 = vmatprep.subr.bf16.mxu0 %v3581_v28  ;;  %1034 = vmatprep.subr.bf16.mxu1 %v3587_v29 }
 0x427   :  { %994 = vmatpush1.bf16.msra.mxu0 %v3595_v30  ;;  %1035 = vmatpush1.bf16.msra.mxu1 %v3600_v31 }
 0x428   :  { %995 = vmatprep.subr.bf16.mxu0 %v3608_v32  ;;  %1036 = vmatprep.subr.bf16.mxu1 %v3615_v33 }
 0x42b   :  { %996 = vmatpush1.bf16.msra.mxu0 %v3624_v35  ;;  %1037 = vmatpush1.bf16.msra.mxu1 %v3631_v36 }
 0x42c   :  { %997 = vmatprep.subr.bf16.mxu0 %v3636_v37  ;;  %1038 = vmatprep.subr.bf16.mxu1 %v3642_v38 }
 0x42f   :  { %998 = vmatpush1.bf16.msra.mxu0 %v3650_v39  ;;  %1039 = vmatpush1.bf16.msra.mxu1 %v3658_v40 }
 0x430   :  { %1088 = vmatprep.subr.bf16.mxu0 %v3981_v8  ;;  %1129 = vmatprep.subr.bf16.mxu1 %v3987_v9 }
 0x4e5   :  { %v912_v10 = vpop.f32.mrb[32].mxu0  ;;  %v953_v11 = vpop.f32.mrb[32].mxu1 }
 0x4e6   :  { %v960_v13 = vadd.f32 %v912_v10, %v5110_v12  ;;  %v962_v16 = vadd.f32 %v953_v11, %v5111_v15  ;;  %v914_v17 = vpop.f32.mrb[33].mxu0  ;;  %v955_v18 = vpop.f32.mrb[33].mxu1  ;;  %v4055_v10 = vld [vmem:[%s5066_s2 + $0x40] ss:$16 sps:$4 sm:$0xff]   ;;  %v4061_v11 = vld [vmem:[%s5066_s2 + $0x48] ss:$16 sps:$4 sm:$0xff]  }
 0x4e7   :  { %v961_v20 = vadd.f32 %v914_v17, %v5112_v19  ;;  %v963_v22 = vadd.f32 %v955_v18, %v5113_v21  ;;  %v916_v23 = vpop.f32.mrb[34].mxu0  ;;  %v957_v24 = vpop.f32.mrb[34].mxu1  ;;  %v4067_v12 = vld [vmem:[%s5066_s2 + $0x64] ss:$16 sps:$4 sm:$0xff]   ;;  %v4079_v15 = vld [vmem:[%s5066_s2 + $0x60] ss:$16 sps:$4 sm:$0xff]  }
 0x4e8   :  { %v964_v1 = vmul.f32 0.5, %v960_v13  ;;  %v917_v55 = vpop.f32.mrb[35].mxu0  ;;  %v958_v42 = vpop.f32.mrb[35].mxu1  ;;  %v966_v58 = vmul.f32 0.5, %v962_v16  ;;  %v4073_v13 = vld [vmem:[%s5066_s2 + $0x6c] ss:$16 sps:$4 sm:$0xff]  }
 0x4e9   :  { %v965_v2 = vmul.f32 0.5, %v961_v20  ;;  %v4085_v16 = vld [vmem:[%s5066_s2 + $0x68] ss:$16 sps:$4 sm:$0xff]   ;;  %v4091_v17 = vld [vmem:[%s5066_s2 + $0x84] ss:$16 sps:$4 sm:$0xff]  }
 0x4ea   :  { %3193 = vtanh.f32 %v964_v1  ;;  %v4097_v18 = vld [vmem:[%s5066_s2 + $0x8c] ss:$16 sps:$4 sm:$0xff]  }
 0x4eb   :  { %3195 = vtanh.f32 %v965_v2 }
 0x4ec   :  { %3197 = vtanh.f32 %v963_v22 }
 0x4ed   :  { %3199 = vtanh.f32 %v966_v58 }
 0x4f4   :  { %v3194_v34 = vpop.eup %3193 }
 0x4f5   :  { %v970_v60 = vadd.f32 1.0, %v3194_v34  ;;  %v3196_v59 = vpop.eup %3195 }
 0x4f6   :  { %v971_v3 = vadd.f32 1.0, %v3196_v59  ;;  %v3198_v62 = vpop.eup %3197 }
 0x4f7   :  { %v973_v4 = vmul.f32 0.5, %v970_v60  ;;  %v3200_v63 = vpop.eup %3199 }
 0x4f8   :  { %v974_v5 = vmul.f32 0.5, %v971_v3  ;;  %v972_v25 = vadd.f32 1.0, %v3200_v63  ;;  %v3333_v63 = vld [vmem:[%s5066_s2 + $0xa4] ss:$16 sps:$4 sm:$0xff]  }
 0x4f9   :  { %v978_v6 = vmul.f32 %v3198_v62, %v973_v4 }
 0x4fa   :  { %v977_v7 = vmul.f32 %v974_v5, %v3939_v48  ;;  %v975_v57 = vmul.f32 0.5, %v972_v25  ;;  %v4017_v48 = vld [vmem:[%s5066_s2 + $0x24] ss:$16 sps:$4 sm:$0xff]   ;;  %v3334_v25 = vld [vmem:[%s5066_s2 + $0xac] ss:$16 sps:$4 sm:$0xff]  }
 0x4fc   :  { %v3995_v45 = vadd.f32 %v978_v6, %v977_v7  ;;  %v3331_v7 = vld [vmem:[%s5066_s2 + $0x80] ss:$16 sps:$4 sm:$0xff]  }
 0x4fe   :  { %3201 = vtanh.f32 %v3995_v45 }
 0x508   :  { %v3202_v0 = vpop.eup %3201 }
 0x509   :  { %v3998_v46 = vmul.f32 %v3202_v0, %v975_v57  ;;  %v3335_v57 = vld [vmem:[%s5066_s2 + $0xa0] ss:$16 sps:$4 sm:$0xff]   ;;  %v3336_v0 = vld [vmem:[%s5066_s2 + $0xa8] ss:$16 sps:$4 sm:$0xff]  }
 0x50b   :  { %v982_v44 = vpack.c.bf16 %v3998_v46, %v3998_v46 }
 0x50d   :  { %1016 = vmatmul.mubr.bf16.vlgmr.msra.gmra.mrb[36].mxu0 %v982_v44  ;;  %1057 = vmatmul.mubr.bf16.vlgmr.msra.gmra.mrb[36].mxu1 %v982_v44  ;;  %v3337_v44 = vld [vmem:[%s5066_s2 + $0xc4] ss:$16 sps:$4 sm:$0xff]  }
 0x50e   :  { %1089 = vmatpush1.bf16.msra.mxu0 %v4005_v47  ;;  %1130 = vmatpush1.bf16.msra.mxu1 %v4011_v14 }
 0x50f   :  { %1090 = vmatprep.subr.bf16.mxu0 %v4017_v48  ;;  %1131 = vmatprep.subr.bf16.mxu1 %v4023_v41 }
 0x510   :  { %1120 = vmatprep.mubr.bf16.mxu0 %v5104_v43  ;;  %1161 = vmatprep.mubr.bf16.mxu1 %v5104_v43 }
 0x512   :  { %1091 = vmatpush1.bf16.msra.mxu0 %v4031_v50  ;;  %1132 = vmatpush1.bf16.msra.mxu1 %v4037_v52 }
 0x513   :  { %1092 = vmatprep.subr.bf16.mxu0 %v4043_v51  ;;  %1133 = vmatprep.subr.bf16.mxu1 %v4049_v54 }
 0x516   :  { %1093 = vmatpush1.bf16.msra.mxu0 %v4055_v10  ;;  %1134 = vmatpush1.bf16.msra.mxu1 %v4061_v11 }
 0x517   :  { %1094 = vmatprep.subr.bf16.mxu0 %v4067_v12  ;;  %1135 = vmatprep.subr.bf16.mxu1 %v4073_v13 }
 0x51a   :  { %1095 = vmatpush1.bf16.msra.mxu0 %v4079_v15  ;;  %1136 = vmatpush1.bf16.msra.mxu1 %v4085_v16 }
 0x51b   :  { %1096 = vmatprep.subr.bf16.mxu0 %v4091_v17  ;;  %1137 = vmatprep.subr.bf16.mxu1 %v4097_v18 }
 0x51e   :  { %1097 = vmatpush1.bf16.msra.mxu0 %v3569_v26  ;;  %1138 = vmatpush1.bf16.msra.mxu1 %v3576_v27 }
 0x51f   :  { %1098 = vmatprep.subr.bf16.mxu0 %v3581_v28  ;;  %1139 = vmatprep.subr.bf16.mxu1 %v3587_v29  ;;  %v5114_v28 = vld [vmem:[#allocation12_spill] sm:$0xff] }
 0x522   :  { %1099 = vmatpush1.bf16.msra.mxu0 %v3595_v30  ;;  %1140 = vmatpush1.bf16.msra.mxu1 %v3600_v31  ;;  %v5115_v30 = vld [vmem:[#allocation13_spill] sm:$0xff] }
 0x523   :  { %1100 = vmatprep.subr.bf16.mxu0 %v3608_v32  ;;  %1141 = vmatprep.subr.bf16.mxu1 %v3615_v33 }
 0x526   :  { %1101 = vmatpush1.bf16.msra.mxu0 %v3624_v35  ;;  %1142 = vmatpush1.bf16.msra.mxu1 %v3631_v36  ;;  %v5116_v35 = vld [vmem:[#allocation14_spill] sm:$0xff] }
 0x527   :  { %1102 = vmatprep.subr.bf16.mxu0 %v3636_v37  ;;  %1143 = vmatprep.subr.bf16.mxu1 %v3642_v38  ;;  %v5117_v37 = vld [vmem:[#allocation15_spill] sm:$0xff] }
 0x52a   :  { %1103 = vmatpush1.bf16.msra.mxu0 %v3650_v39  ;;  %1144 = vmatpush1.bf16.msra.mxu1 %v3658_v40 }
 0x52b   :  { %1193 = vmatprep.subr.bf16.mxu0 %v3981_v8  ;;  %1234 = vmatprep.subr.bf16.mxu1 %v3987_v9 }
 0x5e0   :  { %v1017_v26 = vpop.f32.mrb[36].mxu0  ;;  %v1058_v27 = vpop.f32.mrb[36].mxu1 }
 0x5e1   :  { %v1065_v29 = vadd.f32 %v1017_v26, %v5114_v28  ;;  %v1067_v31 = vadd.f32 %v1058_v27, %v5115_v30  ;;  %v1019_v32 = vpop.f32.mrb[37].mxu0  ;;  %v1060_v33 = vpop.f32.mrb[37].mxu1  ;;  %v5120_v27 = vld [vmem:[#allocation18_spill] sm:$0xff] }
 0x5e2   :  { %v1066_v36 = vadd.f32 %v1019_v32, %v5116_v35  ;;  %v1068_v38 = vadd.f32 %v1060_v33, %v5117_v37  ;;  %v1021_v19 = vpop.f32.mrb[38].mxu0  ;;  %v1062_v39 = vpop.f32.mrb[38].mxu1 }
 0x5e3   :  { %v1069_v20 = vmul.f32 0.5, %v1065_v29  ;;  %v1022_v40 = vpop.f32.mrb[39].mxu0  ;;  %v1063_v21 = vpop.f32.mrb[39].mxu1  ;;  %v1071_v9 = vmul.f32 0.5, %v1067_v31  ;;  %v5121_v29 = vld [vmem:[#allocation19_spill] sm:$0xff] }
 0x5e4   :  { %v1070_v8 = vmul.f32 0.5, %v1066_v36 }
 0x5e5   :  { %3203 = vtanh.f32 %v1069_v20 }
 0x5e6   :  { %3205 = vtanh.f32 %v1070_v8 }
 0x5e7   :  { %3207 = vtanh.f32 %v1068_v38 }
 0x5e8   :  { %3209 = vtanh.f32 %v1071_v9 }
 0x5ef   :  { %v3204_v22 = vpop.eup %3203 }
 0x5f0   :  { %v1075_v23 = vadd.f32 1.0, %v3204_v22  ;;  %v3206_v24 = vpop.eup %3205 }
 0x5f1   :  { %v1076_v55 = vadd.f32 1.0, %v3206_v24  ;;  %v3208_v42 = vpop.eup %3207 }
 0x5f2   :  { %v1078_v1 = vmul.f32 0.5, %v1075_v23  ;;  %v3210_v59 = vpop.eup %3209 }
 0x5f3   :  { %v1079_v2 = vmul.f32 0.5, %v1076_v55  ;;  %v1077_v4 = vadd.f32 1.0, %v3210_v59  ;;  %v3052_v59 = vld [vmem:[%s5068_s4 + $0x8] ss:$16 sps:$4 sm:$0xff]  }
 0x5f4   :  { %v1083_v58 = vmul.f32 %v3208_v42, %v1078_v1 }
 0x5f5   :  { %v1082_v34 = vmul.f32 %v1079_v2, %v3995_v45  ;;  %v1080_v3 = vmul.f32 0.5, %v1077_v4  ;;  %v3332_v45 = vld [vmem:[%s5066_s2 + $0x88] ss:$16 sps:$4 sm:$0xff]   ;;  %v3057_v4 = vld [vmem:[%s5068_s4 + $0x24] ss:$16 sps:$4 sm:$0xff]  }
 0x5f7   :  { %v4121_v60 = vadd.f32 %v1083_v58, %v1082_v34  ;;  %v3049_v34 = vld [vmem:[%s5068_s4] ss:$16 sps:$4 sm:$0xff]  }
 0x5f9   :  { %3211 = vtanh.f32 %v4121_v60 }
 0x603   :  { %v3212_v62 = vpop.eup %3211 }
 0x604   :  { %v4124_v5 = vmul.f32 %v3212_v62, %v1080_v3  ;;  %v3060_v3 = vld [vmem:[%s5068_s4 + $0x2c] ss:$16 sps:$4 sm:$0xff]   ;;  %v3055_v62 = vld [vmem:[%s5068_s4 + $0x20] ss:$16 sps:$4 sm:$0xff]  }
 0x606   :  { %v1087_v6 = vpack.c.bf16 %v4124_v5, %v4124_v5 }
 0x608   :  { %1121 = vmatmul.mubr.bf16.vlgmr.msra.gmra.mrb[40].mxu0 %v1087_v6  ;;  %1162 = vmatmul.mubr.bf16.vlgmr.msra.gmra.mrb[40].mxu1 %v1087_v6  ;;  %v3058_v6 = vld [vmem:[%s5068_s4 + $0x28] ss:$16 sps:$4 sm:$0xff]  }
 0x609   :  { %1194 = vmatpush1.bf16.msra.mxu0 %v4005_v47  ;;  %1235 = vmatpush1.bf16.msra.mxu1 %v4011_v14  ;;  %v3338_v47 = vld [vmem:[%s5066_s2 + $0xcc] ss:$16 sps:$4 sm:$0xff]   ;;  %v3339_v14 = vld [vmem:[%s5066_s2 + $0xc0] ss:$16 sps:$4 sm:$0xff]  }
 0x60a   :  { %1195 = vmatprep.subr.bf16.mxu0 %v4017_v48  ;;  %1236 = vmatprep.subr.bf16.mxu1 %v4023_v41  ;;  %v3340_v48 = vld [vmem:[%s5066_s2 + $0xc8] ss:$16 sps:$4 sm:$0xff]   ;;  %v3341_v41 = vld [vmem:[%s5066_s2 + $0xe4] ss:$16 sps:$4 sm:$0xff]  }
 0x60b   :  { %1225 = vmatprep.mubr.bf16.mxu0 %v5104_v43  ;;  %1266 = vmatprep.mubr.bf16.mxu1 %v5104_v43 }
 0x60d   :  { %1196 = vmatpush1.bf16.msra.mxu0 %v4031_v50  ;;  %1237 = vmatpush1.bf16.msra.mxu1 %v4037_v52  ;;  %v3342_v50 = vld [vmem:[%s5066_s2 + $0xec] ss:$16 sps:$4 sm:$0xff]   ;;  %v3343_v52 = vld [vmem:[%s5066_s2 + $0xe0] ss:$16 sps:$4 sm:$0xff]  }
 0x60e   :  { %1197 = vmatprep.subr.bf16.mxu0 %v4043_v51  ;;  %1238 = vmatprep.subr.bf16.mxu1 %v4049_v54  ;;  %v3344_v51 = vld [vmem:[%s5066_s2 + $0xe8] ss:$16 sps:$4 sm:$0xff]   ;;  %v3051_v54 = vld [vmem:[%s5068_s4 + $0x4] ss:$16 sps:$4 sm:$0xff]  }
 0x611   :  { %1198 = vmatpush1.bf16.msra.mxu0 %v4055_v10  ;;  %1239 = vmatpush1.bf16.msra.mxu1 %v4061_v11  ;;  %v3054_v10 = vld [vmem:[%s5068_s4 + $0xc] ss:$16 sps:$4 sm:$0xff]  }
 0x612   :  { %1199 = vmatprep.subr.bf16.mxu0 %v4067_v12  ;;  %1240 = vmatprep.subr.bf16.mxu1 %v4073_v13  ;;  %v5118_v13 = vld [vmem:[#allocation16_spill] sm:$0xff] }
 0x615   :  { %1200 = vmatpush1.bf16.msra.mxu0 %v4079_v15  ;;  %1241 = vmatpush1.bf16.msra.mxu1 %v4085_v16  ;;  %v5119_v16 = vld [vmem:[#allocation17_spill] sm:$0xff] }
 0x616   :  { %1201 = vmatprep.subr.bf16.mxu0 %v4091_v17  ;;  %1242 = vmatprep.subr.bf16.mxu1 %v4097_v18 }
 0x619   :  { %1202 = vmatpush1.bf16.msra.mxu0 %v3331_v7  ;;  %1243 = vmatpush1.bf16.msra.mxu1 %v3332_v45  ;;  %v3063_v7 = vld [vmem:[%s5068_s4 + $0x44] ss:$16 sps:$4 sm:$0xff]   ;;  %v3066_v45 = vld [vmem:[%s5068_s4 + $0x4c] ss:$16 sps:$4 sm:$0xff]  }
 0x61a   :  { %1203 = vmatprep.subr.bf16.mxu0 %v3333_v63  ;;  %1244 = vmatprep.subr.bf16.mxu1 %v3334_v25  ;;  %v3061_v63 = vld [vmem:[%s5068_s4 + $0x40] ss:$16 sps:$4 sm:$0xff]   ;;  %v3064_v25 = vld [vmem:[%s5068_s4 + $0x48] ss:$16 sps:$4 sm:$0xff]  }
 0x61d   :  { %1204 = vmatpush1.bf16.msra.mxu0 %v3335_v57  ;;  %1245 = vmatpush1.bf16.msra.mxu1 %v3336_v0  ;;  %v3069_v57 = vld [vmem:[%s5068_s4 + $0x64] ss:$16 sps:$4 sm:$0xff]   ;;  %v3072_v0 = vld [vmem:[%s5068_s4 + $0x6c] ss:$16 sps:$4 sm:$0xff]  }
 0x61e   :  { %1205 = vmatprep.subr.bf16.mxu0 %v3337_v44  ;;  %1246 = vmatprep.subr.bf16.mxu1 %v3338_v47  ;;  %v3067_v44 = vld [vmem:[%s5068_s4 + $0x60] ss:$16 sps:$4 sm:$0xff]   ;;  %v3070_v47 = vld [vmem:[%s5068_s4 + $0x68] ss:$16 sps:$4 sm:$0xff]  }
 0x621   :  { %1206 = vmatpush1.bf16.msra.mxu0 %v3339_v14  ;;  %1247 = vmatpush1.bf16.msra.mxu1 %v3340_v48  ;;  %v3075_v14 = vld [vmem:[%s5068_s4 + $0x84] ss:$16 sps:$4 sm:$0xff]   ;;  %v3078_v48 = vld [vmem:[%s5068_s4 + $0x8c] ss:$16 sps:$4 sm:$0xff]  }
 0x622   :  { %1207 = vmatprep.subr.bf16.mxu0 %v3341_v41  ;;  %1248 = vmatprep.subr.bf16.mxu1 %v3342_v50  ;;  %v3073_v41 = vld [vmem:[%s5068_s4 + $0x80] ss:$16 sps:$4 sm:$0xff]   ;;  %v3076_v50 = vld [vmem:[%s5068_s4 + $0x88] ss:$16 sps:$4 sm:$0xff]  }
 0x625   :  { %1208 = vmatpush1.bf16.msra.mxu0 %v3343_v52  ;;  %1249 = vmatpush1.bf16.msra.mxu1 %v3344_v51  ;;  %v3081_v52 = vld [vmem:[%s5068_s4 + $0xa4] ss:$16 sps:$4 sm:$0xff]   ;;  %v3084_v51 = vld [vmem:[%s5068_s4 + $0xac] ss:$16 sps:$4 sm:$0xff]  }
 0x626   :  { %1536 = vmatprep.subr.bf16.mxu0 %v3051_v54  ;;  %1609 = vmatprep.subr.bf16.mxu1 %v3054_v10  ;;  %v3079_v54 = vld [vmem:[%s5068_s4 + $0xa0] ss:$16 sps:$4 sm:$0xff]   ;;  %v3082_v10 = vld [vmem:[%s5068_s4 + $0xa8] ss:$16 sps:$4 sm:$0xff]  }
 0x6db   :  { %v1122_v11 = vpop.f32.mrb[40].mxu0  ;;  %v1163_v12 = vpop.f32.mrb[40].mxu1 }
 0x6dc   :  { %v1170_v15 = vadd.f32 %v1122_v11, %v5118_v13  ;;  %v1172_v17 = vadd.f32 %v1163_v12, %v5119_v16  ;;  %v1124_v18 = vpop.f32.mrb[41].mxu0  ;;  %v1165_v26 = vpop.f32.mrb[41].mxu1  ;;  %v3087_v11 = vld [vmem:[%s5068_s4 + $0xc4] ss:$16 sps:$4 sm:$0xff]   ;;  %v3090_v12 = vld [vmem:[%s5068_s4 + $0xcc] ss:$16 sps:$4 sm:$0xff]  }
 0x6dd   :  { %v1171_v28 = vadd.f32 %v1124_v18, %v5120_v27  ;;  %v1173_v30 = vadd.f32 %v1165_v26, %v5121_v29  ;;  %v1126_v31 = vpop.f32.mrb[42].mxu0  ;;  %v1167_v32 = vpop.f32.mrb[42].mxu1  ;;  %v3085_v13 = vld [vmem:[%s5068_s4 + $0xc0] ss:$16 sps:$4 sm:$0xff]   ;;  %v3093_v16 = vld [vmem:[%s5068_s4 + $0xe4] ss:$16 sps:$4 sm:$0xff]   ;;  %v2955_v27 = vpack.c.bf16 %v3850_v61, %v3804_v56  ;;  %v2957_v29 = vpack.c.bf16 %v4124_v5, %v3998_v46 }
 0x6de   :  { %v1174_v33 = vmul.f32 0.5, %v1170_v15  ;;  %v1127_v35 = vpop.f32.mrb[43].mxu0  ;;  %v1168_v36 = vpop.f32.mrb[43].mxu1  ;;  %v1176_v38 = vmul.f32 0.5, %v1172_v17  ;;  %v3088_v15 = vld [vmem:[%s5068_s4 + $0xc8] ss:$16 sps:$4 sm:$0xff]  }
 0x6df   :  { %v1175_v37 = vmul.f32 0.5, %v1171_v28  ;;  %v3096_v17 = vld [vmem:[%s5068_s4 + $0xec] ss:$16 sps:$4 sm:$0xff]   ;;  %v3091_v18 = vld [vmem:[%s5068_s4 + $0xe0] ss:$16 sps:$4 sm:$0xff]   ;;  %v2956_v28 = vpack.c.bf16 %v3942_v53, %v3896_v49 }
 0x6e0   :  { %3213 = vtanh.f32 %v1174_v33  ;;  %v3094_v26 = vld [vmem:[%s5068_s4 + $0xe8] ss:$16 sps:$4 sm:$0xff]   ;;  %v4313_v56 = vld [vmem:[%s5069_s5 + $0x4] ss:$16 sps:$4 sm:$0xff]   ;;  %v4318_v61 = vld [vmem:[%s5069_s5 + $0xc] ss:$16 sps:$4 sm:$0xff]  }
 0x6e1   :  { %3215 = vtanh.f32 %v1175_v37  ;;  %v4324_v49 = vld [vmem:[%s5069_s5] ss:$16 sps:$4 sm:$0xff]   ;;  %v4329_v53 = vld [vmem:[%s5069_s5 + $0x8] ss:$16 sps:$4 sm:$0xff]   ;;  %v4337_v46 = vld [vmem:[%s5069_s5 + $0x24] ss:$16 sps:$4 sm:$0xff]  }
 0x6e2   :  { %3217 = vtanh.f32 %v1173_v30  ;;  %v4342_v5 = vld [vmem:[%s5069_s5 + $0x2c] ss:$16 sps:$4 sm:$0xff]   ;;  %v4347_v30 = vld [vmem:[%s5069_s5 + $0x20] ss:$16 sps:$4 sm:$0xff]   ;;  %v4352_v31 = vld [vmem:[%s5069_s5 + $0x28] ss:$16 sps:$4 sm:$0xff]  }
 0x6e3   :  { %3219 = vtanh.f32 %v1176_v38  ;;  %v4361_v32 = vld [vmem:[%s5069_s5 + $0x44] ss:$16 sps:$4 sm:$0xff]   ;;  %v4366_v33 = vld [vmem:[%s5069_s5 + $0x4c] ss:$16 sps:$4 sm:$0xff]   ;;  %v4371_v35 = vld [vmem:[%s5069_s5 + $0x40] ss:$16 sps:$4 sm:$0xff]  }
 0x6e4   :  { %v4376_v36 = vld [vmem:[%s5069_s5 + $0x48] ss:$16 sps:$4 sm:$0xff]   ;;  %v4383_v37 = vld [vmem:[%s5069_s5 + $0x64] ss:$16 sps:$4 sm:$0xff]   ;;  %v4388_v38 = vld [vmem:[%s5069_s5 + $0x6c] ss:$16 sps:$4 sm:$0xff]  }
 0x6ea   :  { %v3214_v19 = vpop.eup %3213 }
 0x6eb   :  { %v1180_v39 = vadd.f32 1.0, %v3214_v19  ;;  %v3216_v20 = vpop.eup %3215  ;;  %v4395_v19 = vld [vmem:[%s5069_s5 + $0x60] ss:$16 sps:$4 sm:$0xff]  }
 0x6ec   :  { %v1181_v21 = vadd.f32 1.0, %v3216_v20  ;;  %v3218_v8 = vpop.eup %3217  ;;  %v4409_v20 = vld [vmem:[%s5069_s5 + $0x84] ss:$16 sps:$4 sm:$0xff]  }
 0x6ed   :  { %v1183_v40 = vmul.f32 0.5, %v1180_v39  ;;  %v3220_v1 = vpop.eup %3219  ;;  %v4400_v39 = vld [vmem:[%s5069_s5 + $0x68] ss:$16 sps:$4 sm:$0xff]  }
 0x6ee   :  { %v1184_v9 = vmul.f32 0.5, %v1181_v21  ;;  %v1182_v55 = vadd.f32 1.0, %v3220_v1  ;;  %v4419_v21 = vld [vmem:[%s5069_s5 + $0x80] ss:$16 sps:$4 sm:$0xff]   ;;  %v4448_v1 = vld [vmem:[%s5069_s5 + $0xa8] ss:$16 sps:$4 sm:$0xff]  }
 0x6ef   :  { %v1188_v22 = vmul.f32 %v3218_v8, %v1183_v40  ;;  %v4414_v40 = vld [vmem:[%s5069_s5 + $0x8c] ss:$16 sps:$4 sm:$0xff]   ;;  %v4424_v8 = vld [vmem:[%s5069_s5 + $0x88] ss:$16 sps:$4 sm:$0xff]  }
 0x6f0   :  { %v1187_v23 = vmul.f32 %v1184_v9, %v4121_v60  ;;  %v1185_v42 = vmul.f32 0.5, %v1182_v55  ;;  %v4433_v9 = vld [vmem:[%s5069_s5 + $0xa4] ss:$16 sps:$4 sm:$0xff]  }
 0x6f1   :  { %v4457_v55 = vld [vmem:[%s5069_s5 + $0xc4] ss:$16 sps:$4 sm:$0xff]  }
 0x6f2   :  { %v4199_v24 = vadd.f32 %v1188_v22, %v1187_v23  ;;  %v4438_v22 = vld [vmem:[%s5069_s5 + $0xac] ss:$16 sps:$4 sm:$0xff]   ;;  %v4443_v23 = vld [vmem:[%s5069_s5 + $0xa0] ss:$16 sps:$4 sm:$0xff]  }
 0x6f4   :  { %3221 = vtanh.f32 %v4199_v24 }
 0x6fe   :  { %v3222_v2 = vpop.eup %3221 }
 0x6ff   :  { %v4202_v58 = vmul.f32 %v3222_v2, %v1185_v42  ;;  %v4462_v42 = vld [vmem:[%s5069_s5 + $0xcc] ss:$16 sps:$4 sm:$0xff]   ;;  %v4467_v2 = vld [vmem:[%s5069_s5 + $0xc0] ss:$16 sps:$4 sm:$0xff]  }
 0x701   :  { %v1192_v60 = vpack.c.bf16 %v4202_v58, %v4202_v58 }
 0x703   :  { %1226 = vmatmul.mubr.bf16.vlgmr.msra.gmra.mrb[44].mxu0 %v1192_v60  ;;  %1267 = vmatmul.mubr.bf16.vlgmr.msra.gmra.mrb[44].mxu1 %v1192_v60  ;;  %v4486_v60 = vld [vmem:[%s5069_s5 + $0xec] ss:$16 sps:$4 sm:$0xff]  }
 0x704   :  { %1537 = vmatpush1.bf16.msra.mxu0 %v3049_v34  ;;  %1610 = vmatpush1.bf16.msra.mxu1 %v3052_v59  ;;  %v4472_v34 = vld [vmem:[%s5069_s5 + $0xc8] ss:$16 sps:$4 sm:$0xff]   ;;  %v4481_v59 = vld [vmem:[%s5069_s5 + $0xe4] ss:$16 sps:$4 sm:$0xff]  }
 0x705   :  { %1538 = vmatprep.subr.bf16.mxu0 %v3057_v4  ;;  %1611 = vmatprep.subr.bf16.mxu1 %v3060_v3  ;;  %v4491_v4 = vld [vmem:[%s5069_s5 + $0xe0] ss:$16 sps:$4 sm:$0xff]   ;;  %v4496_v3 = vld [vmem:[%s5069_s5 + $0xe8] ss:$16 sps:$4 sm:$0xff]  }
 0x706   :  { %1568 = vmatprep.mubr.bf16.mxu0 %v5104_v43  ;;  %1641 = vmatprep.mubr.bf16.mxu1 %v5104_v43 }
 0x708   :  { %1539 = vmatpush1.bf16.msra.mxu0 %v3055_v62  ;;  %1612 = vmatpush1.bf16.msra.mxu1 %v3058_v6 }
 0x709   :  { %1540 = vmatprep.subr.bf16.mxu0 %v3063_v7  ;;  %1613 = vmatprep.subr.bf16.mxu1 %v3066_v45  ;;  %v5122_v7 = vld [vmem:[#allocation20_spill] sm:$0xff] }
 0x70c   :  { %1541 = vmatpush1.bf16.msra.mxu0 %v3061_v63  ;;  %1614 = vmatpush1.bf16.msra.mxu1 %v3064_v25  ;;  %v5123_v63 = vld [vmem:[#allocation21_spill] sm:$0xff] }
 0x70d   :  { %1542 = vmatprep.subr.bf16.mxu0 %v3069_v57  ;;  %1615 = vmatprep.subr.bf16.mxu1 %v3072_v0 }
 0x710   :  { %1543 = vmatpush1.bf16.msra.mxu0 %v3067_v44  ;;  %1616 = vmatpush1.bf16.msra.mxu1 %v3070_v47  ;;  %v5124_v44 = vld [vmem:[#allocation22_spill] sm:$0xff] }
 0x711   :  { %1544 = vmatprep.subr.bf16.mxu0 %v3075_v14  ;;  %1617 = vmatprep.subr.bf16.mxu1 %v3078_v48  ;;  %v5125_v14 = vld [vmem:[#allocation23_spill] sm:$0xff] }
 0x714   :  { %1545 = vmatpush1.bf16.msra.mxu0 %v3073_v41  ;;  %1618 = vmatpush1.bf16.msra.mxu1 %v3076_v50 }
 0x715   :  { %1546 = vmatprep.subr.bf16.mxu0 %v3081_v52  ;;  %1619 = vmatprep.subr.bf16.mxu1 %v3084_v51 }
 0x718   :  { %1547 = vmatpush1.bf16.msra.mxu0 %v3079_v54  ;;  %1620 = vmatpush1.bf16.msra.mxu1 %v3082_v10 }
 0x719   :  { %1548 = vmatprep.subr.bf16.mxu0 %v3087_v11  ;;  %1621 = vmatprep.subr.bf16.mxu1 %v3090_v12 }
 0x71c   :  { %1549 = vmatpush1.bf16.msra.mxu0 %v3085_v13  ;;  %1622 = vmatpush1.bf16.msra.mxu1 %v3088_v15 }
 0x71d   :  { %1550 = vmatprep.subr.bf16.mxu0 %v3093_v16  ;;  %1623 = vmatprep.subr.bf16.mxu1 %v3096_v17 }
 0x720   :  { %1551 = vmatpush1.bf16.msra.mxu0 %v3091_v18  ;;  %1624 = vmatpush1.bf16.msra.mxu1 %v3094_v26 }
 0x721   :  { %1874 = vmatprep.subr.bf16.mxu0 %v4313_v56  ;;  %1915 = vmatprep.subr.bf16.mxu1 %v4318_v61 }
 0x723   :  { %1569 = vmatmul.mubr.bf16.vlgmr.msra.gmra.mrb[48].mxu0 %v2955_v27  ;;  %1642 = vmatmul.mubr.bf16.vlgmr.msra.gmra.mrb[48].mxu1 %v2955_v27 }
 0x724   :  { %1578 = vmatprep.mubr.bf16.mxu0 %v5104_v43  ;;  %1651 = vmatprep.mubr.bf16.mxu1 %v5104_v43 }
 0x725   :  { %1875 = vmatpush1.bf16.msra.mxu0 %v4324_v49  ;;  %1916 = vmatpush1.bf16.msra.mxu1 %v4329_v53 }
 0x726   :  { %1876 = vmatprep.subr.bf16.mxu0 %v4337_v46  ;;  %1917 = vmatprep.subr.bf16.mxu1 %v4342_v5 }
 0x729   :  { %1877 = vmatpush1.bf16.msra.mxu0 %v4347_v30  ;;  %1918 = vmatpush1.bf16.msra.mxu1 %v4352_v31 }
 0x72a   :  { %1878 = vmatprep.subr.bf16.mxu0 %v4361_v32  ;;  %1919 = vmatprep.subr.bf16.mxu1 %v4366_v33 }
 0x72b   :  { %1579 = vmatmul.mubr.bf16.gmra.mrb[52].mxu0 %v2956_v28  ;;  %1652 = vmatmul.mubr.bf16.gmra.mrb[52].mxu1 %v2956_v28 }
 0x72c   :  { %1588 = vmatprep.mubr.bf16.mxu0 %v5104_v43  ;;  %1661 = vmatprep.mubr.bf16.mxu1 %v5104_v43 }
 0x72d   :  { %1879 = vmatpush1.bf16.msra.mxu0 %v4371_v35  ;;  %1920 = vmatpush1.bf16.msra.mxu1 %v4376_v36 }
 0x72e   :  { %1880 = vmatprep.subr.bf16.mxu0 %v4383_v37  ;;  %1921 = vmatprep.subr.bf16.mxu1 %v4388_v38 }
 0x731   :  { %1881 = vmatpush1.bf16.msra.mxu0 %v4395_v19  ;;  %1922 = vmatpush1.bf16.msra.mxu1 %v4400_v39 }
 0x732   :  { %1882 = vmatprep.subr.bf16.mxu0 %v4409_v20  ;;  %1923 = vmatprep.subr.bf16.mxu1 %v4414_v40 }
 0x733   :  { %1589 = vmatmul.mubr.bf16.gmra.mrb[56].mxu0 %v2957_v29  ;;  %1662 = vmatmul.mubr.bf16.gmra.mrb[56].mxu1 %v2957_v29 }
 0x734   :  { %1598 = vmatprep.mubr.bf16.mxu0 %v5104_v43  ;;  %1671 = vmatprep.mubr.bf16.mxu1 %v5104_v43 }
 0x735   :  { %1883 = vmatpush1.bf16.msra.mxu0 %v4419_v21  ;;  %1924 = vmatpush1.bf16.msra.mxu1 %v4424_v8 }
 0x736   :  { %1884 = vmatprep.subr.bf16.mxu0 %v4433_v9  ;;  %1925 = vmatprep.subr.bf16.mxu1 %v4438_v22 }
 0x739   :  { %1885 = vmatpush1.bf16.msra.mxu0 %v4443_v23  ;;  %1926 = vmatpush1.bf16.msra.mxu1 %v4448_v1 }
 0x73a   :  { %1886 = vmatprep.subr.bf16.mxu0 %v4457_v55  ;;  %1927 = vmatprep.subr.bf16.mxu1 %v4462_v42 }
 0x73d   :  { %1887 = vmatpush1.bf16.msra.mxu0 %v4467_v2  ;;  %1928 = vmatpush1.bf16.msra.mxu1 %v4472_v34 }
 0x73e   :  { %1888 = vmatprep.subr.bf16.mxu0 %v4481_v59  ;;  %1929 = vmatprep.subr.bf16.mxu1 %v4486_v60 }
 0x741   :  { %1889 = vmatpush1.bf16.msra.mxu0 %v4491_v4  ;;  %1930 = vmatpush1.bf16.msra.mxu1 %v4496_v3 }
 0x742   :  { %1979 = vmatprep.subr.bf16.mxu0 %v4313_v56  ;;  %2020 = vmatprep.subr.bf16.mxu1 %v4318_v61 }
 0x7d6   :  { %v1227_v62 = vpop.f32.mrb[44].mxu0  ;;  %v1268_v6 = vpop.f32.mrb[44].mxu1 }
 0x7d7   :  { %v1275_v45 = vadd.f32 %v1227_v62, %v5122_v7  ;;  %v1277_v25 = vadd.f32 %v1268_v6, %v5123_v63  ;;  %v1229_v57 = vpop.f32.mrb[45].mxu0  ;;  %v1270_v0 = vpop.f32.mrb[45].mxu1 }
 0x7d8   :  { %v1276_v47 = vadd.f32 %v1229_v57, %v5124_v44  ;;  %v1278_v48 = vadd.f32 %v1270_v0, %v5125_v14  ;;  %v1231_v41 = vpop.f32.mrb[46].mxu0  ;;  %v1272_v50 = vpop.f32.mrb[46].mxu1 }
 0x7d9   :  { %v1279_v52 = vmul.f32 0.5, %v1275_v45  ;;  %v1232_v51 = vpop.f32.mrb[47].mxu0  ;;  %v1273_v54 = vpop.f32.mrb[47].mxu1  ;;  %v1281_v11 = vmul.f32 0.5, %v1277_v25 }
 0x7da   :  { %v1280_v10 = vmul.f32 0.5, %v1276_v47 }
 0x7db   :  { %3223 = vtanh.f32 %v1279_v52 }
 0x7dc   :  { %3225 = vtanh.f32 %v1280_v10 }
 0x7dd   :  { %3227 = vtanh.f32 %v1278_v48 }
 0x7de   :  { %3229 = vtanh.f32 %v1281_v11 }
 0x7e5   :  { %v3224_v12 = vpop.eup %3223 }
 0x7e6   :  { %v1285_v13 = vadd.f32 1.0, %v3224_v12  ;;  %v3226_v15 = vpop.eup %3225 }
 0x7e7   :  { %v1286_v17 = vadd.f32 1.0, %v3226_v15  ;;  %v3228_v18 = vpop.eup %3227 }
 0x7e8   :  { %v1288_v16 = vmul.f32 0.5, %v1285_v13  ;;  %v3230_v62 = vpop.eup %3229 }
 0x7e9   :  { %v1289_v26 = vmul.f32 0.5, %v1286_v17  ;;  %v1287_v6 = vadd.f32 1.0, %v3230_v62 }
 0x7ea   :  { %v1293_v27 = vmul.f32 %v3228_v18, %v1288_v16 }
 0x7eb   :  { %v1292_v28 = vmul.f32 %v1289_v26, %v4199_v24  ;;  %v1290_v44 = vmul.f32 0.5, %v1287_v6 }
 0x7ed   :  { %v1294_v29 = vadd.f32 %v1293_v27, %v1292_v28 }
 0x7ef   :  { %3231 = vtanh.f32 %v1294_v29  ;;  %v1330_v29 = vld [vmem:[%s5070_s6] sm:$0xf] }
 0x7f6   :  { %v4509_v7 = vpop.f32.mrb[48].mxu0  ;;  %v4511_v45 = vpop.f32.mrb[48].mxu1 }
 0x7f7   :  { %v4513_v63 = vpop.f32.mrb[49].mxu0  ;;  %v4515_v25 = vpop.f32.mrb[49].mxu1 }
 0x7f8   :  { %v4517_v57 = vpop.f32.mrb[50].mxu0  ;;  %v4519_v0 = vpop.f32.mrb[50].mxu1 }
 0x7f9   :  { %v4521_v47 = vpop.f32.mrb[51].mxu0  ;;  %v4523_v24 = vpop.f32.mrb[51].mxu1 }
 0x7fa   :  { %v3232_v14 = vpop.eup %3231 }
 0x7fb   :  { %v1296_v48 = vmul.f32 %v3232_v14, %v1290_v44 }
 0x7fd   :  { %v2958_v41 = vpack.c.bf16 %v1296_v48, %v4202_v58 }
 0x7fe   :  { %v4526_v50 = vpop.f32.mrb[52].mxu0  ;;  %v4528_v52 = vpop.f32.mrb[52].mxu1 }
 0x7ff   :  { %5126 = vst [vmem:[#allocation3_spill] sm:$0xff] %v4526_v50  ;;  %5127 = vst [vmem:[#allocation4_spill] sm:$0xff] %v4528_v52  ;;  %v4530_v51 = vpop.f32.mrb[53].mxu0  ;;  %1599 = vmatmul.mubr.bf16.gmra.mrb[60].mxu0 %v2958_v41  ;;  %v4532_v54 = vpop.f32.mrb[53].mxu1  ;;  %1672 = vmatmul.mubr.bf16.gmra.mrb[60].mxu1 %v2958_v41 }
 0x800   :  { %5128 = vst [vmem:[#allocation5_spill] sm:$0xff] %v4530_v51  ;;  %5129 = vst [vmem:[#allocation6_spill] sm:$0xff] %v4532_v54  ;;  %v4534_v10 = vpop.f32.mrb[54].mxu0  ;;  %v4536_v11 = vpop.f32.mrb[54].mxu1  ;;  %1906 = vmatprep.mubr.bf16.mxu0 %v5104_v43  ;;  %1947 = vmatprep.mubr.bf16.mxu1 %v5104_v43 }
 0x801   :  { %5130 = vst [vmem:[#allocation7_spill] sm:$0xff] %v4534_v10  ;;  %5131 = vst [vmem:[#allocation8_spill] sm:$0xff] %v4536_v11  ;;  %v4540_v12 = vpop.f32.mrb[55].mxu0  ;;  %v4542_v58 = vpop.f32.mrb[55].mxu1 }
 0x802   :  { %5132 = vst [vmem:[#allocation9_spill] sm:$0xff] %v4540_v12  ;;  %5133 = vst [vmem:[#allocation10_spill] sm:$0xff] %v4542_v58 }
 0x806   :  { %v4544_v13 = vpop.f32.mrb[56].mxu0  ;;  %v4546_v15 = vpop.f32.mrb[56].mxu1 }
 0x807   :  { %5134 = vst [vmem:[#allocation11_spill] sm:$0xff] %v4544_v13  ;;  %5135 = vst [vmem:[#allocation12_spill] sm:$0xff] %v4546_v15  ;;  %v4548_v16 = vpop.f32.mrb[57].mxu0  ;;  %v4550_v17 = vpop.f32.mrb[57].mxu1  ;;  %1907 = vmatmul.mubr.bf16.vlgmr.msra.gmra.mrb[64].mxu0 %v5104_v43  ;;  %1948 = vmatmul.mubr.bf16.vlgmr.msra.gmra.mrb[64].mxu1 %v5104_v43 }
 0x808   :  { %5136 = vst [vmem:[#allocation13_spill] sm:$0xff] %v4548_v16  ;;  %5137 = vst [vmem:[#allocation14_spill] sm:$0xff] %v4550_v17  ;;  %v4554_v18 = vpop.f32.mrb[58].mxu0  ;;  %v4556_v26 = vpop.f32.mrb[58].mxu1  ;;  %1980 = vmatpush1.bf16.msra.mxu0 %v4324_v49  ;;  %2021 = vmatpush1.bf16.msra.mxu1 %v4329_v53 }
 0x809   :  { %5138 = vst [vmem:[#allocation15_spill] sm:$0xff] %v4554_v18  ;;  %5139 = vst [vmem:[#allocation16_spill] sm:$0xff] %v4556_v26  ;;  %v4560_v27 = vpop.f32.mrb[59].mxu0  ;;  %v4562_v28 = vpop.f32.mrb[59].mxu1  ;;  %1981 = vmatprep.subr.bf16.mxu0 %v4337_v46  ;;  %2022 = vmatprep.subr.bf16.mxu1 %v4342_v5 }
 0x80a   :  { %5140 = vst [vmem:[#allocation17_spill] sm:$0xff] %v4560_v27  ;;  %5141 = vst [vmem:[#allocation18_spill] sm:$0xff] %v4562_v28  ;;  %2011 = vmatprep.mubr.bf16.mxu0 %v5104_v43  ;;  %2052 = vmatprep.mubr.bf16.mxu1 %v5104_v43  ;;  %v5148_v28 = vld [vmem:[#allocation2_spill] sm:$0xff] }
 0x80b   :  { %v5149_v27 = vsub.s32 0, %v5148_v28  ;;  %v5150_v18 = vsub.s32 2, %v5148_v28 }
 0x80c   :  { %1982 = vmatpush1.bf16.msra.mxu0 %v4347_v30  ;;  %2023 = vmatpush1.bf16.msra.mxu1 %v4352_v31 }
 0x80d   :  { %1983 = vmatprep.subr.bf16.mxu0 %v4361_v32  ;;  %2024 = vmatprep.subr.bf16.mxu1 %v4366_v33  ;;  %v4613_v26 = vrot.slane %v1330_v29, %v5149_v27  ;;  %v4617_v17 = vrot.slane %v1330_v29, %v5150_v18 }
 0x80f   :  { %v1571_v27 = vadd.f32 %v4509_v7, %v4613_v26 }
 0x810   :  { %1984 = vmatpush1.bf16.msra.mxu0 %v4371_v35  ;;  %2025 = vmatpush1.bf16.msra.mxu1 %v4376_v36 }
 0x811   :  { %1985 = vmatprep.subr.bf16.mxu0 %v4383_v37  ;;  %2026 = vmatprep.subr.bf16.mxu1 %v4388_v38 }
 0x814   :  { %1986 = vmatpush1.bf16.msra.mxu0 %v4395_v19  ;;  %2027 = vmatpush1.bf16.msra.mxu1 %v4400_v39 }
 0x815   :  { %1987 = vmatprep.subr.bf16.mxu0 %v4409_v20  ;;  %2028 = vmatprep.subr.bf16.mxu1 %v4414_v40 }
 0x818   :  { %1988 = vmatpush1.bf16.msra.mxu0 %v4419_v21  ;;  %2029 = vmatpush1.bf16.msra.mxu1 %v4424_v8 }
 0x819   :  { %1989 = vmatprep.subr.bf16.mxu0 %v4433_v9  ;;  %2030 = vmatprep.subr.bf16.mxu1 %v4438_v22 }
 0x81c   :  { %1990 = vmatpush1.bf16.msra.mxu0 %v4443_v23  ;;  %2031 = vmatpush1.bf16.msra.mxu1 %v4448_v1 }
 0x81d   :  { %1991 = vmatprep.subr.bf16.mxu0 %v4457_v55  ;;  %2032 = vmatprep.subr.bf16.mxu1 %v4462_v42 }
 0x820   :  { %1992 = vmatpush1.bf16.msra.mxu0 %v4467_v2  ;;  %2033 = vmatpush1.bf16.msra.mxu1 %v4472_v34 }
 0x821   :  { %1993 = vmatprep.subr.bf16.mxu0 %v4481_v59  ;;  %2034 = vmatprep.subr.bf16.mxu1 %v4486_v60 }
 0x824   :  { %1994 = vmatpush1.bf16.msra.mxu0 %v4491_v4  ;;  %2035 = vmatpush1.bf16.msra.mxu1 %v4496_v3 }
 0x825   :  { %2084 = vmatprep.subr.bf16.mxu0 %v4313_v56  ;;  %2125 = vmatprep.subr.bf16.mxu1 %v4318_v61 }
 0x8d2   :  { %v4599_v62 = vpop.f32.mrb[60].mxu0  ;;  %v4601_v6 = vpop.f32.mrb[60].mxu1 }
 0x8d3   :  { %5142 = vst [vmem:[#allocation19_spill] sm:$0xff] %v4599_v62  ;;  %5143 = vst [vmem:[#allocation20_spill] sm:$0xff] %v4601_v6  ;;  %v4603_v44 = vpop.f32.mrb[61].mxu0  ;;  %v4605_v14 = vpop.f32.mrb[61].mxu1 }
 0x8d4   :  { %5144 = vst [vmem:[#allocation21_spill] sm:$0xff] %v4603_v44  ;;  %5145 = vst [vmem:[#allocation22_spill] sm:$0xff] %v4605_v14  ;;  %v4607_v48 = vpop.f32.mrb[62].mxu0  ;;  %v4609_v41 = vpop.f32.mrb[62].mxu1  ;;  %v5153_v44 = vsub.s32 1, %v5148_v28 }
 0x8d5   :  { %5146 = vst [vmem:[#allocation23_spill] sm:$0xff] %v4607_v48  ;;  %5147 = vst [vmem:[#allocation24_spill] sm:$0xff] %v4609_v41  ;;  %v4619_v16 = vpop.f32.mrb[63].mxu0  ;;  %v4621_v62 = vpop.f32.mrb[63].mxu1  ;;  %v5154_v48 = vsub.s32 3, %v5148_v28  ;;  %v1644_v41 = vadd.f32 %v4511_v45, %v4617_v17 }
 0x8d6   :  { %5151 = vst [vmem:[#allocation2_spill] sm:$0xff] %v4619_v16  ;;  %5152 = vst [vmem:[#allocation25_spill] sm:$0xff] %v4621_v62  ;;  %v4625_v6 = vrot.slane %v1330_v29, %v5153_v44 }
 0x8d7   :  { %v4629_v14 = vrot.slane %v1330_v29, %v5154_v48 }
 0x8d8   :  { %v1573_v18 = vadd.f32 %v4513_v63, %v4625_v6 }
 0x8d9   :  { %v1646_v62 = vadd.f32 %v4515_v25, %v4629_v14 }
 0x8da   :  { %v1908_v16 = vpop.f32.mrb[64].mxu0  ;;  %v1949_v15 = vpop.f32.mrb[64].mxu1 }
 0x8db   :  { %v1956_v44 = vadd.f32 %v1908_v16, %v1571_v27  ;;  %v1958_v13 = vadd.f32 %v1949_v15, %v1644_v41  ;;  %v1910_v58 = vpop.f32.mrb[65].mxu0  ;;  %v1951_v28 = vpop.f32.mrb[65].mxu1 }
 0x8dc   :  { %v1957_v29 = vadd.f32 %v1910_v58, %v1573_v18  ;;  %v1959_v48 = vadd.f32 %v1951_v28, %v1646_v62  ;;  %v1912_v12 = vpop.f32.mrb[66].mxu0  ;;  %v1953_v11 = vpop.f32.mrb[66].mxu1 }
 0x8dd   :  { %v1960_v7 = vmul.f32 0.5, %v1956_v44  ;;  %v1913_v10 = vpop.f32.mrb[67].mxu0  ;;  %v1954_v54 = vpop.f32.mrb[67].mxu1  ;;  %v1962_v63 = vmul.f32 0.5, %v1958_v13  ;;  %v1650_v44 = vadd.f32 %v4523_v24, %v4629_v14 }
 0x8de   :  { %v1961_v45 = vmul.f32 0.5, %v1957_v29 }
 0x8df   :  { %3233 = vtanh.f32 %v1960_v7 }
 0x8e0   :  { %3235 = vtanh.f32 %v1961_v45 }
 0x8e1   :  { %3237 = vtanh.f32 %v1959_v48 }
 0x8e2   :  { %3239 = vtanh.f32 %v1962_v63 }
 0x8e9   :  { %v3234_v51 = vpop.eup %3233 }
 0x8ea   :  { %v1966_v25 = vadd.f32 1.0, %v3234_v51  ;;  %v3236_v52 = vpop.eup %3235  ;;  %v1577_v51 = vadd.f32 %v4521_v47, %v4625_v6 }
 0x8eb   :  { %v1967_v15 = vadd.f32 1.0, %v3236_v52  ;;  %v3238_v16 = vpop.eup %3237  ;;  %v1648_v52 = vadd.f32 %v4519_v0, %v4617_v17 }
 0x8ec   :  { %v1969_v50 = vmul.f32 0.5, %v1966_v25  ;;  %v3240_v54 = vpop.eup %3239 }
 0x8ed   :  { %v1970_v41 = vmul.f32 0.5, %v1967_v15  ;;  %v1968_v10 = vadd.f32 1.0, %v3240_v54 }
 0x8ee   :  { %v1974_v58 = vmul.f32 %v3238_v16, %v1969_v50  ;;  %v1575_v50 = vadd.f32 %v4517_v57, %v4613_v26 }
 0x8ef   :  { %v1973_v62 = vmul.f32 0.0, %v1970_v41  ;;  %v1971_v11 = vmul.f32 0.5, %v1968_v10 }
 0x8f1   :  { %v4639_v12 = vadd.f32 %v1974_v58, %v1973_v62 }
 0x8f3   :  { %3241 = vtanh.f32 %v4639_v12 }
 0x8fd   :  { %v3242_v27 = vpop.eup %3241 }
 0x8fe   :  { %v1977_v18 = vmul.f32 %v3242_v27, %v1971_v11 }
 0x900   :  { %v1978_v13 = vpack.c.bf16 %v1977_v18, %v1977_v18 }
 0x902   :  { %2012 = vmatmul.mubr.bf16.vlgmr.msra.gmra.mrb[68].mxu0 %v1978_v13  ;;  %2053 = vmatmul.mubr.bf16.vlgmr.msra.gmra.mrb[68].mxu1 %v1978_v13 }
 0x903   :  { %2085 = vmatpush1.bf16.msra.mxu0 %v4324_v49  ;;  %2126 = vmatpush1.bf16.msra.mxu1 %v4329_v53 }
 0x904   :  { %2086 = vmatprep.subr.bf16.mxu0 %v4337_v46  ;;  %2127 = vmatprep.subr.bf16.mxu1 %v4342_v5 }
 0x905   :  { %2116 = vmatprep.mubr.bf16.mxu0 %v5104_v43  ;;  %2157 = vmatprep.mubr.bf16.mxu1 %v5104_v43 }
 0x907   :  { %2087 = vmatpush1.bf16.msra.mxu0 %v4347_v30  ;;  %2128 = vmatpush1.bf16.msra.mxu1 %v4352_v31 }
 0x908   :  { %2088 = vmatprep.subr.bf16.mxu0 %v4361_v32  ;;  %2129 = vmatprep.subr.bf16.mxu1 %v4366_v33 }
 0x90b   :  { %2089 = vmatpush1.bf16.msra.mxu0 %v4371_v35  ;;  %2130 = vmatpush1.bf16.msra.mxu1 %v4376_v36 }
 0x90c   :  { %2090 = vmatprep.subr.bf16.mxu0 %v4383_v37  ;;  %2131 = vmatprep.subr.bf16.mxu1 %v4388_v38 }
 0x90f   :  { %2091 = vmatpush1.bf16.msra.mxu0 %v4395_v19  ;;  %2132 = vmatpush1.bf16.msra.mxu1 %v4400_v39 }
 0x910   :  { %2092 = vmatprep.subr.bf16.mxu0 %v4409_v20  ;;  %2133 = vmatprep.subr.bf16.mxu1 %v4414_v40 }
 0x913   :  { %2093 = vmatpush1.bf16.msra.mxu0 %v4419_v21  ;;  %2134 = vmatpush1.bf16.msra.mxu1 %v4424_v8 }
 0x914   :  { %2094 = vmatprep.subr.bf16.mxu0 %v4433_v9  ;;  %2135 = vmatprep.subr.bf16.mxu1 %v4438_v22 }
 0x917   :  { %2095 = vmatpush1.bf16.msra.mxu0 %v4443_v23  ;;  %2136 = vmatpush1.bf16.msra.mxu1 %v4448_v1 }
 0x918   :  { %2096 = vmatprep.subr.bf16.mxu0 %v4457_v55  ;;  %2137 = vmatprep.subr.bf16.mxu1 %v4462_v42 }
 0x91b   :  { %2097 = vmatpush1.bf16.msra.mxu0 %v4467_v2  ;;  %2138 = vmatpush1.bf16.msra.mxu1 %v4472_v34 }
 0x91c   :  { %2098 = vmatprep.subr.bf16.mxu0 %v4481_v59  ;;  %2139 = vmatprep.subr.bf16.mxu1 %v4486_v60 }
 0x91f   :  { %2099 = vmatpush1.bf16.msra.mxu0 %v4491_v4  ;;  %2140 = vmatpush1.bf16.msra.mxu1 %v4496_v3 }
 0x920   :  { %2189 = vmatprep.subr.bf16.mxu0 %v4313_v56  ;;  %2230 = vmatprep.subr.bf16.mxu1 %v4318_v61 }
 0x9d5   :  { %v2013_v28 = vpop.f32.mrb[68].mxu0  ;;  %v2054_v29 = vpop.f32.mrb[68].mxu1 }
 0x9d6   :  { %v2061_v48 = vadd.f32 %v2013_v28, %v1575_v50  ;;  %v2063_v7 = vadd.f32 %v2054_v29, %v1648_v52  ;;  %v2015_v45 = vpop.f32.mrb[69].mxu0  ;;  %v2056_v63 = vpop.f32.mrb[69].mxu1 }
 0x9d7   :  { %v2062_v25 = vadd.f32 %v2015_v45, %v1577_v51  ;;  %v2064_v15 = vadd.f32 %v2056_v63, %v1650_v44  ;;  %v2017_v16 = vpop.f32.mrb[70].mxu0  ;;  %v2058_v41 = vpop.f32.mrb[70].mxu1 }
 0x9d8   :  { %v2065_v57 = vmul.f32 0.5, %v2061_v48  ;;  %v2018_v58 = vpop.f32.mrb[71].mxu0  ;;  %v2059_v62 = vpop.f32.mrb[71].mxu1  ;;  %v2067_v47 = vmul.f32 0.5, %v2063_v7  ;;  %v5157_v16 = vld [vmem:[#allocation5_spill] sm:$0xff] }
 0x9d9   :  { %v2066_v0 = vmul.f32 0.5, %v2062_v25  ;;  %v5156_v25 = vld [vmem:[#allocation4_spill] sm:$0xff]  ;;  %v1583_v41 = vadd.f32 %v5157_v16, %v4625_v6 }
 0x9da   :  { %3243 = vtanh.f32 %v2065_v57  ;;  %v5158_v57 = vld [vmem:[#allocation6_spill] sm:$0xff] }
 0x9db   :  { %3245 = vtanh.f32 %v2066_v0  ;;  %v1656_v58 = vadd.f32 %v5158_v57, %v4629_v14 }
 0x9dc   :  { %3247 = vtanh.f32 %v2064_v15  ;;  %v1654_v15 = vadd.f32 %v5156_v25, %v4617_v17 }
 0x9dd   :  { %3249 = vtanh.f32 %v2067_v47 }
 0x9e4   :  { %v3244_v54 = vpop.eup %3243 }
 0x9e5   :  { %v2071_v24 = vadd.f32 1.0, %v3244_v54  ;;  %v3246_v10 = vpop.eup %3245 }
 0x9e6   :  { %v2072_v27 = vadd.f32 1.0, %v3246_v10  ;;  %v3248_v18 = vpop.eup %3247 }
 0x9e7   :  { %v2074_v11 = vmul.f32 0.5, %v2071_v24  ;;  %v3250_v44 = vpop.eup %3249 }
 0x9e8   :  { %v2075_v13 = vmul.f32 0.5, %v2072_v27  ;;  %v2073_v28 = vadd.f32 1.0, %v3250_v44 }
 0x9e9   :  { %v2079_v50 = vmul.f32 %v3248_v18, %v2074_v11 }
 0x9ea   :  { %v2078_v52 = vmul.f32 %v2075_v13, %v4639_v12  ;;  %v2076_v29 = vmul.f32 0.5, %v2073_v28  ;;  %v5155_v12 = vld [vmem:[#allocation3_spill] sm:$0xff] }
 0x9eb   :  { %v1581_v63 = vadd.f32 %v5155_v12, %v4613_v26 }
 0x9ec   :  { %v4685_v51 = vadd.f32 %v2079_v50, %v2078_v52 }
 0x9ee   :  { %3251 = vtanh.f32 %v4685_v51 }
 0x9f8   :  { %v3252_v48 = vpop.eup %3251 }
 0x9f9   :  { %v2082_v7 = vmul.f32 %v3252_v48, %v2076_v29 }
 0x9fb   :  { %v2083_v45 = vpack.c.bf16 %v2082_v7, %v2082_v7 }
 0x9fd   :  { %2117 = vmatmul.mubr.bf16.vlgmr.msra.gmra.mrb[72].mxu0 %v2083_v45  ;;  %2158 = vmatmul.mubr.bf16.vlgmr.msra.gmra.mrb[72].mxu1 %v2083_v45 }
 0x9fe   :  { %2190 = vmatpush1.bf16.msra.mxu0 %v4324_v49  ;;  %2231 = vmatpush1.bf16.msra.mxu1 %v4329_v53 }
 0x9ff   :  { %2191 = vmatprep.subr.bf16.mxu0 %v4337_v46  ;;  %2232 = vmatprep.subr.bf16.mxu1 %v4342_v5 }
 0xa00   :  { %2221 = vmatprep.mubr.bf16.mxu0 %v5104_v43  ;;  %2262 = vmatprep.mubr.bf16.mxu1 %v5104_v43 }
 0xa02   :  { %2192 = vmatpush1.bf16.msra.mxu0 %v4347_v30  ;;  %2233 = vmatpush1.bf16.msra.mxu1 %v4352_v31 }
 0xa03   :  { %2193 = vmatprep.subr.bf16.mxu0 %v4361_v32  ;;  %2234 = vmatprep.subr.bf16.mxu1 %v4366_v33 }
 0xa06   :  { %2194 = vmatpush1.bf16.msra.mxu0 %v4371_v35  ;;  %2235 = vmatpush1.bf16.msra.mxu1 %v4376_v36 }
 0xa07   :  { %2195 = vmatprep.subr.bf16.mxu0 %v4383_v37  ;;  %2236 = vmatprep.subr.bf16.mxu1 %v4388_v38 }
 0xa0a   :  { %2196 = vmatpush1.bf16.msra.mxu0 %v4395_v19  ;;  %2237 = vmatpush1.bf16.msra.mxu1 %v4400_v39 }
 0xa0b   :  { %2197 = vmatprep.subr.bf16.mxu0 %v4409_v20  ;;  %2238 = vmatprep.subr.bf16.mxu1 %v4414_v40 }
 0xa0e   :  { %2198 = vmatpush1.bf16.msra.mxu0 %v4419_v21  ;;  %2239 = vmatpush1.bf16.msra.mxu1 %v4424_v8 }
 0xa0f   :  { %2199 = vmatprep.subr.bf16.mxu0 %v4433_v9  ;;  %2240 = vmatprep.subr.bf16.mxu1 %v4438_v22 }
 0xa12   :  { %2200 = vmatpush1.bf16.msra.mxu0 %v4443_v23  ;;  %2241 = vmatpush1.bf16.msra.mxu1 %v4448_v1 }
 0xa13   :  { %2201 = vmatprep.subr.bf16.mxu0 %v4457_v55  ;;  %2242 = vmatprep.subr.bf16.mxu1 %v4462_v42 }
 0xa16   :  { %2202 = vmatpush1.bf16.msra.mxu0 %v4467_v2  ;;  %2243 = vmatpush1.bf16.msra.mxu1 %v4472_v34 }
 0xa17   :  { %2203 = vmatprep.subr.bf16.mxu0 %v4481_v59  ;;  %2244 = vmatprep.subr.bf16.mxu1 %v4486_v60 }
 0xa1a   :  { %2204 = vmatpush1.bf16.msra.mxu0 %v4491_v4  ;;  %2245 = vmatpush1.bf16.msra.mxu1 %v4496_v3 }
 0xa1b   :  { %2294 = vmatprep.subr.bf16.mxu0 %v4313_v56  ;;  %2335 = vmatprep.subr.bf16.mxu1 %v4318_v61 }
 0xad0   :  { %v2118_v62 = vpop.f32.mrb[72].mxu0  ;;  %v2159_v0 = vpop.f32.mrb[72].mxu1 }
 0xad1   :  { %v2166_v47 = vadd.f32 %v2118_v62, %v1581_v63  ;;  %v2168_v54 = vadd.f32 %v2159_v0, %v1654_v15  ;;  %v2120_v24 = vpop.f32.mrb[73].mxu0  ;;  %v2161_v10 = vpop.f32.mrb[73].mxu1 }
 0xad2   :  { %v2167_v11 = vadd.f32 %v2120_v24, %v1583_v41  ;;  %v2169_v27 = vadd.f32 %v2161_v10, %v1656_v58  ;;  %v2122_v18 = vpop.f32.mrb[74].mxu0  ;;  %v2163_v13 = vpop.f32.mrb[74].mxu1 }
 0xad3   :  { %v2170_v50 = vmul.f32 0.5, %v2166_v47  ;;  %v2123_v52 = vpop.f32.mrb[75].mxu0  ;;  %v2164_v44 = vpop.f32.mrb[75].mxu1  ;;  %v2172_v29 = vmul.f32 0.5, %v2168_v54  ;;  %v5161_v18 = vld [vmem:[#allocation9_spill] sm:$0xff] }
 0xad4   :  { %v2171_v28 = vmul.f32 0.5, %v2167_v11  ;;  %v5160_v11 = vld [vmem:[#allocation8_spill] sm:$0xff]  ;;  %v1587_v13 = vadd.f32 %v5161_v18, %v4625_v6 }
 0xad5   :  { %3253 = vtanh.f32 %v2170_v50  ;;  %v5162_v50 = vld [vmem:[#allocation10_spill] sm:$0xff] }
 0xad6   :  { %3255 = vtanh.f32 %v2171_v28  ;;  %v1660_v52 = vadd.f32 %v5162_v50, %v4629_v14 }
 0xad7   :  { %3257 = vtanh.f32 %v2169_v27  ;;  %v1658_v27 = vadd.f32 %v5160_v11, %v4617_v17 }
 0xad8   :  { %3259 = vtanh.f32 %v2172_v29 }
 0xadf   :  { %v3254_v48 = vpop.eup %3253 }
 0xae0   :  { %v2176_v7 = vadd.f32 1.0, %v3254_v48  ;;  %v3256_v45 = vpop.eup %3255 }
 0xae1   :  { %v2177_v63 = vadd.f32 1.0, %v3256_v45  ;;  %v3258_v25 = vpop.eup %3257 }
 0xae2   :  { %v2179_v12 = vmul.f32 0.5, %v2176_v7  ;;  %v3260_v58 = vpop.eup %3259 }
 0xae3   :  { %v2180_v15 = vmul.f32 0.5, %v2177_v63  ;;  %v2178_v62 = vadd.f32 1.0, %v3260_v58 }
 0xae4   :  { %v2184_v16 = vmul.f32 %v3258_v25, %v2179_v12 }
 0xae5   :  { %v2183_v41 = vmul.f32 %v2180_v15, %v4685_v51  ;;  %v2181_v0 = vmul.f32 0.5, %v2178_v62  ;;  %v5159_v51 = vld [vmem:[#allocation7_spill] sm:$0xff] }
 0xae6   :  { %v1585_v10 = vadd.f32 %v5159_v51, %v4613_v26 }
 0xae7   :  { %v4731_v57 = vadd.f32 %v2184_v16, %v2183_v41 }
 0xae9   :  { %3261 = vtanh.f32 %v4731_v57 }
 0xaf3   :  { %v3262_v47 = vpop.eup %3261 }
 0xaf4   :  { %v2187_v54 = vmul.f32 %v3262_v47, %v2181_v0 }
 0xaf6   :  { %v2188_v24 = vpack.c.bf16 %v2187_v54, %v2187_v54 }
 0xaf8   :  { %2222 = vmatmul.mubr.bf16.vlgmr.msra.gmra.mrb[76].mxu0 %v2188_v24  ;;  %2263 = vmatmul.mubr.bf16.vlgmr.msra.gmra.mrb[76].mxu1 %v2188_v24 }
 0xaf9   :  { %2295 = vmatpush1.bf16.msra.mxu0 %v4324_v49  ;;  %2336 = vmatpush1.bf16.msra.mxu1 %v4329_v53 }
 0xafa   :  { %2296 = vmatprep.subr.bf16.mxu0 %v4337_v46  ;;  %2337 = vmatprep.subr.bf16.mxu1 %v4342_v5 }
 0xafb   :  { %2326 = vmatprep.mubr.bf16.mxu0 %v5104_v43  ;;  %2367 = vmatprep.mubr.bf16.mxu1 %v5104_v43 }
 0xafd   :  { %2297 = vmatpush1.bf16.msra.mxu0 %v4347_v30  ;;  %2338 = vmatpush1.bf16.msra.mxu1 %v4352_v31 }
 0xafe   :  { %2298 = vmatprep.subr.bf16.mxu0 %v4361_v32  ;;  %2339 = vmatprep.subr.bf16.mxu1 %v4366_v33 }
 0xb01   :  { %2299 = vmatpush1.bf16.msra.mxu0 %v4371_v35  ;;  %2340 = vmatpush1.bf16.msra.mxu1 %v4376_v36 }
 0xb02   :  { %2300 = vmatprep.subr.bf16.mxu0 %v4383_v37  ;;  %2341 = vmatprep.subr.bf16.mxu1 %v4388_v38 }
 0xb05   :  { %2301 = vmatpush1.bf16.msra.mxu0 %v4395_v19  ;;  %2342 = vmatpush1.bf16.msra.mxu1 %v4400_v39 }
 0xb06   :  { %2302 = vmatprep.subr.bf16.mxu0 %v4409_v20  ;;  %2343 = vmatprep.subr.bf16.mxu1 %v4414_v40 }
 0xb09   :  { %2303 = vmatpush1.bf16.msra.mxu0 %v4419_v21  ;;  %2344 = vmatpush1.bf16.msra.mxu1 %v4424_v8 }
 0xb0a   :  { %2304 = vmatprep.subr.bf16.mxu0 %v4433_v9  ;;  %2345 = vmatprep.subr.bf16.mxu1 %v4438_v22 }
 0xb0d   :  { %2305 = vmatpush1.bf16.msra.mxu0 %v4443_v23  ;;  %2346 = vmatpush1.bf16.msra.mxu1 %v4448_v1 }
 0xb0e   :  { %2306 = vmatprep.subr.bf16.mxu0 %v4457_v55  ;;  %2347 = vmatprep.subr.bf16.mxu1 %v4462_v42 }
 0xb11   :  { %2307 = vmatpush1.bf16.msra.mxu0 %v4467_v2  ;;  %2348 = vmatpush1.bf16.msra.mxu1 %v4472_v34 }
 0xb12   :  { %2308 = vmatprep.subr.bf16.mxu0 %v4481_v59  ;;  %2349 = vmatprep.subr.bf16.mxu1 %v4486_v60 }
 0xb15   :  { %2309 = vmatpush1.bf16.msra.mxu0 %v4491_v4  ;;  %2350 = vmatpush1.bf16.msra.mxu1 %v4496_v3 }
 0xb16   :  { %2399 = vmatprep.subr.bf16.mxu0 %v4313_v56  ;;  %2440 = vmatprep.subr.bf16.mxu1 %v4318_v61 }
 0xbcb   :  { %v2223_v44 = vpop.f32.mrb[76].mxu0  ;;  %v2264_v28 = vpop.f32.mrb[76].mxu1 }
 0xbcc   :  { %v2271_v29 = vadd.f32 %v2223_v44, %v1585_v10  ;;  %v2273_v48 = vadd.f32 %v2264_v28, %v1658_v27  ;;  %v2225_v7 = vpop.f32.mrb[77].mxu0  ;;  %v2266_v56 = vpop.f32.mrb[77].mxu1 }
 0xbcd   :  { %v2272_v45 = vadd.f32 %v2225_v7, %v1587_v13  ;;  %v2274_v12 = vadd.f32 %v2266_v56, %v1660_v52  ;;  %v2227_v63 = vpop.f32.mrb[78].mxu0  ;;  %v2268_v25 = vpop.f32.mrb[78].mxu1 }
 0xbce   :  { %v2275_v15 = vmul.f32 0.5, %v2271_v29  ;;  %v2228_v16 = vpop.f32.mrb[79].mxu0  ;;  %v2269_v41 = vpop.f32.mrb[79].mxu1  ;;  %v2277_v62 = vmul.f32 0.5, %v2273_v48 }
 0xbcf   :  { %v2276_v58 = vmul.f32 0.5, %v2272_v45 }
 0xbd0   :  { %3263 = vtanh.f32 %v2275_v15 }
 0xbd1   :  { %3265 = vtanh.f32 %v2276_v58 }
 0xbd2   :  { %3267 = vtanh.f32 %v2274_v12 }
 0xbd3   :  { %3269 = vtanh.f32 %v2277_v62 }
 0xbda   :  { %v3264_v0 = vpop.eup %3263 }
 0xbdb   :  { %v2281_v47 = vadd.f32 1.0, %v3264_v0  ;;  %v3266_v54 = vpop.eup %3265 }
 0xbdc   :  { %v2282_v51 = vadd.f32 1.0, %v3266_v54  ;;  %v3268_v10 = vpop.eup %3267 }
 0xbdd   :  { %v2284_v24 = vmul.f32 0.5, %v2281_v47  ;;  %v3270_v50 = vpop.eup %3269 }
 0xbde   :  { %v2285_v11 = vmul.f32 0.5, %v2282_v51  ;;  %v2283_v52 = vadd.f32 1.0, %v3270_v50 }
 0xbdf   :  { %v2289_v27 = vmul.f32 %v3268_v10, %v2284_v24 }
 0xbe0   :  { %v2288_v18 = vmul.f32 %v2285_v11, %v4731_v57  ;;  %v2286_v44 = vmul.f32 0.5, %v2283_v52 }
 0xbe2   :  { %v4777_v13 = vadd.f32 %v2289_v27, %v2288_v18 }
 0xbe4   :  { %3271 = vtanh.f32 %v4777_v13 }
 0xbee   :  { %v3272_v28 = vpop.eup %3271 }
 0xbef   :  { %v2292_v29 = vmul.f32 %v3272_v28, %v2286_v44 }
 0xbf1   :  { %v2293_v48 = vpack.c.bf16 %v2292_v29, %v2292_v29  ;;  %v4834_v29 = vld [vmem:[%s5069_s5] ss:$16 sps:$4 sm:$0xff]  }
 0xbf3   :  { %2327 = vmatmul.mubr.bf16.vlgmr.msra.gmra.mrb[80].mxu0 %v2293_v48  ;;  %2368 = vmatmul.mubr.bf16.vlgmr.msra.gmra.mrb[80].mxu1 %v2293_v48  ;;  %v4846_v48 = vld [vmem:[%s5069_s5 + $0x24] ss:$16 sps:$4 sm:$0xff]  }
 0xbf4   :  { %2400 = vmatpush1.bf16.msra.mxu0 %v4324_v49  ;;  %2441 = vmatpush1.bf16.msra.mxu1 %v4329_v53  ;;  %v4815_v49 = vld [vmem:[%s5069_s5 + $0x4] ss:$16 sps:$4 sm:$0xff]   ;;  %v5163_v53 = vld [vmem:[#allocation11_spill] sm:$0xff] }
 0xbf5   :  { %2401 = vmatprep.subr.bf16.mxu0 %v4337_v46  ;;  %2442 = vmatprep.subr.bf16.mxu1 %v4342_v5  ;;  %v1591_v46 = vadd.f32 %v5163_v53, %v4613_v26  ;;  %v5164_v5 = vld [vmem:[#allocation12_spill] sm:$0xff]  ;;  %v4852_v53 = vld [vmem:[%s5069_s5 + $0x2c] ss:$16 sps:$4 sm:$0xff]  }
 0xbf6   :  { %2431 = vmatprep.mubr.bf16.mxu0 %v5104_v43  ;;  %2472 = vmatprep.mubr.bf16.mxu1 %v5104_v43 }
 0xbf8   :  { %2402 = vmatpush1.bf16.msra.mxu0 %v4347_v30  ;;  %2443 = vmatpush1.bf16.msra.mxu1 %v4352_v31  ;;  %v1664_v30 = vadd.f32 %v5164_v5, %v4617_v17  ;;  %v5165_v31 = vld [vmem:[#allocation13_spill] sm:$0xff] }
 0xbf9   :  { %2403 = vmatprep.subr.bf16.mxu0 %v4361_v32  ;;  %2444 = vmatprep.subr.bf16.mxu1 %v4366_v33  ;;  %v1593_v32 = vadd.f32 %v5165_v31, %v4625_v6  ;;  %v5166_v33 = vld [vmem:[#allocation14_spill] sm:$0xff]  ;;  %v4866_v5 = vld [vmem:[%s5069_s5 + $0x28] ss:$16 sps:$4 sm:$0xff]   ;;  %v4878_v31 = vld [vmem:[%s5069_s5 + $0x4c] ss:$16 sps:$4 sm:$0xff]  }
 0xbfc   :  { %2404 = vmatpush1.bf16.msra.mxu0 %v4371_v35  ;;  %2445 = vmatpush1.bf16.msra.mxu1 %v4376_v36  ;;  %v1666_v35 = vadd.f32 %v5166_v33, %v4629_v14  ;;  %v4890_v33 = vld [vmem:[%s5069_s5 + $0x48] ss:$16 sps:$4 sm:$0xff]  }
 0xbfd   :  { %2405 = vmatprep.subr.bf16.mxu0 %v4383_v37  ;;  %2446 = vmatprep.subr.bf16.mxu1 %v4388_v38 }
 0xc00   :  { %2406 = vmatpush1.bf16.msra.mxu0 %v4395_v19  ;;  %2447 = vmatpush1.bf16.msra.mxu1 %v4400_v39 }
 0xc01   :  { %2407 = vmatprep.subr.bf16.mxu0 %v4409_v20  ;;  %2448 = vmatprep.subr.bf16.mxu1 %v4414_v40 }
 0xc04   :  { %2408 = vmatpush1.bf16.msra.mxu0 %v4419_v21  ;;  %2449 = vmatpush1.bf16.msra.mxu1 %v4424_v8 }
 0xc05   :  { %2409 = vmatprep.subr.bf16.mxu0 %v4433_v9  ;;  %2450 = vmatprep.subr.bf16.mxu1 %v4438_v22 }
 0xc08   :  { %2410 = vmatpush1.bf16.msra.mxu0 %v4443_v23  ;;  %2451 = vmatpush1.bf16.msra.mxu1 %v4448_v1 }
 0xc09   :  { %2411 = vmatprep.subr.bf16.mxu0 %v4457_v55  ;;  %2452 = vmatprep.subr.bf16.mxu1 %v4462_v42 }
 0xc0c   :  { %2412 = vmatpush1.bf16.msra.mxu0 %v4467_v2  ;;  %2453 = vmatpush1.bf16.msra.mxu1 %v4472_v34 }
 0xc0d   :  { %2413 = vmatprep.subr.bf16.mxu0 %v4481_v59  ;;  %2454 = vmatprep.subr.bf16.mxu1 %v4486_v60 }
 0xc10   :  { %2414 = vmatpush1.bf16.msra.mxu0 %v4491_v4  ;;  %2455 = vmatpush1.bf16.msra.mxu1 %v4496_v3 }
 0xc11   :  { %2504 = vmatprep.subr.bf16.mxu0 %v4815_v49  ;;  %2545 = vmatprep.subr.bf16.mxu1 %v4318_v61 }
 0xcc6   :  { %v2328_v36 = vpop.f32.mrb[80].mxu0  ;;  %v2369_v37 = vpop.f32.mrb[80].mxu1 }
 0xcc7   :  { %v2376_v38 = vadd.f32 %v2328_v36, %v1591_v46  ;;  %v2378_v19 = vadd.f32 %v2369_v37, %v1664_v30  ;;  %v2330_v39 = vpop.f32.mrb[81].mxu0  ;;  %v2371_v57 = vpop.f32.mrb[81].mxu1  ;;  %v4860_v46 = vld [vmem:[%s5069_s5 + $0x20] ss:$16 sps:$4 sm:$0xff]   ;;  %v4872_v30 = vld [vmem:[%s5069_s5 + $0x44] ss:$16 sps:$4 sm:$0xff]  }
 0xcc8   :  { %v2377_v7 = vadd.f32 %v2330_v39, %v1593_v32  ;;  %v2379_v61 = vadd.f32 %v2371_v57, %v1666_v35  ;;  %v2332_v56 = vpop.f32.mrb[82].mxu0  ;;  %v2373_v45 = vpop.f32.mrb[82].mxu1  ;;  %v4884_v32 = vld [vmem:[%s5069_s5 + $0x40] ss:$16 sps:$4 sm:$0xff]   ;;  %v4896_v35 = vld [vmem:[%s5069_s5 + $0x64] ss:$16 sps:$4 sm:$0xff]  }
 0xcc9   :  { %v2380_v12 = vmul.f32 0.5, %v2376_v38  ;;  %v2333_v63 = vpop.f32.mrb[83].mxu0  ;;  %v2374_v25 = vpop.f32.mrb[83].mxu1  ;;  %v2382_v16 = vmul.f32 0.5, %v2378_v19  ;;  %v4902_v36 = vld [vmem:[%s5069_s5 + $0x6c] ss:$16 sps:$4 sm:$0xff]  }
 0xcca   :  { %v2381_v15 = vmul.f32 0.5, %v2377_v7  ;;  %v4908_v37 = vld [vmem:[%s5069_s5 + $0x60] ss:$16 sps:$4 sm:$0xff]   ;;  %v4914_v38 = vld [vmem:[%s5069_s5 + $0x68] ss:$16 sps:$4 sm:$0xff]  }
 0xccb   :  { %3273 = vtanh.f32 %v2380_v12 }
 0xccc   :  { %3275 = vtanh.f32 %v2381_v15 }
 0xccd   :  { %3277 = vtanh.f32 %v2379_v61 }
 0xcce   :  { %3279 = vtanh.f32 %v2382_v16 }
 0xcd5   :  { %v3274_v41 = vpop.eup %3273 }
 0xcd6   :  { %v2386_v58 = vadd.f32 1.0, %v3274_v41  ;;  %v3276_v62 = vpop.eup %3275 }
 0xcd7   :  { %v2387_v47 = vadd.f32 1.0, %v3276_v62  ;;  %v3278_v54 = vpop.eup %3277 }
 0xcd8   :  { %v2389_v0 = vmul.f32 0.5, %v2386_v58  ;;  %v3280_v27 = vpop.eup %3279 }
 0xcd9   :  { %v2390_v24 = vmul.f32 0.5, %v2387_v47  ;;  %v2388_v18 = vadd.f32 1.0, %v3280_v27 }
 0xcda   :  { %v2394_v51 = vmul.f32 %v3278_v54, %v2389_v0 }
 0xcdb   :  { %v2393_v10 = vmul.f32 %v2390_v24, %v4777_v13  ;;  %v2391_v50 = vmul.f32 0.5, %v2388_v18  ;;  %v4840_v13 = vld [vmem:[%s5069_s5 + $0x8] ss:$16 sps:$4 sm:$0xff]  }
 0xcdd   :  { %v4828_v11 = vadd.f32 %v2394_v51, %v2393_v10 }
 0xcdf   :  { %3281 = vtanh.f32 %v4828_v11 }
 0xce9   :  { %v3282_v52 = vpop.eup %3281 }
 0xcea   :  { %v2397_v44 = vmul.f32 %v3282_v52, %v2391_v50  ;;  %v3363_v50 = vld [vmem:[%s5069_s5 + $0x80] ss:$16 sps:$4 sm:$0xff]   ;;  %v3364_v52 = vld [vmem:[%s5069_s5 + $0x88] ss:$16 sps:$4 sm:$0xff]  }
 0xcec   :  { %v2398_v28 = vpack.c.bf16 %v2397_v44, %v2397_v44  ;;  %v3365_v44 = vld [vmem:[%s5069_s5 + $0xa4] ss:$16 sps:$4 sm:$0xff]  }
 0xcee   :  { %2432 = vmatmul.mubr.bf16.vlgmr.msra.gmra.mrb[84].mxu0 %v2398_v28  ;;  %2473 = vmatmul.mubr.bf16.vlgmr.msra.gmra.mrb[84].mxu1 %v2398_v28  ;;  %v3366_v28 = vld [vmem:[%s5069_s5 + $0xac] ss:$16 sps:$4 sm:$0xff]  }
 0xcef   :  { %2505 = vmatpush1.bf16.msra.mxu0 %v4834_v29  ;;  %2546 = vmatpush1.bf16.msra.mxu1 %v4840_v13 }
 0xcf0   :  { %2506 = vmatprep.subr.bf16.mxu0 %v4846_v48  ;;  %2547 = vmatprep.subr.bf16.mxu1 %v4852_v53 }
 0xcf1   :  { %2536 = vmatprep.mubr.bf16.mxu0 %v5104_v43  ;;  %2577 = vmatprep.mubr.bf16.mxu1 %v5104_v43 }
 0xcf3   :  { %2507 = vmatpush1.bf16.msra.mxu0 %v4860_v46  ;;  %2548 = vmatpush1.bf16.msra.mxu1 %v4866_v5 }
 0xcf4   :  { %2508 = vmatprep.subr.bf16.mxu0 %v4872_v30  ;;  %2549 = vmatprep.subr.bf16.mxu1 %v4878_v31 }
 0xcf7   :  { %2509 = vmatpush1.bf16.msra.mxu0 %v4884_v32  ;;  %2550 = vmatpush1.bf16.msra.mxu1 %v4890_v33 }
 0xcf8   :  { %2510 = vmatprep.subr.bf16.mxu0 %v4896_v35  ;;  %2551 = vmatprep.subr.bf16.mxu1 %v4902_v36 }
 0xcfb   :  { %2511 = vmatpush1.bf16.msra.mxu0 %v4908_v37  ;;  %2552 = vmatpush1.bf16.msra.mxu1 %v4914_v38 }
 0xcfc   :  { %2512 = vmatprep.subr.bf16.mxu0 %v4409_v20  ;;  %2553 = vmatprep.subr.bf16.mxu1 %v4414_v40  ;;  %v3360_v20 = vld [vmem:[%s5069_s5 + $0xc] ss:$16 sps:$4 sm:$0xff]  }
 0xcfd   :  { %v5167_v40 = vld [vmem:[#allocation15_spill] sm:$0xff] }
 0xcff   :  { %2513 = vmatpush1.bf16.msra.mxu0 %v4419_v21  ;;  %2554 = vmatpush1.bf16.msra.mxu1 %v4424_v8  ;;  %v1595_v21 = vadd.f32 %v5167_v40, %v4613_v26  ;;  %v5168_v8 = vld [vmem:[#allocation16_spill] sm:$0xff] }
 0xd00   :  { %2514 = vmatprep.subr.bf16.mxu0 %v4433_v9  ;;  %2555 = vmatprep.subr.bf16.mxu1 %v4438_v22  ;;  %v1668_v9 = vadd.f32 %v5168_v8, %v4617_v17  ;;  %v5169_v22 = vld [vmem:[#allocation17_spill] sm:$0xff] }
 0xd03   :  { %2515 = vmatpush1.bf16.msra.mxu0 %v4443_v23  ;;  %2556 = vmatpush1.bf16.msra.mxu1 %v4448_v1  ;;  %v1597_v23 = vadd.f32 %v5169_v22, %v4625_v6  ;;  %v5170_v1 = vld [vmem:[#allocation18_spill] sm:$0xff] }
 0xd04   :  { %2516 = vmatprep.subr.bf16.mxu0 %v4457_v55  ;;  %2557 = vmatprep.subr.bf16.mxu1 %v4462_v42  ;;  %v1670_v55 = vadd.f32 %v5170_v1, %v4629_v14 }
 0xd07   :  { %2517 = vmatpush1.bf16.msra.mxu0 %v4467_v2  ;;  %2558 = vmatpush1.bf16.msra.mxu1 %v4472_v34 }
 0xd08   :  { %2518 = vmatprep.subr.bf16.mxu0 %v4481_v59  ;;  %2559 = vmatprep.subr.bf16.mxu1 %v4486_v60 }
 0xd0b   :  { %2519 = vmatpush1.bf16.msra.mxu0 %v4491_v4  ;;  %2560 = vmatpush1.bf16.msra.mxu1 %v4496_v3 }
 0xd0c   :  { %2609 = vmatprep.subr.bf16.mxu0 %v4815_v49  ;;  %2650 = vmatprep.subr.bf16.mxu1 %v3360_v20  ;;  %v5173_v20 = vld [vmem:[#allocation21_spill] sm:$0xff] }
 0xd0d   :  { %v1603_v40 = vadd.f32 %v5173_v20, %v4625_v6 }
 0xdc1   :  { %v2433_v42 = vpop.f32.mrb[84].mxu0  ;;  %v2474_v2 = vpop.f32.mrb[84].mxu1 }
 0xdc2   :  { %v2481_v34 = vadd.f32 %v2433_v42, %v1595_v21  ;;  %v2483_v59 = vadd.f32 %v2474_v2, %v1668_v9  ;;  %v2435_v60 = vpop.f32.mrb[85].mxu0  ;;  %v2476_v4 = vpop.f32.mrb[85].mxu1  ;;  %v5174_v21 = vld [vmem:[#allocation22_spill] sm:$0xff] }
 0xdc3   :  { %v2482_v3 = vadd.f32 %v2435_v60, %v1597_v23  ;;  %v2484_v49 = vadd.f32 %v2476_v4, %v1670_v55  ;;  %v2437_v19 = vpop.f32.mrb[86].mxu0  ;;  %v2478_v39 = vpop.f32.mrb[86].mxu1  ;;  %v1676_v8 = vadd.f32 %v5174_v21, %v4629_v14 }
 0xdc4   :  { %v2485_v57 = vmul.f32 0.5, %v2481_v34  ;;  %v2438_v7 = vpop.f32.mrb[87].mxu0  ;;  %v2479_v61 = vpop.f32.mrb[87].mxu1  ;;  %v2487_v45 = vmul.f32 0.5, %v2483_v59 }
 0xdc5   :  { %v2486_v56 = vmul.f32 0.5, %v2482_v3 }
 0xdc6   :  { %3283 = vtanh.f32 %v2485_v57 }
 0xdc7   :  { %3285 = vtanh.f32 %v2486_v56 }
 0xdc8   :  { %3287 = vtanh.f32 %v2484_v49 }
 0xdc9   :  { %3289 = vtanh.f32 %v2487_v45 }
 0xdd0   :  { %v3284_v12 = vpop.eup %3283 }
 0xdd1   :  { %v2491_v63 = vadd.f32 1.0, %v3284_v12  ;;  %v3286_v25 = vpop.eup %3285 }
 0xdd2   :  { %v2492_v16 = vadd.f32 1.0, %v3286_v25  ;;  %v3288_v41 = vpop.eup %3287 }
 0xdd3   :  { %v2494_v15 = vmul.f32 0.5, %v2491_v63  ;;  %v3290_v54 = vpop.eup %3289 }
 0xdd4   :  { %v2495_v58 = vmul.f32 0.5, %v2492_v16  ;;  %v2493_v24 = vadd.f32 1.0, %v3290_v54 }
 0xdd5   :  { %v2499_v62 = vmul.f32 %v3288_v41, %v2494_v15 }
 0xdd6   :  { %v2498_v0 = vmul.f32 %v2495_v58, %v4828_v11  ;;  %v2496_v51 = vmul.f32 0.5, %v2493_v24  ;;  %v3362_v11 = vld [vmem:[%s5069_s5 + $0x8c] ss:$16 sps:$4 sm:$0xff]  }
 0xdd8   :  { %v4946_v47 = vadd.f32 %v2499_v62, %v2498_v0 }
 0xdda   :  { %3291 = vtanh.f32 %v4946_v47 }
 0xde4   :  { %v3292_v10 = vpop.eup %3291 }
 0xde5   :  { %v2502_v27 = vmul.f32 %v3292_v10, %v2496_v51  ;;  %v3145_v51 = vld [vmem:[%s5071_s7] sm:$0xff]   ;;  %v3378_v10 = vmov 0.0  }
 0xde7   :  { %v2503_v18 = vpack.c.bf16 %v2502_v27, %v2502_v27  ;;  %v3147_v27 = vld [vmem:[%s5071_s7 + $0x10] sm:$0xff]  }
 0xde9   :  { %2537 = vmatmul.mubr.bf16.vlgmr.msra.gmra.mrb[88].mxu0 %v2503_v18  ;;  %2578 = vmatmul.mubr.bf16.vlgmr.msra.gmra.mrb[88].mxu1 %v2503_v18  ;;  %v3148_v18 = vld [vmem:[%s5071_s7 + $0x18] sm:$0xff]  }
 0xdea   :  { %2610 = vmatpush1.bf16.msra.mxu0 %v4834_v29  ;;  %2651 = vmatpush1.bf16.msra.mxu1 %v4840_v13  ;;  %v3367_v29 = vld [vmem:[%s5069_s5 + $0xa0] ss:$16 sps:$4 sm:$0xff]   ;;  %v3368_v13 = vld [vmem:[%s5069_s5 + $0xa8] ss:$16 sps:$4 sm:$0xff]  }
 0xdeb   :  { %2611 = vmatprep.subr.bf16.mxu0 %v4846_v48  ;;  %2652 = vmatprep.subr.bf16.mxu1 %v4852_v53  ;;  %v3369_v48 = vld [vmem:[%s5069_s5 + $0xc4] ss:$16 sps:$4 sm:$0xff]   ;;  %v3370_v53 = vld [vmem:[%s5069_s5 + $0xcc] ss:$16 sps:$4 sm:$0xff]  }
 0xdec   :  { %2641 = vmatprep.mubr.bf16.mxu0 %v5104_v43  ;;  %2682 = vmatprep.mubr.bf16.mxu1 %v5104_v43  ;;  %v3361_v43 = vld [vmem:[%s5069_s5 + $0x84] ss:$16 sps:$4 sm:$0xff]  }
 0xdee   :  { %2612 = vmatpush1.bf16.msra.mxu0 %v4860_v46  ;;  %2653 = vmatpush1.bf16.msra.mxu1 %v4866_v5  ;;  %v3371_v46 = vld [vmem:[%s5069_s5 + $0xc0] ss:$16 sps:$4 sm:$0xff]   ;;  %v3372_v5 = vld [vmem:[%s5069_s5 + $0xc8] ss:$16 sps:$4 sm:$0xff]  }
 0xdef   :  { %2613 = vmatprep.subr.bf16.mxu0 %v4872_v30  ;;  %2654 = vmatprep.subr.bf16.mxu1 %v4878_v31  ;;  %v3373_v30 = vld [vmem:[%s5069_s5 + $0xe4] ss:$16 sps:$4 sm:$0xff]   ;;  %v3374_v31 = vld [vmem:[%s5069_s5 + $0xec] ss:$16 sps:$4 sm:$0xff]  }
 0xdf2   :  { %2614 = vmatpush1.bf16.msra.mxu0 %v4884_v32  ;;  %2655 = vmatpush1.bf16.msra.mxu1 %v4890_v33  ;;  %v3375_v32 = vld [vmem:[%s5069_s5 + $0xe0] ss:$16 sps:$4 sm:$0xff]   ;;  %v3376_v33 = vld [vmem:[%s5069_s5 + $0xe8] ss:$16 sps:$4 sm:$0xff]  }
 0xdf3   :  { %2615 = vmatprep.subr.bf16.mxu0 %v4896_v35  ;;  %2656 = vmatprep.subr.bf16.mxu1 %v4902_v36  ;;  %v5171_v35 = vld [vmem:[#allocation19_spill] sm:$0xff] }
 0xdf4   :  { %v1601_v36 = vadd.f32 %v5171_v35, %v4613_v26 }
 0xdf6   :  { %2616 = vmatpush1.bf16.msra.mxu0 %v4908_v37  ;;  %2657 = vmatpush1.bf16.msra.mxu1 %v4914_v38  ;;  %v5172_v37 = vld [vmem:[#allocation20_spill] sm:$0xff] }
 0xdf7   :  { %2617 = vmatprep.subr.bf16.mxu0 %v3361_v43  ;;  %2658 = vmatprep.subr.bf16.mxu1 %v3362_v11  ;;  %v1674_v38 = vadd.f32 %v5172_v37, %v4617_v17  ;;  %v3149_v43 = vld [vmem:[%s5071_s7 + $0x20] sm:$0xff]   ;;  %v3150_v11 = vld [vmem:[%s5071_s7 + $0x28] sm:$0xff]  }
 0xdfa   :  { %2618 = vmatpush1.bf16.msra.mxu0 %v3363_v50  ;;  %2659 = vmatpush1.bf16.msra.mxu1 %v3364_v52  ;;  %v3151_v50 = vld [vmem:[%s5071_s7 + $0x30] sm:$0xff]   ;;  %v3152_v52 = vld [vmem:[%s5071_s7 + $0x38] sm:$0xff]  }
 0xdfb   :  { %2619 = vmatprep.subr.bf16.mxu0 %v3365_v44  ;;  %2660 = vmatprep.subr.bf16.mxu1 %v3366_v28  ;;  %v5175_v44 = vld [vmem:[#allocation23_spill] sm:$0xff] }
 0xdfc   :  { %v1605_v28 = vadd.f32 %v5175_v44, %v4613_v26 }
 0xdfe   :  { %2620 = vmatpush1.bf16.msra.mxu0 %v3367_v29  ;;  %2661 = vmatpush1.bf16.msra.mxu1 %v3368_v13  ;;  %v5176_v29 = vld [vmem:[#allocation24_spill] sm:$0xff] }
 0xdff   :  { %2621 = vmatprep.subr.bf16.mxu0 %v3369_v48  ;;  %2662 = vmatprep.subr.bf16.mxu1 %v3370_v53  ;;  %v1678_v13 = vadd.f32 %v5176_v29, %v4617_v17  ;;  %v5177_v48 = vld [vmem:[#allocation2_spill] sm:$0xff] }
 0xe00   :  { %v1607_v53 = vadd.f32 %v5177_v48, %v4625_v6 }
 0xe02   :  { %2622 = vmatpush1.bf16.msra.mxu0 %v3371_v46  ;;  %2663 = vmatpush1.bf16.msra.mxu1 %v3372_v5  ;;  %v5178_v46 = vld [vmem:[#allocation25_spill] sm:$0xff] }
 0xe03   :  { %2623 = vmatprep.subr.bf16.mxu0 %v3373_v30  ;;  %2664 = vmatprep.subr.bf16.mxu1 %v3374_v31  ;;  %v1680_v5 = vadd.f32 %v5178_v46, %v4629_v14 }
 0xe06   :  { %2624 = vmatpush1.bf16.msra.mxu0 %v3375_v32  ;;  %2665 = vmatpush1.bf16.msra.mxu1 %v3376_v33 }
 0xe07   :  { %2968 = vmatprep.subr.bf16.mxu0 %v3378_v10 }
 0xebc   :  { %v2538_v9 = vpop.f32.mrb[88].mxu0  ;;  %v2579_v22 = vpop.f32.mrb[88].mxu1 }
 0xebd   :  { %v2586_v23 = vadd.f32 %v2538_v9, %v1601_v36  ;;  %v2588_v1 = vadd.f32 %v2579_v22, %v1674_v38  ;;  %v2540_v55 = vpop.f32.mrb[89].mxu0  ;;  %v2581_v42 = vpop.f32.mrb[89].mxu1 }
 0xebe   :  { %v2587_v2 = vadd.f32 %v2540_v55, %v1603_v40  ;;  %v2589_v34 = vadd.f32 %v2581_v42, %v1676_v8  ;;  %v2542_v59 = vpop.f32.mrb[90].mxu0  ;;  %v2583_v60 = vpop.f32.mrb[90].mxu1 }
 0xebf   :  { %v2590_v4 = vmul.f32 0.5, %v2586_v23  ;;  %v2543_v3 = vpop.f32.mrb[91].mxu0  ;;  %v2584_v49 = vpop.f32.mrb[91].mxu1  ;;  %v2592_v39 = vmul.f32 0.5, %v2588_v1 }
 0xec0   :  { %v2591_v19 = vmul.f32 0.5, %v2587_v2 }
 0xec1   :  { %3293 = vtanh.f32 %v2590_v4 }
 0xec2   :  { %3295 = vtanh.f32 %v2591_v19 }
 0xec3   :  { %3297 = vtanh.f32 %v2589_v34 }
 0xec4   :  { %3299 = vtanh.f32 %v2592_v39 }
 0xecb   :  { %v3294_v57 = vpop.eup %3293 }
 0xecc   :  { %v2596_v7 = vadd.f32 1.0, %v3294_v57  ;;  %v3296_v61 = vpop.eup %3295  ;;  %v2946_v57 = vld [vmem:[%s5072_s8] ss:$0 sm:$0xff] }
 0xecd   :  { %v2597_v45 = vadd.f32 1.0, %v3296_v61  ;;  %v3298_v12 = vpop.eup %3297 }
 0xece   :  { %v2599_v56 = vmul.f32 0.5, %v2596_v7  ;;  %v3300_v41 = vpop.eup %3299 }
 0xecf   :  { %v2600_v63 = vmul.f32 0.5, %v2597_v45  ;;  %v2598_v58 = vadd.f32 1.0, %v3300_v41 }
 0xed0   :  { %v2604_v25 = vmul.f32 %v3298_v12, %v2599_v56 }
 0xed1   :  { %v2603_v15 = vmul.f32 %v2600_v63, %v4946_v47  ;;  %v2601_v62 = vmul.f32 0.5, %v2598_v58  ;;  %v3146_v47 = vld [vmem:[%s5071_s7 + $0x8] sm:$0xff]  }
 0xed3   :  { %v5022_v16 = vadd.f32 %v2604_v25, %v2603_v15 }
 0xed5   :  { %3301 = vtanh.f32 %v5022_v16 }
 0xedf   :  { %v3302_v0 = vpop.eup %3301 }
 0xee0   :  { %v2607_v54 = vmul.f32 %v3302_v0, %v2601_v62 }
 0xee2   :  { %v2608_v24 = vpack.c.bf16 %v2607_v54, %v2607_v54 }
 0xee4   :  { %2642 = vmatmul.mubr.bf16.vlgmr.msra.gmra.mrb[92].mxu0 %v2608_v24  ;;  %2683 = vmatmul.mubr.bf16.vlgmr.msra.gmra.mrb[92].mxu1 %v2608_v24 }
 0xee5   :  { %2969 = vmatpush3.bf16.msra.mxu0 %v3145_v51  ;;  %2984 = vmatprep.mubr.msk.bf16.mxu0 %vm3379_vm1, %v3378_v10 }
 0xee6   :  { %2970 = vmatprep.subr.bf16.mxu0 %v3378_v10 }
 0xee9   :  { %2971 = vmatpush3.bf16.msra.mxu0 %v3146_v47 }
 0xeea   :  { %2972 = vmatprep.subr.bf16.mxu0 %v3378_v10 }
 0xeed   :  { %2973 = vmatpush3.bf16.msra.mxu0 %v3147_v27 }
 0xeee   :  { %2974 = vmatprep.subr.bf16.mxu0 %v3378_v10 }
 0xef1   :  { %2975 = vmatpush3.bf16.msra.mxu0 %v3148_v18 }
 0xef2   :  { %2976 = vmatprep.subr.bf16.mxu0 %v3378_v10 }
 0xef5   :  { %2977 = vmatpush3.bf16.msra.mxu0 %v3149_v43 }
 0xef6   :  { %2978 = vmatprep.subr.bf16.mxu0 %v3378_v10 }
 0xef9   :  { %2979 = vmatpush3.bf16.msra.mxu0 %v3150_v11 }
 0xefa   :  { %2980 = vmatprep.subr.bf16.mxu0 %v3378_v10 }
 0xefd   :  { %2981 = vmatpush3.bf16.msra.mxu0 %v3151_v50 }
 0xefe   :  { %2982 = vmatprep.subr.bf16.mxu0 %v3378_v10 }
 0xf01   :  { %2983 = vmatpush3.bf16.msra.mxu0 %v3152_v52 }
 0xfb7   :  { %v2643_v30 = vpop.f32.mrb[92].mxu0  ;;  %v2684_v31 = vpop.f32.mrb[92].mxu1 }
 0xfb8   :  { %v2691_v32 = vadd.f32 %v2643_v30, %v1605_v28  ;;  %v2693_v33 = vadd.f32 %v2684_v31, %v1678_v13  ;;  %v2645_v35 = vpop.f32.mrb[93].mxu0  ;;  %v2686_v36 = vpop.f32.mrb[93].mxu1 }
 0xfb9   :  { %v2692_v37 = vadd.f32 %v2645_v35, %v1607_v53  ;;  %v2694_v38 = vadd.f32 %v2686_v36, %v1680_v5  ;;  %v2647_v20 = vpop.f32.mrb[94].mxu0  ;;  %v2688_v40 = vpop.f32.mrb[94].mxu1 }
 0xfba   :  { %v2695_v26 = vmul.f32 0.5, %v2691_v32  ;;  %v2648_v21 = vpop.f32.mrb[95].mxu0  ;;  %v2689_v8 = vpop.f32.mrb[95].mxu1  ;;  %v2697_v6 = vmul.f32 0.5, %v2693_v33 }
 0xfbb   :  { %v2696_v17 = vmul.f32 0.5, %v2692_v37 }
 0xfbc   :  { %3303 = vtanh.f32 %v2695_v26 }
 0xfbd   :  { %3305 = vtanh.f32 %v2696_v17 }
 0xfbe   :  { %3307 = vtanh.f32 %v2694_v38 }
 0xfbf   :  { %3309 = vtanh.f32 %v2697_v6 }
 0xfc6   :  { %v3304_v9 = vpop.eup %3303 }
 0xfc7   :  { %v2701_v14 = vadd.f32 1.0, %v3304_v9  ;;  %v3306_v22 = vpop.eup %3305 }
 0xfc8   :  { %v2702_v1 = vadd.f32 1.0, %v3306_v22  ;;  %v3308_v55 = vpop.eup %3307 }
 0xfc9   :  { %v2704_v23 = vmul.f32 0.5, %v2701_v14  ;;  %v3310_v60 = vpop.eup %3309 }
 0xfca   :  { %v2705_v42 = vmul.f32 0.5, %v2702_v1  ;;  %v2703_v4 = vadd.f32 1.0, %v3310_v60 }
 0xfcb   :  { %v2709_v2 = vmul.f32 %v3308_v55, %v2704_v23 }
 0xfcc   :  { %v2708_v34 = vmul.f32 %v2705_v42, %v5022_v16  ;;  %v2706_v3 = vmul.f32 0.5, %v2703_v4 }
 0xfce   :  { %v2710_v59 = vadd.f32 %v2709_v2, %v2708_v34 }
 0xfd0   :  { %3311 = vtanh.f32 %v2710_v59 }
 0xfda   :  { %v3312_v49 = vpop.eup %3311 }
 0xfdb   :  { %v2712_v19 = vmul.f32 %v3312_v49, %v2706_v3 }
 0xfdd   :  { %v2713_v39 = vpack.c.bf16 %v2712_v19, %v2712_v19 }
 0xfdf   :  { %2985 = vmatmul.mubr.bf16.vlgmr.msra.gmra.mrb[96].mxu0 %v2713_v39 }
0x10b2   :  { %v2819_v7 = vpop.f32.mrb[96].mxu0 }
0x10b3   :  { %v2820_v61 = vadd.f32 %v2946_v57, %v2819_v7  ;;  %v2986_v56 = vpop.f32.mrb[97].mxu0 }
0x10b4   :  { %v2822_v45 = vpop.f32.mrb[98].mxu0 }
0x10b5   :  { %2825 = vst [vmem:[%s5073_s9] sm:$0xff] %v2820_v61  ;;  %v2987_v12 = vpop.f32.mrb[99].mxu0 }

</bundles_post_ra>
